<compile_context>
chip_gen: v5e
topology: v5e:2x2
jax: 0.10.0
libtpu: 0.0.40
codegen_flags: <defaults>
</compile_context>

<pallas_src>
import functools

import jax
import jax.numpy as jnp
from jax.experimental import pallas as pl
from jax.experimental.pallas import tpu as pltpu

EPS = 1e-5
LANES = 128


def _round_up(x, m):
    return ((x + m - 1) // m) * m


# ---------------- Pallas kernel (hot path) ----------------

def _fused_conv_kernel(x_ref, w_ref, sc_ref, bi_ref, *rest, stride, Ho, Wo,
                       relu, has_residual, has_shortcut, pad_out):
    """Fused 3x3 conv (9 in-kernel taps) + BN affine [+ residual] [+ ReLU],
    optionally also emitting a fused 1x1-conv+BN projection shortcut.

    x_ref : (stride*stride, Hq, Wq, Cin)  bf16  -- phase planes of one image
    w_ref : (9, Cin, Cp)                  bf16  -- per-tap weight matrices
    sc_ref, bi_ref : (1, Cp) f32                -- folded BN scale / bias
    rest  : [r_ref (1, M, Cp) f32] [ws (Cin,Cp), ss (1,Cp), bs (1,Cp)]
            o_ref (1, M, Cp) or (1, Ho+2, Wo+2, Cp) [osh_ref (1, M, Cp) f32]
    """
    refs = list(rest)
    r_ref = refs.pop(0) if has_residual else None
    if has_shortcut:
        ws_ref, ss_ref, bs_ref = refs.pop(0), refs.pop(0), refs.pop(0)
    o_ref = refs.pop(0)
    osh_ref = refs.pop(0) if has_shortcut else None

    cin = x_ref.shape[-1]
    M = Ho * Wo

    acc = None
    t = 0
    for dh in range(3):
        for dw in range(3):
            # tap (dh, dw) of the padded image == phase plane p, offset (qh,qw)
            p = (dh % stride) * stride + (dw % stride)
            qh, qw = dh // stride, dw // stride
            xt = x_ref[p, qh:qh + Ho, qw:qw + Wo, :]          # (Ho, Wo, Cin)
            part = jnp.dot(xt.reshape(M, cin), w_ref[t],
                           preferred_element_type=jnp.float32)
            acc = part if acc is None else acc + part
            t += 1

    # f32 epilogue: BN affine (+ residual) (+ ReLU)
    y = acc * sc_ref[...] + bi_ref[...]
    if has_residual:
        y = y + r_ref[0]
    if relu:
        y = jnp.maximum(y, 0.0)

    if pad_out:
        # Emit the conv output already zero-padded (Ho+2, Wo+2) so the next
        # stride-1 3x3 conv can consume it directly (no XLA pad / extra HBM
        # pass on the intermediate).
        cp = y.shape[-1]
        o_ref[...] = jnp.zeros(o_ref.shape, o_ref.dtype)
        o_ref[0, 1:1 + Ho, 1:1 + Wo, :] = (
            y.reshape(Ho, Wo, cp).astype(o_ref.dtype))
    else:
        o_ref[...] = y.reshape(o_ref.shape).astype(o_ref.dtype)

    if has_shortcut:
        # 1x1 projection conv + BN, sampled at the (1,1) position of the
        # padded image (== unpadded x at stride*ho, stride*wo).
        p = (1 % stride) * stride + (1 % stride)
        q = 1 // stride
        xs = x_ref[p, q:q + Ho, q:q + Wo, :]
        sh = jnp.dot(xs.reshape(M, cin), ws_ref[...],
                     preferred_element_type=jnp.float32)
        osh_ref[...] = (sh * ss_ref[...] + bs_ref[...]).reshape(
            osh_ref.shape).astype(osh_ref.dtype)


def fused_conv3x3(xd, w9, scale, bias, *, stride, Ho, Wo,
                  residual=None, shortcut=None, relu=True,
                  out_dtype=jnp.float32, pad_out=False):
    """One fused conv3x3+BN(+res)(+relu)(+1x1-shortcut) pallas_call.

    xd    : (N*stride*stride, Hq, Wq, Cin) bf16  (space-to-depth padded input)
    w9    : (9, Cin, Cp) bf16 ; scale/bias: (1, Cp) f32
    residual : (N, Ho*Wo, Cp) f32 or None
    shortcut : (ws (Cin,Cp) bf16, ss (1,Cp) f32, bs (1,Cp) f32) or None
    pad_out  : if True, main output is (N, Ho+2, Wo+2, Cp) with zero border
               (ready for a following stride-1 3x3 conv); else (N, Ho*Wo, Cp).
    Returns a tuple: (out,) or (out, shortcut_out).
    """
    s2 = stride * stride
    NB = xd.shape[0] // s2
    _, Hq, Wq, Cin = xd.shape
    Cp = w9.shape[-1]
    M = Ho * Wo

    in_specs = [
        pl.BlockSpec((s2, Hq, Wq, Cin), lambda n: (n, 0, 0, 0)),
        # Constant block index -> weights DMA'd once and stay VMEM-resident.
        pl.BlockSpec((9, Cin, Cp), lambda n: (0, 0, 0)),
        pl.BlockSpec((1, Cp), lambda n: (0, 0)),
        pl.BlockSpec((1, Cp), lambda n: (0, 0)),
    ]
    args = [xd, w9, scale, bias]
    if residual is not None:
        in_specs.append(pl.BlockSpec((1, M, Cp), lambda n: (n, 0, 0)))
        args.append(residual)
    if shortcut is not None:
        ws, ss, bs = shortcut
        in_specs += [
            pl.BlockSpec((Cin, Cp), lambda n: (0, 0)),
            pl.BlockSpec((1, Cp), lambda n: (0, 0)),
            pl.BlockSpec((1, Cp), lambda n: (0, 0)),
        ]
        args += [ws, ss, bs]

    if pad_out:
        Ho2, Wo2 = Ho + 2, Wo + 2
        out_shape = [jax.ShapeDtypeStruct((NB, Ho2, Wo2, Cp), out_dtype)]
        out_specs = [pl.BlockSpec((1, Ho2, Wo2, Cp), lambda n: (n, 0, 0, 0))]
    else:
        out_shape = [jax.ShapeDtypeStruct((NB, M, Cp), out_dtype)]
        out_specs = [pl.BlockSpec((1, M, Cp), lambda n: (n, 0, 0))]
    if shortcut is not None:
        out_shape.append(jax.ShapeDtypeStruct((NB, M, Cp), jnp.float32))
        out_specs.append(pl.BlockSpec((1, M, Cp), lambda n: (n, 0, 0)))

    kernel = functools.partial(
        _fused_conv_kernel, stride=stride, Ho=Ho, Wo=Wo, relu=relu,
        has_residual=residual is not None,
        has_shortcut=shortcut is not None,
        pad_out=pad_out)

    flops = 2 * NB * M * 9 * Cin * Cp
    if shortcut is not None:
        flops += 2 * NB * M * Cin * Cp
    bytes_in = sum(int(a.size) * jnp.dtype(a.dtype).itemsize for a in args)
    bytes_out = sum(int(o.size) * jnp.dtype(o.dtype).itemsize
                    for o in out_shape)
    cost = pl.CostEstimate(flops=flops, transcendentals=0,
                           bytes_accessed=bytes_in + bytes_out)

    return pl.pallas_call(
        kernel,
        grid=(NB,),
        in_specs=in_specs,
        out_specs=tuple(out_specs),
        out_shape=tuple(out_shape),
        compiler_params=pltpu.CompilerParams(
            dimension_semantics=("parallel",),
            vmem_limit_bytes=64 * 1024 * 1024),
        cost_estimate=cost,
    )(*args)


# ---------------- Glue: layout prep, weight / BN folding ----------------

def space_to_depth_pad(x_nhwc, stride):
    """Zero-pad H/W by 1 (the conv padding) and split into stride x stride
    phase planes so every conv tap becomes a contiguous in-kernel slice.
    Pure 1x rearrangement (no 9x im2col blow-up).
    result[(n*s + ph)*s + pw, i, j, c] == x_padded[n, i*s+ph, j*s+pw, c]."""
    N, H, W, C = x_nhwc.shape
    Hp, Wp = H + 2, W + 2
    Hq = -(-Hp // stride)
    Wq = -(-Wp // stride)
    xp = jnp.pad(x_nhwc, ((0, 0),
                          (1, 1 + Hq * stride - Hp),
                          (1, 1 + Wq * stride - Wp),
                          (0, 0)))
    xd = xp.reshape(N, Hq, stride, Wq, stride, C)
    xd = jnp.transpose(xd, (0, 2, 4, 1, 3, 5))
    return xd.reshape(N * stride * stride, Hq, Wq, C)


def prep_weight3x3(w_oihw, cin_pad, cout_pad):
    """(Cout, Cin, 3, 3) -> (9, cin_pad, cout_pad) bf16, tap-major."""
    Cout, Cin, kh, kw = w_oihw.shape
    w = jnp.transpose(w_oihw, (2, 3, 1, 0)).reshape(kh * kw, Cin, Cout)
    w = jnp.pad(w, ((0, 0), (0, cin_pad - Cin), (0, cout_pad - Cout)))
    return w.astype(jnp.bfloat16)


def prep_weight1x1(w_oihw, cout_pad):
    Cout, Cin = w_oihw.shape[:2]
    wm = jnp.transpose(w_oihw[:, :, 0, 0], (1, 0))          # (Cin, Cout)
    return jnp.pad(wm, ((0, 0), (0, cout_pad - Cout))).astype(jnp.bfloat16)


def fold_bn(bn, cout_pad):
    s = bn["gamma"] / jnp.sqrt(bn["var"] + EPS)
    b = bn["beta"] - bn["mean"] * s
    c = s.shape[0]
    s = jnp.pad(s, (0, cout_pad - c)).reshape(1, cout_pad).astype(jnp.float32)
    b = jnp.pad(b, (0, cout_pad - c)).reshape(1, cout_pad).astype(jnp.float32)
    return s, b


def residual_block_forward(x_nchw, params, stride):
    N, Cin, H, W = x_nchw.shape
    Cout = params["w1"].shape[0]
    Cp = _round_up(Cout, LANES)          # lane-dense output channels
    Ho = (H - 1) // stride + 1
    Wo = (W - 1) // stride + 1

    x_nhwc = jnp.transpose(x_nchw, (0, 2, 3, 1))             # NHWC f32
    x_bf16 = x_nhwc.astype(jnp.bfloat16)

    # ---- conv1 (3x3, stride) + bn1 + relu  [projection shortcut fused] ----
    # Output is emitted already zero-padded (Ho+2, Wo+2, Cp) bf16 so conv2
    # can consume it directly (stride-1 space-to-depth == identity).
    xd1 = space_to_depth_pad(x_bf16, stride)
    w1 = prep_weight3x3(params["w1"], Cin, Cp)
    s1, b1 = fold_bn(params["bn1"], Cp)

    needs_proj = (stride != 1) or (Cin != Cout)
    if needs_proj:
        ws = prep_weight1x1(params["ws"], Cp)
        ss, bs = fold_bn(params["bns"], Cp)
        out1p, short = fused_conv3x3(
            xd1, w1, s1, b1, stride=stride, Ho=Ho, Wo=Wo,
            shortcut=(ws, ss, bs), relu=True, out_dtype=jnp.bfloat16,
            pad_out=True)
    else:
        (out1p,) = fused_conv3x3(
            xd1, w1, s1, b1, stride=stride, Ho=Ho, Wo=Wo,
            relu=True, out_dtype=jnp.bfloat16, pad_out=True)
        short = jnp.pad(x_nhwc.reshape(N, H * W, Cin),
                        ((0, 0), (0, 0), (0, Cp - Cin)))     # identity, f32

    # ---- conv2 (3x3, stride 1) + bn2 + residual add + relu (one kernel) ----
    w2 = prep_weight3x3(params["w2"], Cp, Cp)
    s2, b2 = fold_bn(params["bn2"], Cp)
    (out2,) = fused_conv3x3(
        out1p, w2, s2, b2, stride=1, Ho=Ho, Wo=Wo,
        residual=short, relu=True, out_dtype=jnp.float32)

    out = out2[:, :, :Cout].reshape(N, Ho, Wo, Cout)
    return jnp.transpose(out, (0, 3, 1, 2))                  # back to NCHW


# ---------------- Pure-JAX reference (correctness check) ----------------

def ref_forward(x, params, stride):
    def conv(x, w, s, pad):
        return jax.lax.conv_general_dilated(
            x, w, (s, s), ((pad, pad), (pad, pad)),
            dimension_numbers=("NCHW", "OIHW", "NCHW"))

    def bn(x, p):
        s = p["gamma"] / jnp.sqrt(p["var"] + EPS)
        b = p["beta"] - p["mean"] * s
        return x * s[None, :, None, None] + b[None, :, None, None]

    out = jax.nn.relu(bn(conv(x, params["w1"], stride, 1), params["bn1"]))
    out = bn(conv(out, params["w2"], 1, 1), params["bn2"])
    cin, cout = params["w1"].shape[1], params["w1"].shape[0]
    if stride != 1 or cin != cout:
        sc = bn(conv(x, params["ws"], stride, 0), params["bns"])
    else:
        sc = x
    return jax.nn.relu(out + sc)


# ---------------- Parameter init (deterministic, synthetic) ----------------

def make_bn_params(key, c):
    k1, k2, k3, k4 = jax.random.split(key, 4)
    return {
        "gamma": 1.0 + 0.1 * jax.random.normal(k1, (c,), jnp.float32),
        "beta": 0.1 * jax.random.normal(k2, (c,), jnp.float32),
        "mean": 0.1 * jax.random.normal(k3, (c,), jnp.float32),
        "var": 0.5 + jax.random.uniform(k4, (c,), jnp.float32),
    }


def make_params(key, cin, cout, stride):
    ks = jax.random.split(key, 6)
    params = {
        "w1": 0.1 * jax.random.normal(ks[0], (cout, cin, 3, 3), jnp.float32),
        "bn1": make_bn_params(ks[1], cout),
        "w2": 0.1 * jax.random.normal(ks[2], (cout, cout, 3, 3), jnp.float32),
        "bn2": make_bn_params(ks[3], cout),
    }
    if stride != 1 or cin != cout:
        params["ws"] = 0.1 * jax.random.normal(ks[4], (cout, cin, 1, 1),
                                               jnp.float32)
        params["bns"] = make_bn_params(ks[5], cout)
    return params


if __name__ == "__main__":
    key = jax.random.PRNGKey(0)
    kx, kp = jax.random.split(key)

    N, Cin, H, W = 2, 4, 16, 16
    Cout, stride = 8, 2  # exercises the fused projection-shortcut path

    x = jax.random.normal(kx, (N, Cin, H, W), jnp.float32)
    params = make_params(kp, Cin, Cout, stride)

    fwd = jax.jit(functools.partial(residual_block_forward, stride=stride))
    out = jax.block_until_ready(fwd(x, params))

    ref_fn = jax.jit(functools.partial(ref_forward, stride=stride))
    ref = jax.block_until_ready(ref_fn(x, params))

    assert out.shape == ref.shape
    max_err = float(jnp.max(jnp.abs(out - ref)))
    # bf16 matmul inputs + f32 accumulation: loosen tolerance vs f32 reference.
    assert jnp.allclose(out, ref, atol=3e-2, rtol=3e-2), \
        f"mismatch vs reference (max abs err {max_err})"

    print("KERNEL_OK")
</pallas_src>

<mosaic_0001>
module attributes {stable_mosaic.version = 11 : i64} {
  func.func @_fused_conv_kernel(%arg0: i32, %arg1: memref<4x9x9x4xbf16, #tpu.memory_space<vmem>>, %arg2: memref<9x4x128xbf16, #tpu.memory_space<vmem>>, %arg3: memref<1x128xf32, #tpu.memory_space<vmem>>, %arg4: memref<1x128xf32, #tpu.memory_space<vmem>>, %arg5: memref<4x128xbf16, #tpu.memory_space<vmem>>, %arg6: memref<1x128xf32, #tpu.memory_space<vmem>>, %arg7: memref<1x128xf32, #tpu.memory_space<vmem>>, %arg8: memref<1x10x10x128xbf16, #tpu.memory_space<vmem>>, %arg9: memref<1x64x128xf32, #tpu.memory_space<vmem>>) attributes {dimension_semantics = [#tpu.dimension_semantics<parallel>], iteration_bounds = array<i64: 2>, scalar_prefetch = 0 : i64, scratch_operands = 0 : i64, tpu.core_type = #tpu.core_type<tc>, window_params = [{transform_indices = @transform_0, window_bounds = array<i64: 4, 9, 9, 4>}, {pipeline_mode = #tpu.pipeline_mode<synchronous>, transform_indices = @transform_1, window_bounds = array<i64: 9, 4, 128>}, {pipeline_mode = #tpu.pipeline_mode<synchronous>, transform_indices = @transform_2, window_bounds = array<i64: 1, 128>}, {pipeline_mode = #tpu.pipeline_mode<synchronous>, transform_indices = @transform_3, window_bounds = array<i64: 1, 128>}, {pipeline_mode = #tpu.pipeline_mode<synchronous>, transform_indices = @transform_4, window_bounds = array<i64: 4, 128>}, {pipeline_mode = #tpu.pipeline_mode<synchronous>, transform_indices = @transform_5, window_bounds = array<i64: 1, 128>}, {pipeline_mode = #tpu.pipeline_mode<synchronous>, transform_indices = @transform_6, window_bounds = array<i64: 1, 128>}, {transform_indices = @transform_7, window_bounds = array<i64: 1, 10, 10, 128>}, {transform_indices = @transform_8, window_bounds = array<i64: 1, 64, 128>}]} {
    %c0 = arith.constant 0 : index
    %c0_0 = arith.constant 0 : index
    %c0_1 = arith.constant 0 : index
    %c0_2 = arith.constant 0 : index
    %0 = vector.load %arg1[%c0, %c0_0, %c0_1, %c0_2] : memref<4x9x9x4xbf16, #tpu.memory_space<vmem>>, vector<1x8x8x4xbf16>
    %1 = vector.shape_cast %0 : vector<1x8x8x4xbf16> to vector<8x8x4xbf16>
    %2 = vector.shape_cast %1 : vector<8x8x4xbf16> to vector<64x4xbf16>
    %c0_3 = arith.constant 0 : index
    %c0_4 = arith.constant 0 : index
    %c0_5 = arith.constant 0 : index
    %3 = vector.load %arg2[%c0_3, %c0_4, %c0_5] : memref<9x4x128xbf16, #tpu.memory_space<vmem>>, vector<1x4x128xbf16>
    %4 = vector.shape_cast %3 : vector<1x4x128xbf16> to vector<4x128xbf16>
    %cst = arith.constant dense<0.000000e+00> : vector<64x128xf32>
    %5 = tpu.matmul %2, %4, %cst {dimension_numbers = #tpu.dot_dimension_numbers<[1], [0], [0], [1], [0, 0, 1, 1], [], []>} : vector<64x4xbf16>, vector<4x128xbf16>, vector<64x128xf32> -> vector<64x128xf32>
    %c1 = arith.constant 1 : index
    %c0_6 = arith.constant 0 : index
    %c0_7 = arith.constant 0 : index
    %c0_8 = arith.constant 0 : index
    %6 = vector.load %arg1[%c1, %c0_6, %c0_7, %c0_8] : memref<4x9x9x4xbf16, #tpu.memory_space<vmem>>, vector<1x8x8x4xbf16>
    %7 = vector.shape_cast %6 : vector<1x8x8x4xbf16> to vector<8x8x4xbf16>
    %8 = vector.shape_cast %7 : vector<8x8x4xbf16> to vector<64x4xbf16>
    %c1_9 = arith.constant 1 : index
    %c0_10 = arith.constant 0 : index
    %c0_11 = arith.constant 0 : index
    %9 = vector.load %arg2[%c1_9, %c0_10, %c0_11] : memref<9x4x128xbf16, #tpu.memory_space<vmem>>, vector<1x4x128xbf16>
    %10 = vector.shape_cast %9 : vector<1x4x128xbf16> to vector<4x128xbf16>
    %cst_12 = arith.constant dense<0.000000e+00> : vector<64x128xf32>
    %11 = tpu.matmul %8, %10, %cst_12 {dimension_numbers = #tpu.dot_dimension_numbers<[1], [0], [0], [1], [0, 0, 1, 1], [], []>} : vector<64x4xbf16>, vector<4x128xbf16>, vector<64x128xf32> -> vector<64x128xf32>
    %12 = arith.addf %5, %11 : vector<64x128xf32>
    %c0_13 = arith.constant 0 : index
    %c0_14 = arith.constant 0 : index
    %c1_15 = arith.constant 1 : index
    %c0_16 = arith.constant 0 : index
    %13 = vector.load %arg1[%c0_13, %c0_14, %c1_15, %c0_16] : memref<4x9x9x4xbf16, #tpu.memory_space<vmem>>, vector<1x8x8x4xbf16>
    %14 = vector.shape_cast %13 : vector<1x8x8x4xbf16> to vector<8x8x4xbf16>
    %15 = vector.shape_cast %14 : vector<8x8x4xbf16> to vector<64x4xbf16>
    %c2 = arith.constant 2 : index
    %c0_17 = arith.constant 0 : index
    %c0_18 = arith.constant 0 : index
    %16 = vector.load %arg2[%c2, %c0_17, %c0_18] : memref<9x4x128xbf16, #tpu.memory_space<vmem>>, vector<1x4x128xbf16>
    %17 = vector.shape_cast %16 : vector<1x4x128xbf16> to vector<4x128xbf16>
    %cst_19 = arith.constant dense<0.000000e+00> : vector<64x128xf32>
    %18 = tpu.matmul %15, %17, %cst_19 {dimension_numbers = #tpu.dot_dimension_numbers<[1], [0], [0], [1], [0, 0, 1, 1], [], []>} : vector<64x4xbf16>, vector<4x128xbf16>, vector<64x128xf32> -> vector<64x128xf32>
    %19 = arith.addf %12, %18 : vector<64x128xf32>
    %c2_20 = arith.constant 2 : index
    %c0_21 = arith.constant 0 : index
    %c0_22 = arith.constant 0 : index
    %c0_23 = arith.constant 0 : index
    %20 = vector.load %arg1[%c2_20, %c0_21, %c0_22, %c0_23] : memref<4x9x9x4xbf16, #tpu.memory_space<vmem>>, vector<1x8x8x4xbf16>
    %21 = vector.shape_cast %20 : vector<1x8x8x4xbf16> to vector<8x8x4xbf16>
    %22 = vector.shape_cast %21 : vector<8x8x4xbf16> to vector<64x4xbf16>
    %c3 = arith.constant 3 : index
    %c0_24 = arith.constant 0 : index
    %c0_25 = arith.constant 0 : index
    %23 = vector.load %arg2[%c3, %c0_24, %c0_25] : memref<9x4x128xbf16, #tpu.memory_space<vmem>>, vector<1x4x128xbf16>
    %24 = vector.shape_cast %23 : vector<1x4x128xbf16> to vector<4x128xbf16>
    %cst_26 = arith.constant dense<0.000000e+00> : vector<64x128xf32>
    %25 = tpu.matmul %22, %24, %cst_26 {dimension_numbers = #tpu.dot_dimension_numbers<[1], [0], [0], [1], [0, 0, 1, 1], [], []>} : vector<64x4xbf16>, vector<4x128xbf16>, vector<64x128xf32> -> vector<64x128xf32>
    %26 = arith.addf %19, %25 : vector<64x128xf32>
    %c3_27 = arith.constant 3 : index
    %c0_28 = arith.constant 0 : index
    %c0_29 = arith.constant 0 : index
    %c0_30 = arith.constant 0 : index
    %27 = vector.load %arg1[%c3_27, %c0_28, %c0_29, %c0_30] : memref<4x9x9x4xbf16, #tpu.memory_space<vmem>>, vector<1x8x8x4xbf16>
    %28 = vector.shape_cast %27 : vector<1x8x8x4xbf16> to vector<8x8x4xbf16>
    %29 = vector.shape_cast %28 : vector<8x8x4xbf16> to vector<64x4xbf16>
    %c4 = arith.constant 4 : index
    %c0_31 = arith.constant 0 : index
    %c0_32 = arith.constant 0 : index
    %30 = vector.load %arg2[%c4, %c0_31, %c0_32] : memref<9x4x128xbf16, #tpu.memory_space<vmem>>, vector<1x4x128xbf16>
    %31 = vector.shape_cast %30 : vector<1x4x128xbf16> to vector<4x128xbf16>
    %cst_33 = arith.constant dense<0.000000e+00> : vector<64x128xf32>
    %32 = tpu.matmul %29, %31, %cst_33 {dimension_numbers = #tpu.dot_dimension_numbers<[1], [0], [0], [1], [0, 0, 1, 1], [], []>} : vector<64x4xbf16>, vector<4x128xbf16>, vector<64x128xf32> -> vector<64x128xf32>
    %33 = arith.addf %26, %32 : vector<64x128xf32>
    %c2_34 = arith.constant 2 : index
    %c0_35 = arith.constant 0 : index
    %c1_36 = arith.constant 1 : index
    %c0_37 = arith.constant 0 : index
    %34 = vector.load %arg1[%c2_34, %c0_35, %c1_36, %c0_37] : memref<4x9x9x4xbf16, #tpu.memory_space<vmem>>, vector<1x8x8x4xbf16>
    %35 = vector.shape_cast %34 : vector<1x8x8x4xbf16> to vector<8x8x4xbf16>
    %36 = vector.shape_cast %35 : vector<8x8x4xbf16> to vector<64x4xbf16>
    %c5 = arith.constant 5 : index
    %c0_38 = arith.constant 0 : index
    %c0_39 = arith.constant 0 : index
    %37 = vector.load %arg2[%c5, %c0_38, %c0_39] : memref<9x4x128xbf16, #tpu.memory_space<vmem>>, vector<1x4x128xbf16>
    %38 = vector.shape_cast %37 : vector<1x4x128xbf16> to vector<4x128xbf16>
    %cst_40 = arith.constant dense<0.000000e+00> : vector<64x128xf32>
    %39 = tpu.matmul %36, %38, %cst_40 {dimension_numbers = #tpu.dot_dimension_numbers<[1], [0], [0], [1], [0, 0, 1, 1], [], []>} : vector<64x4xbf16>, vector<4x128xbf16>, vector<64x128xf32> -> vector<64x128xf32>
    %40 = arith.addf %33, %39 : vector<64x128xf32>
    %c0_41 = arith.constant 0 : index
    %c1_42 = arith.constant 1 : index
    %c0_43 = arith.constant 0 : index
    %c0_44 = arith.constant 0 : index
    %41 = vector.load %arg1[%c0_41, %c1_42, %c0_43, %c0_44] : memref<4x9x9x4xbf16, #tpu.memory_space<vmem>>, vector<1x8x8x4xbf16>
    %42 = vector.shape_cast %41 : vector<1x8x8x4xbf16> to vector<8x8x4xbf16>
    %43 = vector.shape_cast %42 : vector<8x8x4xbf16> to vector<64x4xbf16>
    %c6 = arith.constant 6 : index
    %c0_45 = arith.constant 0 : index
    %c0_46 = arith.constant 0 : index
    %44 = vector.load %arg2[%c6, %c0_45, %c0_46] : memref<9x4x128xbf16, #tpu.memory_space<vmem>>, vector<1x4x128xbf16>
    %45 = vector.shape_cast %44 : vector<1x4x128xbf16> to vector<4x128xbf16>
    %cst_47 = arith.constant dense<0.000000e+00> : vector<64x128xf32>
    %46 = tpu.matmul %43, %45, %cst_47 {dimension_numbers = #tpu.dot_dimension_numbers<[1], [0], [0], [1], [0, 0, 1, 1], [], []>} : vector<64x4xbf16>, vector<4x128xbf16>, vector<64x128xf32> -> vector<64x128xf32>
    %47 = arith.addf %40, %46 : vector<64x128xf32>
    %c1_48 = arith.constant 1 : index
    %c1_49 = arith.constant 1 : index
    %c0_50 = arith.constant 0 : index
    %c0_51 = arith.constant 0 : index
    %48 = vector.load %arg1[%c1_48, %c1_49, %c0_50, %c0_51] : memref<4x9x9x4xbf16, #tpu.memory_space<vmem>>, vector<1x8x8x4xbf16>
    %49 = vector.shape_cast %48 : vector<1x8x8x4xbf16> to vector<8x8x4xbf16>
    %50 = vector.shape_cast %49 : vector<8x8x4xbf16> to vector<64x4xbf16>
    %c7 = arith.constant 7 : index
    %c0_52 = arith.constant 0 : index
    %c0_53 = arith.constant 0 : index
    %51 = vector.load %arg2[%c7, %c0_52, %c0_53] : memref<9x4x128xbf16, #tpu.memory_space<vmem>>, vector<1x4x128xbf16>
    %52 = vector.shape_cast %51 : vector<1x4x128xbf16> to vector<4x128xbf16>
    %cst_54 = arith.constant dense<0.000000e+00> : vector<64x128xf32>
    %53 = tpu.matmul %50, %52, %cst_54 {dimension_numbers = #tpu.dot_dimension_numbers<[1], [0], [0], [1], [0, 0, 1, 1], [], []>} : vector<64x4xbf16>, vector<4x128xbf16>, vector<64x128xf32> -> vector<64x128xf32>
    %54 = arith.addf %47, %53 : vector<64x128xf32>
    %c0_55 = arith.constant 0 : index
    %c1_56 = arith.constant 1 : index
    %c1_57 = arith.constant 1 : index
    %c0_58 = arith.constant 0 : index
    %55 = vector.load %arg1[%c0_55, %c1_56, %c1_57, %c0_58] : memref<4x9x9x4xbf16, #tpu.memory_space<vmem>>, vector<1x8x8x4xbf16>
    %56 = vector.shape_cast %55 : vector<1x8x8x4xbf16> to vector<8x8x4xbf16>
    %57 = vector.shape_cast %56 : vector<8x8x4xbf16> to vector<64x4xbf16>
    %c8 = arith.constant 8 : index
    %c0_59 = arith.constant 0 : index
    %c0_60 = arith.constant 0 : index
    %58 = vector.load %arg2[%c8, %c0_59, %c0_60] : memref<9x4x128xbf16, #tpu.memory_space<vmem>>, vector<1x4x128xbf16>
    %59 = vector.shape_cast %58 : vector<1x4x128xbf16> to vector<4x128xbf16>
    %cst_61 = arith.constant dense<0.000000e+00> : vector<64x128xf32>
    %60 = tpu.matmul %57, %59, %cst_61 {dimension_numbers = #tpu.dot_dimension_numbers<[1], [0], [0], [1], [0, 0, 1, 1], [], []>} : vector<64x4xbf16>, vector<4x128xbf16>, vector<64x128xf32> -> vector<64x128xf32>
    %61 = arith.addf %54, %60 : vector<64x128xf32>
    %c0_62 = arith.constant 0 : index
    %c0_63 = arith.constant 0 : index
    %62 = vector.load %arg3[%c0_62, %c0_63] : memref<1x128xf32, #tpu.memory_space<vmem>>, vector<1x128xf32>
    %63 = vector.broadcast %62 : vector<1x128xf32> to vector<64x128xf32>
    %64 = arith.mulf %61, %63 : vector<64x128xf32>
    %c0_64 = arith.constant 0 : index
    %c0_65 = arith.constant 0 : index
    %65 = vector.load %arg4[%c0_64, %c0_65] : memref<1x128xf32, #tpu.memory_space<vmem>>, vector<1x128xf32>
    %66 = vector.broadcast %65 : vector<1x128xf32> to vector<64x128xf32>
    %67 = arith.addf %64, %66 : vector<64x128xf32>
    %cst_66 = arith.constant 0.000000e+00 : f32
    %68 = vector.broadcast %cst_66 : f32 to vector<64x128xf32>
    %69 = arith.maximumf %67, %68 : vector<64x128xf32>
    %cst_67 = arith.constant 0.000000e+00 : bf16
    %70 = vector.broadcast %cst_67 : bf16 to vector<1x10x10x128xbf16>
    %c0_68 = arith.constant 0 : index
    %c0_69 = arith.constant 0 : index
    %c0_70 = arith.constant 0 : index
    %c0_71 = arith.constant 0 : index
    %71 = vector.load %arg8[%c0_68, %c0_69, %c0_70, %c0_71] : memref<1x10x10x128xbf16, #tpu.memory_space<vmem>>, vector<1x10x10x128xbf16>
    tpu.vector_store %arg8[%c0_68, %c0_69, %c0_70, %c0_71], %70 {strides = array<i32>} : memref<1x10x10x128xbf16, #tpu.memory_space<vmem>>, vector<1x10x10x128xbf16>,
    %72 = vector.shape_cast %69 : vector<64x128xf32> to vector<8x8x128xf32>
    %73 = arith.truncf %72 : vector<8x8x128xf32> to vector<8x8x128xbf16>
    %c0_72 = arith.constant 0 : index
    %c1_73 = arith.constant 1 : index
    %c1_74 = arith.constant 1 : index
    %c0_75 = arith.constant 0 : index
    %74 = vector.load %arg8[%c0_72, %c1_73, %c1_74, %c0_75] : memref<1x10x10x128xbf16, #tpu.memory_space<vmem>>, vector<1x8x8x128xbf16>
    %75 = vector.shape_cast %74 : vector<1x8x8x128xbf16> to vector<8x8x128xbf16>
    %76 = vector.shape_cast %73 : vector<8x8x128xbf16> to vector<1x8x8x128xbf16>
    tpu.vector_store %arg8[%c0_72, %c1_73, %c1_74, %c0_75], %76 {strides = array<i32>} : memref<1x10x10x128xbf16, #tpu.memory_space<vmem>>, vector<1x8x8x128xbf16>,
    %c3_76 = arith.constant 3 : index
    %c0_77 = arith.constant 0 : index
    %c0_78 = arith.constant 0 : index
    %c0_79 = arith.constant 0 : index
    %77 = vector.load %arg1[%c3_76, %c0_77, %c0_78, %c0_79] : memref<4x9x9x4xbf16, #tpu.memory_space<vmem>>, vector<1x8x8x4xbf16>
    %78 = vector.shape_cast %77 : vector<1x8x8x4xbf16> to vector<8x8x4xbf16>
    %79 = vector.shape_cast %78 : vector<8x8x4xbf16> to vector<64x4xbf16>
    %c0_80 = arith.constant 0 : index
    %c0_81 = arith.constant 0 : index
    %80 = vector.load %arg5[%c0_80, %c0_81] : memref<4x128xbf16, #tpu.memory_space<vmem>>, vector<4x128xbf16>
    %cst_82 = arith.constant dense<0.000000e+00> : vector<64x128xf32>
    %81 = tpu.matmul %79, %80, %cst_82 {dimension_numbers = #tpu.dot_dimension_numbers<[1], [0], [0], [1], [0, 0, 1, 1], [], []>} : vector<64x4xbf16>, vector<4x128xbf16>, vector<64x128xf32> -> vector<64x128xf32>
    %c0_83 = arith.constant 0 : index
    %c0_84 = arith.constant 0 : index
    %82 = vector.load %arg6[%c0_83, %c0_84] : memref<1x128xf32, #tpu.memory_space<vmem>>, vector<1x128xf32>
    %83 = vector.broadcast %82 : vector<1x128xf32> to vector<64x128xf32>
    %84 = arith.mulf %81, %83 : vector<64x128xf32>
    %c0_85 = arith.constant 0 : index
    %c0_86 = arith.constant 0 : index
    %85 = vector.load %arg7[%c0_85, %c0_86] : memref<1x128xf32, #tpu.memory_space<vmem>>, vector<1x128xf32>
    %86 = vector.broadcast %85 : vector<1x128xf32> to vector<64x128xf32>
    %87 = arith.addf %84, %86 : vector<64x128xf32>
    %88 = vector.shape_cast %87 : vector<64x128xf32> to vector<1x64x128xf32>
    %c0_87 = arith.constant 0 : index
    %c0_88 = arith.constant 0 : index
    %c0_89 = arith.constant 0 : index
    %89 = vector.load %arg9[%c0_87, %c0_88, %c0_89] : memref<1x64x128xf32, #tpu.memory_space<vmem>>, vector<1x64x128xf32>
    tpu.vector_store %arg9[%c0_87, %c0_88, %c0_89], %88 {strides = array<i32>} : memref<1x64x128xf32, #tpu.memory_space<vmem>>, vector<1x64x128xf32>,
    return
  }
  func.func @transform_0(%arg0: i32) -> (i32, i32, i32, i32) {
    %c0_i32 = arith.constant 0 : i32
    %c0_i32_0 = arith.constant 0 : i32
    %c0_i32_1 = arith.constant 0 : i32
    %c0_i32_2 = arith.constant 0 : i32
    return %arg0, %c0_i32, %c0_i32_0, %c0_i32_1 : i32, i32, i32, i32
  }
  func.func @transform_1(%arg0: i32) -> (i32, i32, i32) {
    %c0_i32 = arith.constant 0 : i32
    %c0_i32_0 = arith.constant 0 : i32
    %c0_i32_1 = arith.constant 0 : i32
    %c0_i32_2 = arith.constant 0 : i32
    return %c0_i32, %c0_i32_0, %c0_i32_1 : i32, i32, i32
  }
  func.func @transform_2(%arg0: i32) -> (i32, i32) {
    %c0_i32 = arith.constant 0 : i32
    %c0_i32_0 = arith.constant 0 : i32
    %c0_i32_1 = arith.constant 0 : i32
    return %c0_i32, %c0_i32_0 : i32, i32
  }
  func.func @transform_3(%arg0: i32) -> (i32, i32) {
    %c0_i32 = arith.constant 0 : i32
    %c0_i32_0 = arith.constant 0 : i32
    %c0_i32_1 = arith.constant 0 : i32
    return %c0_i32, %c0_i32_0 : i32, i32
  }
  func.func @transform_4(%arg0: i32) -> (i32, i32) {
    %c0_i32 = arith.constant 0 : i32
    %c0_i32_0 = arith.constant 0 : i32
    %c0_i32_1 = arith.constant 0 : i32
    return %c0_i32, %c0_i32_0 : i32, i32
  }
  func.func @transform_5(%arg0: i32) -> (i32, i32) {
    %c0_i32 = arith.constant 0 : i32
    %c0_i32_0 = arith.constant 0 : i32
    %c0_i32_1 = arith.constant 0 : i32
    return %c0_i32, %c0_i32_0 : i32, i32
  }
  func.func @transform_6(%arg0: i32) -> (i32, i32) {
    %c0_i32 = arith.constant 0 : i32
    %c0_i32_0 = arith.constant 0 : i32
    %c0_i32_1 = arith.constant 0 : i32
    return %c0_i32, %c0_i32_0 : i32, i32
  }
  func.func @transform_7(%arg0: i32) -> (i32, i32, i32, i32) {
    %c0_i32 = arith.constant 0 : i32
    %c0_i32_0 = arith.constant 0 : i32
    %c0_i32_1 = arith.constant 0 : i32
    %c0_i32_2 = arith.constant 0 : i32
    return %arg0, %c0_i32, %c0_i32_0, %c0_i32_1 : i32, i32, i32, i32
  }
  func.func @transform_8(%arg0: i32) -> (i32, i32, i32) {
    %c0_i32 = arith.constant 0 : i32
    %c0_i32_0 = arith.constant 0 : i32
    %c0_i32_1 = arith.constant 0 : i32
    return %arg0, %c0_i32, %c0_i32_0 : i32, i32, i32
  }
}

module attributes {stable_mosaic.version = 11 : i64} {
  func.func @_fused_conv_kernel(%arg0: i32, %arg1: memref<1x10x10x128xbf16, #tpu.memory_space<vmem>>, %arg2: memref<9x128x128xbf16, #tpu.memory_space<vmem>>, %arg3: memref<1x128xf32, #tpu.memory_space<vmem>>, %arg4: memref<1x128xf32, #tpu.memory_space<vmem>>, %arg5: memref<1x64x128xf32, #tpu.memory_space<vmem>>, %arg6: memref<1x64x128xf32, #tpu.memory_space<vmem>>) attributes {dimension_semantics = [#tpu.dimension_semantics<parallel>], iteration_bounds = array<i64: 2>, scalar_prefetch = 0 : i64, scratch_operands = 0 : i64, tpu.core_type = #tpu.core_type<tc>, window_params = [{transform_indices = @transform_0, window_bounds = array<i64: 1, 10, 10, 128>}, {pipeline_mode = #tpu.pipeline_mode<synchronous>, transform_indices = @transform_1, window_bounds = array<i64: 9, 128, 128>}, {pipeline_mode = #tpu.pipeline_mode<synchronous>, transform_indices = @transform_2, window_bounds = array<i64: 1, 128>}, {pipeline_mode = #tpu.pipeline_mode<synchronous>, transform_indices = @transform_3, window_bounds = array<i64: 1, 128>}, {transform_indices = @transform_4, window_bounds = array<i64: 1, 64, 128>}, {transform_indices = @transform_5, window_bounds = array<i64: 1, 64, 128>}]} {
    %c0 = arith.constant 0 : index
    %c0_0 = arith.constant 0 : index
    %c0_1 = arith.constant 0 : index
    %c0_2 = arith.constant 0 : index
    %0 = vector.load %arg1[%c0, %c0_0, %c0_1, %c0_2] : memref<1x10x10x128xbf16, #tpu.memory_space<vmem>>, vector<1x8x8x128xbf16>
    %1 = vector.shape_cast %0 : vector<1x8x8x128xbf16> to vector<8x8x128xbf16>
    %2 = vector.shape_cast %1 : vector<8x8x128xbf16> to vector<64x128xbf16>
    %c0_3 = arith.constant 0 : index
    %c0_4 = arith.constant 0 : index
    %c0_5 = arith.constant 0 : index
    %3 = vector.load %arg2[%c0_3, %c0_4, %c0_5] : memref<9x128x128xbf16, #tpu.memory_space<vmem>>, vector<1x128x128xbf16>
    %4 = vector.shape_cast %3 : vector<1x128x128xbf16> to vector<128x128xbf16>
    %cst = arith.constant dense<0.000000e+00> : vector<64x128xf32>
    %5 = tpu.matmul %2, %4, %cst {dimension_numbers = #tpu.dot_dimension_numbers<[1], [0], [0], [1], [0, 0, 1, 1], [], []>} : vector<64x128xbf16>, vector<128x128xbf16>, vector<64x128xf32> -> vector<64x128xf32>
    %c0_6 = arith.constant 0 : index
    %c0_7 = arith.constant 0 : index
    %c1 = arith.constant 1 : index
    %c0_8 = arith.constant 0 : index
    %6 = vector.load %arg1[%c0_6, %c0_7, %c1, %c0_8] : memref<1x10x10x128xbf16, #tpu.memory_space<vmem>>, vector<1x8x8x128xbf16>
    %7 = vector.shape_cast %6 : vector<1x8x8x128xbf16> to vector<8x8x128xbf16>
    %8 = vector.shape_cast %7 : vector<8x8x128xbf16> to vector<64x128xbf16>
    %c1_9 = arith.constant 1 : index
    %c0_10 = arith.constant 0 : index
    %c0_11 = arith.constant 0 : index
    %9 = vector.load %arg2[%c1_9, %c0_10, %c0_11] : memref<9x128x128xbf16, #tpu.memory_space<vmem>>, vector<1x128x128xbf16>
    %10 = vector.shape_cast %9 : vector<1x128x128xbf16> to vector<128x128xbf16>
    %cst_12 = arith.constant dense<0.000000e+00> : vector<64x128xf32>
    %11 = tpu.matmul %8, %10, %cst_12 {dimension_numbers = #tpu.dot_dimension_numbers<[1], [0], [0], [1], [0, 0, 1, 1], [], []>} : vector<64x128xbf16>, vector<128x128xbf16>, vector<64x128xf32> -> vector<64x128xf32>
    %12 = arith.addf %5, %11 : vector<64x128xf32>
    %c0_13 = arith.constant 0 : index
    %c0_14 = arith.constant 0 : index
    %c2 = arith.constant 2 : index
    %c0_15 = arith.constant 0 : index
    %13 = vector.load %arg1[%c0_13, %c0_14, %c2, %c0_15] : memref<1x10x10x128xbf16, #tpu.memory_space<vmem>>, vector<1x8x8x128xbf16>
    %14 = vector.shape_cast %13 : vector<1x8x8x128xbf16> to vector<8x8x128xbf16>
    %15 = vector.shape_cast %14 : vector<8x8x128xbf16> to vector<64x128xbf16>
    %c2_16 = arith.constant 2 : index
    %c0_17 = arith.constant 0 : index
    %c0_18 = arith.constant 0 : index
    %16 = vector.load %arg2[%c2_16, %c0_17, %c0_18] : memref<9x128x128xbf16, #tpu.memory_space<vmem>>, vector<1x128x128xbf16>
    %17 = vector.shape_cast %16 : vector<1x128x128xbf16> to vector<128x128xbf16>
    %cst_19 = arith.constant dense<0.000000e+00> : vector<64x128xf32>
    %18 = tpu.matmul %15, %17, %cst_19 {dimension_numbers = #tpu.dot_dimension_numbers<[1], [0], [0], [1], [0, 0, 1, 1], [], []>} : vector<64x128xbf16>, vector<128x128xbf16>, vector<64x128xf32> -> vector<64x128xf32>
    %19 = arith.addf %12, %18 : vector<64x128xf32>
    %c0_20 = arith.constant 0 : index
    %c1_21 = arith.constant 1 : index
    %c0_22 = arith.constant 0 : index
    %c0_23 = arith.constant 0 : index
    %20 = vector.load %arg1[%c0_20, %c1_21, %c0_22, %c0_23] : memref<1x10x10x128xbf16, #tpu.memory_space<vmem>>, vector<1x8x8x128xbf16>
    %21 = vector.shape_cast %20 : vector<1x8x8x128xbf16> to vector<8x8x128xbf16>
    %22 = vector.shape_cast %21 : vector<8x8x128xbf16> to vector<64x128xbf16>
    %c3 = arith.constant 3 : index
    %c0_24 = arith.constant 0 : index
    %c0_25 = arith.constant 0 : index
    %23 = vector.load %arg2[%c3, %c0_24, %c0_25] : memref<9x128x128xbf16, #tpu.memory_space<vmem>>, vector<1x128x128xbf16>
    %24 = vector.shape_cast %23 : vector<1x128x128xbf16> to vector<128x128xbf16>
    %cst_26 = arith.constant dense<0.000000e+00> : vector<64x128xf32>
    %25 = tpu.matmul %22, %24, %cst_26 {dimension_numbers = #tpu.dot_dimension_numbers<[1], [0], [0], [1], [0, 0, 1, 1], [], []>} : vector<64x128xbf16>, vector<128x128xbf16>, vector<64x128xf32> -> vector<64x128xf32>
    %26 = arith.addf %19, %25 : vector<64x128xf32>
    %c0_27 = arith.constant 0 : index
    %c1_28 = arith.constant 1 : index
    %c1_29 = arith.constant 1 : index
    %c0_30 = arith.constant 0 : index
    %27 = vector.load %arg1[%c0_27, %c1_28, %c1_29, %c0_30] : memref<1x10x10x128xbf16, #tpu.memory_space<vmem>>, vector<1x8x8x128xbf16>
    %28 = vector.shape_cast %27 : vector<1x8x8x128xbf16> to vector<8x8x128xbf16>
    %29 = vector.shape_cast %28 : vector<8x8x128xbf16> to vector<64x128xbf16>
    %c4 = arith.constant 4 : index
    %c0_31 = arith.constant 0 : index
    %c0_32 = arith.constant 0 : index
    %30 = vector.load %arg2[%c4, %c0_31, %c0_32] : memref<9x128x128xbf16, #tpu.memory_space<vmem>>, vector<1x128x128xbf16>
    %31 = vector.shape_cast %30 : vector<1x128x128xbf16> to vector<128x128xbf16>
    %cst_33 = arith.constant dense<0.000000e+00> : vector<64x128xf32>
    %32 = tpu.matmul %29, %31, %cst_33 {dimension_numbers = #tpu.dot_dimension_numbers<[1], [0], [0], [1], [0, 0, 1, 1], [], []>} : vector<64x128xbf16>, vector<128x128xbf16>, vector<64x128xf32> -> vector<64x128xf32>
    %33 = arith.addf %26, %32 : vector<64x128xf32>
    %c0_34 = arith.constant 0 : index
    %c1_35 = arith.constant 1 : index
    %c2_36 = arith.constant 2 : index
    %c0_37 = arith.constant 0 : index
    %34 = vector.load %arg1[%c0_34, %c1_35, %c2_36, %c0_37] : memref<1x10x10x128xbf16, #tpu.memory_space<vmem>>, vector<1x8x8x128xbf16>
    %35 = vector.shape_cast %34 : vector<1x8x8x128xbf16> to vector<8x8x128xbf16>
    %36 = vector.shape_cast %35 : vector<8x8x128xbf16> to vector<64x128xbf16>
    %c5 = arith.constant 5 : index
    %c0_38 = arith.constant 0 : index
    %c0_39 = arith.constant 0 : index
    %37 = vector.load %arg2[%c5, %c0_38, %c0_39] : memref<9x128x128xbf16, #tpu.memory_space<vmem>>, vector<1x128x128xbf16>
    %38 = vector.shape_cast %37 : vector<1x128x128xbf16> to vector<128x128xbf16>
    %cst_40 = arith.constant dense<0.000000e+00> : vector<64x128xf32>
    %39 = tpu.matmul %36, %38, %cst_40 {dimension_numbers = #tpu.dot_dimension_numbers<[1], [0], [0], [1], [0, 0, 1, 1], [], []>} : vector<64x128xbf16>, vector<128x128xbf16>, vector<64x128xf32> -> vector<64x128xf32>
    %40 = arith.addf %33, %39 : vector<64x128xf32>
    %c0_41 = arith.constant 0 : index
    %c2_42 = arith.constant 2 : index
    %c0_43 = arith.constant 0 : index
    %c0_44 = arith.constant 0 : index
    %41 = vector.load %arg1[%c0_41, %c2_42, %c0_43, %c0_44] : memref<1x10x10x128xbf16, #tpu.memory_space<vmem>>, vector<1x8x8x128xbf16>
    %42 = vector.shape_cast %41 : vector<1x8x8x128xbf16> to vector<8x8x128xbf16>
    %43 = vector.shape_cast %42 : vector<8x8x128xbf16> to vector<64x128xbf16>
    %c6 = arith.constant 6 : index
    %c0_45 = arith.constant 0 : index
    %c0_46 = arith.constant 0 : index
    %44 = vector.load %arg2[%c6, %c0_45, %c0_46] : memref<9x128x128xbf16, #tpu.memory_space<vmem>>, vector<1x128x128xbf16>
    %45 = vector.shape_cast %44 : vector<1x128x128xbf16> to vector<128x128xbf16>
    %cst_47 = arith.constant dense<0.000000e+00> : vector<64x128xf32>
    %46 = tpu.matmul %43, %45, %cst_47 {dimension_numbers = #tpu.dot_dimension_numbers<[1], [0], [0], [1], [0, 0, 1, 1], [], []>} : vector<64x128xbf16>, vector<128x128xbf16>, vector<64x128xf32> -> vector<64x128xf32>
    %47 = arith.addf %40, %46 : vector<64x128xf32>
    %c0_48 = arith.constant 0 : index
    %c2_49 = arith.constant 2 : index
    %c1_50 = arith.constant 1 : index
    %c0_51 = arith.constant 0 : index
    %48 = vector.load %arg1[%c0_48, %c2_49, %c1_50, %c0_51] : memref<1x10x10x128xbf16, #tpu.memory_space<vmem>>, vector<1x8x8x128xbf16>
    %49 = vector.shape_cast %48 : vector<1x8x8x128xbf16> to vector<8x8x128xbf16>
    %50 = vector.shape_cast %49 : vector<8x8x128xbf16> to vector<64x128xbf16>
    %c7 = arith.constant 7 : index
    %c0_52 = arith.constant 0 : index
    %c0_53 = arith.constant 0 : index
    %51 = vector.load %arg2[%c7, %c0_52, %c0_53] : memref<9x128x128xbf16, #tpu.memory_space<vmem>>, vector<1x128x128xbf16>
    %52 = vector.shape_cast %51 : vector<1x128x128xbf16> to vector<128x128xbf16>
    %cst_54 = arith.constant dense<0.000000e+00> : vector<64x128xf32>
    %53 = tpu.matmul %50, %52, %cst_54 {dimension_numbers = #tpu.dot_dimension_numbers<[1], [0], [0], [1], [0, 0, 1, 1], [], []>} : vector<64x128xbf16>, vector<128x128xbf16>, vector<64x128xf32> -> vector<64x128xf32>
    %54 = arith.addf %47, %53 : vector<64x128xf32>
    %c0_55 = arith.constant 0 : index
    %c2_56 = arith.constant 2 : index
    %c2_57 = arith.constant 2 : index
    %c0_58 = arith.constant 0 : index
    %55 = vector.load %arg1[%c0_55, %c2_56, %c2_57, %c0_58] : memref<1x10x10x128xbf16, #tpu.memory_space<vmem>>, vector<1x8x8x128xbf16>
    %56 = vector.shape_cast %55 : vector<1x8x8x128xbf16> to vector<8x8x128xbf16>
    %57 = vector.shape_cast %56 : vector<8x8x128xbf16> to vector<64x128xbf16>
    %c8 = arith.constant 8 : index
    %c0_59 = arith.constant 0 : index
    %c0_60 = arith.constant 0 : index
    %58 = vector.load %arg2[%c8, %c0_59, %c0_60] : memref<9x128x128xbf16, #tpu.memory_space<vmem>>, vector<1x128x128xbf16>
    %59 = vector.shape_cast %58 : vector<1x128x128xbf16> to vector<128x128xbf16>
    %cst_61 = arith.constant dense<0.000000e+00> : vector<64x128xf32>
    %60 = tpu.matmul %57, %59, %cst_61 {dimension_numbers = #tpu.dot_dimension_numbers<[1], [0], [0], [1], [0, 0, 1, 1], [], []>} : vector<64x128xbf16>, vector<128x128xbf16>, vector<64x128xf32> -> vector<64x128xf32>
    %61 = arith.addf %54, %60 : vector<64x128xf32>
    %c0_62 = arith.constant 0 : index
    %c0_63 = arith.constant 0 : index
    %62 = vector.load %arg3[%c0_62, %c0_63] : memref<1x128xf32, #tpu.memory_space<vmem>>, vector<1x128xf32>
    %63 = vector.broadcast %62 : vector<1x128xf32> to vector<64x128xf32>
    %64 = arith.mulf %61, %63 : vector<64x128xf32>
    %c0_64 = arith.constant 0 : index
    %c0_65 = arith.constant 0 : index
    %65 = vector.load %arg4[%c0_64, %c0_65] : memref<1x128xf32, #tpu.memory_space<vmem>>, vector<1x128xf32>
    %66 = vector.broadcast %65 : vector<1x128xf32> to vector<64x128xf32>
    %67 = arith.addf %64, %66 : vector<64x128xf32>
    %c0_66 = arith.constant 0 : index
    %c0_67 = arith.constant 0 : index
    %c0_68 = arith.constant 0 : index
    %68 = vector.load %arg5[%c0_66, %c0_67, %c0_68] : memref<1x64x128xf32, #tpu.memory_space<vmem>>, vector<1x64x128xf32>
    %69 = vector.shape_cast %68 : vector<1x64x128xf32> to vector<64x128xf32>
    %70 = arith.addf %67, %69 : vector<64x128xf32>
    %cst_69 = arith.constant 0.000000e+00 : f32
    %71 = vector.broadcast %cst_69 : f32 to vector<64x128xf32>
    %72 = arith.maximumf %70, %71 : vector<64x128xf32>
    %73 = vector.shape_cast %72 : vector<64x128xf32> to vector<1x64x128xf32>
    %c0_70 = arith.constant 0 : index
    %c0_71 = arith.constant 0 : index
    %c0_72 = arith.constant 0 : index
    %74 = vector.load %arg6[%c0_70, %c0_71, %c0_72] : memref<1x64x128xf32, #tpu.memory_space<vmem>>, vector<1x64x128xf32>
    tpu.vector_store %arg6[%c0_70, %c0_71, %c0_72], %73 {strides = array<i32>} : memref<1x64x128xf32, #tpu.memory_space<vmem>>, vector<1x64x128xf32>,
    return
  }
  func.func @transform_0(%arg0: i32) -> (i32, i32, i32, i32) {
    %c0_i32 = arith.constant 0 : i32
    %c0_i32_0 = arith.constant 0 : i32
    %c0_i32_1 = arith.constant 0 : i32
    %c0_i32_2 = arith.constant 0 : i32
    return %arg0, %c0_i32, %c0_i32_0, %c0_i32_1 : i32, i32, i32, i32
  }
  func.func @transform_1(%arg0: i32) -> (i32, i32, i32) {
    %c0_i32 = arith.constant 0 : i32
    %c0_i32_0 = arith.constant 0 : i32
    %c0_i32_1 = arith.constant 0 : i32
    %c0_i32_2 = arith.constant 0 : i32
    return %c0_i32, %c0_i32_0, %c0_i32_1 : i32, i32, i32
  }
  func.func @transform_2(%arg0: i32) -> (i32, i32) {
    %c0_i32 = arith.constant 0 : i32
    %c0_i32_0 = arith.constant 0 : i32
    %c0_i32_1 = arith.constant 0 : i32
    return %c0_i32, %c0_i32_0 : i32, i32
  }
  func.func @transform_3(%arg0: i32) -> (i32, i32) {
    %c0_i32 = arith.constant 0 : i32
    %c0_i32_0 = arith.constant 0 : i32
    %c0_i32_1 = arith.constant 0 : i32
    return %c0_i32, %c0_i32_0 : i32, i32
  }
  func.func @transform_4(%arg0: i32) -> (i32, i32, i32) {
    %c0_i32 = arith.constant 0 : i32
    %c0_i32_0 = arith.constant 0 : i32
    %c0_i32_1 = arith.constant 0 : i32
    return %arg0, %c0_i32, %c0_i32_0 : i32, i32, i32
  }
  func.func @transform_5(%arg0: i32) -> (i32, i32, i32) {
    %c0_i32 = arith.constant 0 : i32
    %c0_i32_0 = arith.constant 0 : i32
    %c0_i32_1 = arith.constant 0 : i32
    return %arg0, %c0_i32, %c0_i32_0 : i32, i32, i32
  }
}

</mosaic_0001>

<bundles_post_ra>
// kernel: residual_block_forward.2
= control target key start
LH: loop header
LB: loop body
LE: loop exit
PB: predicated region body
PF: predicated region fallthrough
CT: control target
= control target key end

     0   :  { %s2164_s27 = smov 0   ;;  %s2625_s0 = inlined_call_operand.vmem [shape: bf16[8,9,9,4], index: 0, kind: input, shape index: {}]   ;;  %s2626_s1 = inlined_call_operand.vmem [shape: bf16[9,4,128], index: 1, kind: input, shape index: {}]   ;;  %s2627_s2 = inlined_call_operand.vmem [shape: f32[1,128], index: 2, kind: input, shape index: {}]   ;;  %s2628_s3 = inlined_call_operand.vmem [shape: f32[1,128], index: 3, kind: input, shape index: {}]   ;;  %s2629_s4 = inlined_call_operand.vmem [shape: bf16[4,128], index: 4, kind: input, shape index: {}]   ;;  %s2630_s5 = inlined_call_operand.vmem [shape: f32[1,128], index: 5, kind: input, shape index: {}]   ;;  %s2631_s6 = inlined_call_operand.vmem [shape: f32[1,128], index: 6, kind: input, shape index: {}]   ;;  %s2632_s7 = inlined_call_operand.vmem [shape: bf16[2,10,10,128], index: 7, kind: output, shape index: {0}]   ;;  %s2633_s8 = inlined_call_operand.vmem [shape: f32[2,64,128], index: 8, kind: output, shape index: {1}]  }
   0x1 LB: > { %s2170_s28 = sadd.s32 4294967295, %s2116_s27   ;;  %p1784_p0 = scmp.ge.s32.totalorder %s2116_s27, 1  ;;  %s2116_s27 = sphi %s2164_s27, %s19_s27  }
   0x2   : > { %p267_p1 = scmp.lt.s32.totalorder %s2116_s27, 3 }
   0x4   : > { %p268_p2 = pnand %p1784_p0, %p267_p1 }
   0x5   : > { %s1785_s11 = sshll.u32 (!%p268_p2), %s2170_s28, 2  ;;  %p314_p4 = scmp.lt.s32.totalorder (!%p268_p2), %s2170_s28, 1 }
   0x6   : > { %271 = sbr.rel (%p268_p2) target bundleno = 327 (0x147), region = 48  ;;  %p308_p3 = scmp.lt.s32.totalorder (!%p268_p2), %s1785_s11, 7 }
   0xb   : > { %v1798_v0 = vld [vmem:[%s2626_s1 + $0x2] sm:$0x3]  ;;  %vm378_vm0 = vcmask 1041408   ;;  %v333_v1 = vld [vmem:[%s2626_s1] sm:$0x3]  ;;  %s2641_s11 = smov (!%p308_p3, %s1785_s11), 7 }
   0xc   : > { %v380_v2 = vsel %vm378_vm0, %v1798_v0, 0  ;;  %v444_v3 = vsel %vm378_vm0, %v333_v1, 0  ;;  %v1839_v4 = vld [vmem:[%s2626_s1 + $0x4] sm:$0x3]  ;;  %v1852_v6 = vld [vmem:[%s2626_s1 + $0x6] sm:$0x3] }
   0xd   : > { %2093 = vmatpush.bf16.msra.mxu2 %v380_v2  ;;  %2094 = vmatpush.bf16.msra.mxu3 %v444_v3  ;;  %v633_v5 = vsel %vm378_vm0, %v1839_v4, 0  ;;  %v1881_v7 = vld [vmem:[%s2626_s1 + $0x8] sm:$0x3]  ;;  %v716_v8 = vsel %vm378_vm0, %v1852_v6, 0  ;;  %v1918_v10 = vld [vmem:[%s2626_s1 + $0xa] sm:$0x3] }
   0xe   : > { %389 = vmatpush.bf16.msra.mxu0 %v380_v2  ;;  %453 = vmatpush.bf16.msra.mxu1 %v444_v3  ;;  %v799_v9 = vsel %vm378_vm0, %v1881_v7, 0  ;;  %v993_v11 = vsel %vm378_vm0, %v1918_v10, 0  ;;  %s2095_s20 = smul.u32 72, %s2641_s11  ;;  %vm365_vm1 = vcmask 31744   ;;  %vm491_vm2 = vsmask.f32 3328 }
   0xf   : > { %v1931_v31 = vld [vmem:[%s2626_s1 + $0xc] sm:$0x3]  ;;  %v1960_v44 = vld [vmem:[%s2626_s1 + $0xe] sm:$0x3]  ;;  %v1997_v46 = vld [vmem:[%s2626_s1 + $0x10] sm:$0x3] }
  0x10   : > { %s2202_s23 = scalar_lea.vmem %s2625_s0, %s2095_s20  ;;  %v1076_v43 = vsel %vm378_vm0, %v1931_v31, 0  ;;  %v1159_v45 = vsel %vm378_vm0, %v1960_v44, 0  ;;  %v1353_v50 = vsel %vm378_vm0, %v1997_v46, 0  ;;  %vm492_vm3 = vsmask.f32 7440  ;;  %s2643_s28 = smov (!%p314_p4, %s2170_s28), 1 }
  0x11   : > { %642 = vmatpush.bf16.msrb.mxu2 %v633_v5  ;;  %725 = vmatpush.bf16.msrb.mxu3 %v716_v8  ;;  %v1809_v12 = vld [vmem:[%s2202_s23 + $0x68] sm:$0xf]  ;;  %v2071_v13 = vld [vmem:[%s2202_s23 + $0x6c] sm:$0xf0]  ;;  %v1829_v14 = vld [vmem:[%s2202_s23 + $0x20] sm:$0xf] }
  0x12   : > { %808 = vmatpush.bf16.msrb.mxu0 %v799_v9  ;;  %1002 = vmatpush.bf16.msrb.mxu1 %v993_v11  ;;  %v1810_v15 = vor.u32 %v2071_v13, %v1809_v12  ;;  %v2067_v16 = vld [vmem:[%s2202_s23 + $0x24] sm:$0xf0]  ;;  %v2069_v18 = vld [vmem:[%s2202_s23 + $0x4c] sm:$0xf0]  ;;  %v1821_v21 = vld [vmem:[%s2202_s23] sm:$0xf] }
  0x13   : > { %v1801_v17 = vld [vmem:[%s2202_s23 + $0x48] sm:$0xf]  ;;  %v1830_v19 = vor.u32 %v2067_v16, %v1829_v14  ;;  %v475_v24 = vld [vmem:[%s2202_s23] sm:$0xf]  ;;  %v476_v30 = vld [vmem:[%s2202_s23 + $0x4] sm:$0x1] }
  0x14   : > { %v1802_v20 = vor.u32 %v2069_v18, %v1801_v17  ;;  %v2065_v22 = vld [vmem:[%s2202_s23 + $0x4] sm:$0xf0]  ;;  %1817 = vmatmul.msk.bf16.vlgmr.msra.gmra.mxu2 %vm365_vm1, %v1810_v15  ;;  %v495_v26 = vshrl.u32 %v475_v24, 16  ;;  %v498_v27 = vshll.u32 %v475_v24, 16  ;;  %v1813_v32 = vld [vmem:[%s2202_s23 + $0x78] sm:$0xf]  ;;  %vm2246_vm4 = vmor %vm491_vm2, %vm492_vm3 }
  0x15   : > { %v1822_v23 = vor.u32 %v2065_v22, %v1821_v21  ;;  %1837 = vmatmul.msk.bf16.vlgmr.msra.gmra.mxu3 %vm365_vm1, %v1830_v19  ;;  %v477_v25 = vld [vmem:[%s2202_s23 + $0x8] sm:$0xf]  ;;  %v2072_v33 = vld [vmem:[%s2202_s23 + $0x7c] sm:$0xf0]  ;;  %v478_v34 = vld [vmem:[%s2202_s23 + $0xc] sm:$0x1]  ;;  %1085 = vmatpush.bf16.msra.mxu2 %v1076_v43 }
  0x16   : > { %1815 = vmatmul.msk.bf16.vlgmr.msra.gmra.mxu0 %vm365_vm1, %v1802_v20  ;;  %v509_v28 = vshrl.u32 %v477_v25, 16  ;;  %v512_v29 = vshll.u32 %v477_v25, 16  ;;  %v497_v35 = vrot.slane %v495_v26, 4  ;;  %v500_v36 = vrot.slane %v498_v27, 5  ;;  %v1833_v39 = vld [vmem:[%s2202_s23 + $0x30] sm:$0xf]  ;;  %1168 = vmatpush.bf16.msra.mxu3 %v1159_v45 }
  0x17   : > { %1835 = vmatmul.msk.bf16.vlgmr.msra.gmra.mxu1 %vm365_vm1, %v1822_v23  ;;  %v2068_v40 = vld [vmem:[%s2202_s23 + $0x34] sm:$0xf0]  ;;  %v2070_v42 = vld [vmem:[%s2202_s23 + $0x5c] sm:$0xf0]  ;;  %v1902_v47 = vld [vmem:[%s2202_s23 + $0x90] sm:$0xf]  ;;  %1362 = vmatpush.bf16.msra.mxu0 %v1353_v50  ;;  %v1814_v58 = vor.u32 %v2072_v33, %v1813_v32 }
  0x18   : > { %v511_v37 = vrot.slane %v509_v28, 4  ;;  %v514_v38 = vrot.slane %v512_v29, 5  ;;  %v1805_v41 = vld [vmem:[%s2202_s23 + $0x58] sm:$0xf]  ;;  %v504_v48 = vshll.u32 %v476_v30, 16  ;;  %v518_v49 = vshll.u32 %v478_v34, 16 }
  0x19   : > { %v1904_v51 = vld [vmem:[%s2202_s23 + $0x98] sm:$0xf]  ;;  %v1825_v52 = vld [vmem:[%s2202_s23 + $0x10] sm:$0xf]  ;;  %v501_v54 = vor.u32 %v500_v36, %v497_v35  ;;  %v855_v56 = vshrl.u32 %v1902_v47, 16  ;;  %v858_v57 = vshll.u32 %v1902_v47, 16  ;;  %v1834_v62 = vor.u32 %v2068_v40, %v1833_v39 }
  0x1a   : > { %v2066_v53 = vld [vmem:[%s2202_s23 + $0x14] sm:$0xf0]  ;;  %v515_v55 = vor.u32 %v514_v38, %v511_v37  ;;  %v1903_v59 = vld [vmem:[%s2202_s23 + $0x94] sm:$0x1]  ;;  %v869_v60 = vshrl.u32 %v1904_v51, 16  ;;  %v872_v61 = vshll.u32 %v1904_v51, 16  ;;  %v1806_v63 = vor.u32 %v2070_v42, %v1805_v41 }
  0x1b   : > { %v1905_v0 = vld [vmem:[%s2202_s23 + $0x9c] sm:$0x1]  ;;  %v857_v1 = vrot.slane %v855_v56, 4  ;;  %v860_v2 = vrot.slane %v858_v57, 5  ;;  %v1826_v3 = vor.u32 %v2066_v53, %v1825_v52  ;;  %v506_v4 = vrot.slane %v504_v48, 5  ;;  %s2096_s12 = smul.u32 80, %s2643_s28 }
  0x1c   : > { %v871_v5 = vrot.slane %v869_v60, 4  ;;  %v874_v6 = vrot.slane %v872_v61, 5  ;;  %v502_v7 = vrot.slane %v501_v54, 4  ;;  %v516_v8 = vrot.slane %v515_v55, 4  ;;  %v479_v15 = vld [vmem:[%s2202_s23 + $0x10] sm:$0xf] }
  0x1d   : > { %v520_v9 = vrot.slane %v518_v49, 5  ;;  %v864_v10 = vshll.u32 %v1903_v59, 16  ;;  %v861_v12 = vor.u32 %v860_v2, %v857_v1  ;;  %v878_v14 = vshll.u32 %v1905_v0, 16  ;;  %v481_v16 = vld [vmem:[%s2202_s23 + $0x18] sm:$0xf]  ;;  %s2446_s15 = scalar_lea.vmem %s2632_s7, %s2096_s12  ;;  %s2064_s18 = sshll.u32 %s2643_s28, 6 }
  0x1e   : > { %v875_v13 = vor.u32 %v874_v6, %v871_v5  ;;  %v507_v17 = vsel %vm2246_vm4, %v502_v7, %v506_v4  ;;  %v1595_v20 = vld [vmem:[%s2629_s4] sm:$0x3]  ;;  %v523_v25 = vshrl.u32 %v479_v15, 16  ;;  %v1908_v26 = vld [vmem:[%s2202_s23 + $0xa8] sm:$0xf]  ;;  %v526_v27 = vshll.u32 %v479_v15, 16 }
  0x1f   : > { %v521_v18 = vsel %vm2246_vm4, %v516_v8, %v520_v9  ;;  %v866_v19 = vrot.slane %v864_v10, 5  ;;  %v1906_v21 = vld [vmem:[%s2202_s23 + $0xa0] sm:$0xf]  ;;  %v862_v22 = vrot.slane %v861_v12, 4  ;;  %v880_v24 = vrot.slane %v878_v14, 5 }
  0x20   : > { %v876_v23 = vrot.slane %v875_v13, 4  ;;  %v537_v28 = vshrl.u32 %v481_v16, 16  ;;  %v540_v29 = vshll.u32 %v481_v16, 16  ;;  %v1629_v30 = vsel %vm378_vm0, %v1595_v20, 0  ;;  %v1855_v34 = vld [vmem:[%s2202_s23 + $0x90] sm:$0xf] }
  0x21   : > { %1638 = vmatpush.bf16.msra.mxu1 %v1629_v30  ;;  %v883_v31 = vshrl.u32 %v1906_v21, 16  ;;  %v886_v32 = vshll.u32 %v1906_v21, 16  ;;  %v897_v33 = vshrl.u32 %v1908_v26, 16  ;;  %v900_v35 = vshll.u32 %v1908_v26, 16  ;;  %v2073_v38 = vld [vmem:[%s2202_s23 + $0x94] sm:$0xf0] }
  0x22   : > { %v608_v36 = vunpack.c.l.b16 %v507_v17  ;;  %v609_v37 = vunpack.c.l.b16 %v521_v18  ;;  %v1884_v39 = vld [vmem:[%s2202_s23 + $0xd8] sm:$0xf]  ;;  %v2077_v40 = vld [vmem:[%s2202_s23 + $0xdc] sm:$0xf0]  ;;  %v867_v41 = vsel %vm2246_vm4, %v862_v22, %v866_v19  ;;  %v881_v42 = vsel %vm2246_vm4, %v876_v23, %v880_v24  ;;  %v480_v43 = vld [vmem:[%s2202_s23 + $0x14] sm:$0x1] }
  0x23   : > { %v525_v44 = vrot.slane %v523_v25, 4  ;;  %v528_v45 = vrot.slane %v526_v27, 5  ;;  %v539_v46 = vrot.slane %v537_v28, 4  ;;  %v542_v47 = vrot.slane %v540_v29, 5  ;;  %v482_v48 = vld [vmem:[%s2202_s23 + $0x1c] sm:$0x1] }
  0x24   : > { %1818 = vmatmul.msk.bf16.gmra.mxu2 %vm365_vm1, %v1814_v58  ;;  %v885_v49 = vrot.slane %v883_v31, 4  ;;  %v888_v50 = vrot.slane %v886_v32, 5  ;;  %v899_v51 = vrot.slane %v897_v33, 4  ;;  %v902_v52 = vrot.slane %v900_v35, 5  ;;  %v1907_v55 = vld [vmem:[%s2202_s23 + $0xa4] sm:$0x1] }
  0x25   : > { %1838 = vmatmul.msk.bf16.gmra.mxu3 %vm365_vm1, %v1834_v62  ;;  %v968_v53 = vunpack.c.l.b16 %v867_v41  ;;  %v969_v54 = vunpack.c.l.b16 %v881_v42  ;;  %v1909_v56 = vld [vmem:[%s2202_s23 + $0xac] sm:$0x1]  ;;  %v616_v57 = vpack.c.b16 %v609_v37, %v608_v36  ;;  %v1856_v58 = vor.u32 %v2073_v38, %v1855_v34  ;;  %v483_v5 = vld [vmem:[%s2202_s23 + $0x20] sm:$0xf]  ;;  %v485_v10 = vld [vmem:[%s2202_s23 + $0x28] sm:$0xf] }
  0x26   : > { %1816 = vmatmul.msk.bf16.gmra.mxu0 %vm365_vm1, %v1806_v63  ;;  %v1885_v59 = vor.u32 %v2077_v40, %v1884_v39  ;;  %v529_v60 = vor.u32 %v528_v45, %v525_v44  ;;  %v532_v61 = vshll.u32 %v480_v43, 16  ;;  %v543_v62 = vor.u32 %v542_v47, %v539_v46  ;;  %v1910_v20 = vld [vmem:[%s2202_s23 + $0xb0] sm:$0xf]  ;;  %v1912_v21 = vld [vmem:[%s2202_s23 + $0xb8] sm:$0xf] }
  0x27   : > { %1836 = vmatmul.msk.bf16.gmra.mxu1 %vm365_vm1, %v1826_v3  ;;  %v546_v63 = vshll.u32 %v482_v48, 16  ;;  %v889_v0 = vor.u32 %v888_v50, %v885_v49  ;;  %v892_v1 = vshll.u32 %v1907_v55, 16  ;;  %v903_v2 = vor.u32 %v902_v52, %v899_v51  ;;  %v484_v36 = vld [vmem:[%s2202_s23 + $0x24] sm:$0x1]  ;;  %v486_v37 = vld [vmem:[%s2202_s23 + $0x2c] sm:$0x1] }
  0x28   : > { %v906_v3 = vshll.u32 %v1909_v56, 16  ;;  %v976_v4 = vpack.c.b16 %v969_v54, %v968_v53  ;;  %v530_v6 = vrot.slane %v529_v60, 4  ;;  %v534_v7 = vrot.slane %v532_v61, 5  ;;  %v1859_v38 = vld [vmem:[%s2202_s23 + $0xa0] sm:$0xf] }
  0x29   : > { %v544_v8 = vrot.slane %v543_v62, 4  ;;  %v548_v9 = vrot.slane %v546_v63, 5  ;;  %v890_v12 = vrot.slane %v889_v0, 4  ;;  %v894_v13 = vrot.slane %v892_v1, 5  ;;  %v2074_v39 = vld [vmem:[%s2202_s23 + $0xa4] sm:$0xf0] }
  0x2a   : > { %v904_v14 = vrot.slane %v903_v2, 4  ;;  %v908_v15 = vrot.slane %v906_v3, 5  ;;  %v551_v16 = vshrl.u32 %v483_v5, 16  ;;  %v554_v17 = vshll.u32 %v483_v5, 16  ;;  %v1888_v40 = vld [vmem:[%s2202_s23 + $0xe8] sm:$0xf] }
  0x2b   : > { %v565_v18 = vshrl.u32 %v485_v10, 16  ;;  %v568_v19 = vshll.u32 %v485_v10, 16  ;;  %v535_v22 = vsel %vm2246_vm4, %v530_v6, %v534_v7  ;;  %v549_v23 = vsel %vm2246_vm4, %v544_v8, %v548_v9  ;;  %v2078_v43 = vld [vmem:[%s2202_s23 + $0xec] sm:$0xf0]  ;;  %v1911_v52 = vld [vmem:[%s2202_s23 + $0xb4] sm:$0x1] }
  0x2c   : > { %v895_v24 = vsel %vm2246_vm4, %v890_v12, %v894_v13  ;;  %v909_v25 = vsel %vm2246_vm4, %v904_v14, %v908_v15  ;;  %v911_v26 = vshrl.u32 %v1910_v20, 16  ;;  %v914_v27 = vshll.u32 %v1910_v20, 16  ;;  %v1913_v53 = vld [vmem:[%s2202_s23 + $0xbc] sm:$0x1]  ;;  %v487_v2 = vld [vmem:[%s2202_s23 + $0x30] sm:$0xf] }
  0x2d   : > { %v925_v28 = vshrl.u32 %v1912_v21, 16  ;;  %v928_v29 = vshll.u32 %v1912_v21, 16  ;;  %v553_v30 = vrot.slane %v551_v16, 4  ;;  %v556_v31 = vrot.slane %v554_v17, 5  ;;  %v489_v3 = vld [vmem:[%s2202_s23 + $0x38] sm:$0xf] }
  0x2e   : > { %v567_v32 = vrot.slane %v565_v18, 4  ;;  %v570_v33 = vrot.slane %v568_v19, 5  ;;  %v610_v34 = vunpack.c.l.b16 %v535_v22  ;;  %v611_v35 = vunpack.c.l.b16 %v549_v23  ;;  %v1914_v15 = vld [vmem:[%s2202_s23 + $0xc0] sm:$0xf]  ;;  %v1916_v16 = vld [vmem:[%s2202_s23 + $0xc8] sm:$0xf] }
  0x2f   : > { %v970_v41 = vunpack.c.l.b16 %v895_v24  ;;  %v971_v42 = vunpack.c.l.b16 %v909_v25  ;;  %v913_v44 = vrot.slane %v911_v26, 4  ;;  %v916_v45 = vrot.slane %v914_v27, 5  ;;  %v488_v21 = vld [vmem:[%s2202_s23 + $0x34] sm:$0x1] }
  0x30   : > { %v927_v46 = vrot.slane %v925_v28, 4  ;;  %v930_v47 = vrot.slane %v928_v29, 5  ;;  %v557_v48 = vor.u32 %v556_v31, %v553_v30  ;;  %v560_v49 = vshll.u32 %v484_v36, 16  ;;  %v1863_v30 = vld [vmem:[%s2202_s23 + $0xb0] sm:$0xf] }
  0x31   : > { %v571_v50 = vor.u32 %v570_v33, %v567_v32  ;;  %v574_v51 = vshll.u32 %v486_v37, 16  ;;  %v617_v54 = vpack.c.b16 %v611_v35, %v610_v34  ;;  %v1860_v55 = vor.u32 %v2074_v39, %v1859_v38  ;;  %v2075_v31 = vld [vmem:[%s2202_s23 + $0xb4] sm:$0xf0]  ;;  %v490_v32 = vld [vmem:[%s2202_s23 + $0x3c] sm:$0x1] }
  0x32   : > { %v1889_v56 = vor.u32 %v2078_v43, %v1888_v40  ;;  %v931_v60 = vor.u32 %v930_v47, %v927_v46  ;;  %v934_v61 = vshll.u32 %v1913_v53, 16  ;;  %v558_v62 = vrot.slane %v557_v48, 4  ;;  %v1892_v33 = vld [vmem:[%s2202_s23 + $0xf8] sm:$0xf]  ;;  %v2079_v34 = vld [vmem:[%s2202_s23 + $0xfc] sm:$0xf0] }
  0x33   : > { %v562_v63 = vrot.slane %v560_v49, 5  ;;  %v572_v0 = vrot.slane %v571_v50, 4  ;;  %v576_v1 = vrot.slane %v574_v51, 5  ;;  %v579_v10 = vshrl.u32 %v487_v2, 16  ;;  %v1915_v46 = vld [vmem:[%s2202_s23 + $0xc4] sm:$0x1] }
  0x34   : > { %1840 = vmatmul.msk.bf16.vlgmr.msrb.gmra.mxu2 %vm365_vm1, %v616_v57  ;;  %v977_v57 = vpack.c.b16 %v971_v42, %v970_v41  ;;  %v932_v6 = vrot.slane %v931_v60, 4  ;;  %v936_v7 = vrot.slane %v934_v61, 5  ;;  %v582_v12 = vshll.u32 %v487_v2, 16  ;;  %v1917_v47 = vld [vmem:[%s2202_s23 + $0xcc] sm:$0x1] }
  0x35   : > { %1869 = vmatmul.msk.bf16.vlgmr.msrb.gmra.mxu3 %vm365_vm1, %v1856_v58  ;;  %v917_v58 = vor.u32 %v916_v45, %v913_v44  ;;  %v563_v8 = vsel %vm2246_vm4, %v558_v62, %v562_v63  ;;  %v577_v9 = vsel %vm2246_vm4, %v572_v0, %v576_v1  ;;  %v593_v13 = vshrl.u32 %v489_v3, 16  ;;  %v1983_v60 = vld [vmem:[%s2202_s23 + $0x10] sm:$0xf] }
  0x36   : > { %1898 = vmatmul.msk.bf16.vlgmr.msrb.gmra.mxu0 %vm365_vm1, %v1885_v59  ;;  %v920_v59 = vshll.u32 %v1911_v52, 16  ;;  %v596_v14 = vshll.u32 %v489_v3, 16  ;;  %v612_v17 = vunpack.c.l.b16 %v563_v8  ;;  %v613_v18 = vunpack.c.l.b16 %v577_v9 }
  0x37   : > { %1919 = vmatmul.msk.bf16.vlgmr.msrb.gmra.mxu1 %vm365_vm1, %v976_v4  ;;  %v918_v4 = vrot.slane %v917_v58, 4  ;;  %v937_v20 = vsel %vm2246_vm4, %v932_v6, %v936_v7  ;;  %v939_v22 = vshrl.u32 %v1914_v15, 16  ;;  %v942_v23 = vshll.u32 %v1914_v15, 16  ;;  %v2080_v15 = vld [vmem:[%s2202_s23 + $0x10c] sm:$0xf0] }
  0x38   : > { %v922_v5 = vrot.slane %v920_v59, 5  ;;  %v953_v24 = vshrl.u32 %v1916_v16, 16  ;;  %v956_v25 = vshll.u32 %v1916_v16, 16  ;;  %v581_v26 = vrot.slane %v579_v10, 4  ;;  %v1981_v59 = vld [vmem:[%s2202_s23 + $0x8] sm:$0xf] }
  0x39   : > { %v584_v27 = vrot.slane %v582_v12, 5  ;;  %v595_v28 = vrot.slane %v593_v13, 4  ;;  %v598_v29 = vrot.slane %v596_v14, 5  ;;  %v973_v36 = vunpack.c.l.b16 %v937_v20  ;;  %v1867_v12 = vld [vmem:[%s2202_s23 + $0xc0] sm:$0xf] }
  0x3a   : > { %v923_v19 = vsel %vm2246_vm4, %v918_v4, %v922_v5  ;;  %v588_v37 = vshll.u32 %v488_v21, 16  ;;  %v941_v38 = vrot.slane %v939_v22, 4  ;;  %v944_v39 = vrot.slane %v942_v23, 5  ;;  %v2076_v13 = vld [vmem:[%s2202_s23 + $0xc4] sm:$0xf0] }
  0x3b   : > { %v972_v35 = vunpack.c.l.b16 %v923_v19  ;;  %v955_v40 = vrot.slane %v953_v24, 4  ;;  %v958_v41 = vrot.slane %v956_v25, 5  ;;  %v618_v42 = vpack.c.b16 %v613_v18, %v612_v17  ;;  %v1896_v14 = vld [vmem:[%s2202_s23 + $0x108] sm:$0xf]  ;;  %v1982_v22 = vld [vmem:[%s2202_s23 + $0xc] sm:$0x1] }
  0x3c   : > { %v585_v43 = vor.u32 %v584_v27, %v581_v26  ;;  %v599_v44 = vor.u32 %v598_v29, %v595_v28  ;;  %v602_v45 = vshll.u32 %v490_v32, 16  ;;  %v1864_v48 = vor.u32 %v2075_v31, %v1863_v30  ;;  %v1984_v23 = vld [vmem:[%s2202_s23 + $0x14] sm:$0x1] }
  0x3d   : > { %v1893_v49 = vor.u32 %v2079_v34, %v1892_v33  ;;  %v978_v50 = vpack.c.b16 %v973_v36, %v972_v35  ;;  %v945_v51 = vor.u32 %v944_v39, %v941_v38  ;;  %v948_v52 = vshll.u32 %v1915_v46, 16  ;;  %v1985_v36 = vld [vmem:[%s2202_s23 + $0x18] sm:$0xf]  ;;  %v1963_v46 = vld [vmem:[%s2202_s23 + $0x50] sm:$0xf] }
  0x3e   : > { %v959_v53 = vor.u32 %v958_v41, %v955_v40  ;;  %v604_v58 = vrot.slane %v602_v45, 5  ;;  %v1215_v3 = vshrl.u32 %v1981_v59, 16  ;;  %v1218_v4 = vshll.u32 %v1981_v59, 16  ;;  %v2081_v45 = vld [vmem:[%s2202_s23 + $0xc] sm:$0xf0] }
  0x3f   : > { %v946_v61 = vrot.slane %v945_v51, 4  ;;  %v950_v62 = vrot.slane %v948_v52, 5  ;;  %v1229_v5 = vshrl.u32 %v1983_v60, 16  ;;  %v1232_v6 = vshll.u32 %v1983_v60, 16  ;;  %v2089_v51 = vld [vmem:[%s2202_s23 + $0xdc] sm:$0xf0] }
  0x40   : > { %v960_v63 = vrot.slane %v959_v53, 4  ;;  %v1217_v16 = vrot.slane %v1215_v3, 4  ;;  %v1220_v17 = vrot.slane %v1218_v4, 5  ;;  %v1868_v25 = vor.u32 %v2076_v13, %v1867_v12 }
  0x41   : > { %v951_v7 = vsel %vm2246_vm4, %v946_v61, %v950_v62  ;;  %v1231_v18 = vrot.slane %v1229_v5, 4  ;;  %v1234_v19 = vrot.slane %v1232_v6, 5  ;;  %v1897_v26 = vor.u32 %v2080_v15, %v1896_v14  ;;  %v1989_v6 = vld [vmem:[%s2202_s23 + $0x28] sm:$0xf]  ;;  %v1938_v15 = vld [vmem:[%s2202_s23 + $0x18] sm:$0xf] }
  0x42   : > { %v974_v20 = vunpack.c.l.b16 %v951_v7  ;;  %v1221_v27 = vor.u32 %v1220_v17, %v1217_v16  ;;  %v1224_v28 = vshll.u32 %v1982_v22, 16  ;;  %v1238_v30 = vshll.u32 %v1984_v23, 16  ;;  %v1991_v7 = vld [vmem:[%s2202_s23 + $0x30] sm:$0xf]  ;;  %v2082_v16 = vld [vmem:[%s2202_s23 + $0x1c] sm:$0xf0] }
  0x43   : > { %v1235_v29 = vor.u32 %v1234_v19, %v1231_v18  ;;  %v1243_v40 = vshrl.u32 %v1985_v36, 16  ;;  %v1246_v41 = vshll.u32 %v1985_v36, 16  ;;  %v1285_v13 = vshrl.u32 %v1991_v7, 16  ;;  %v1967_v17 = vld [vmem:[%s2202_s23 + $0x60] sm:$0xf] }
  0x44   : > { %1841 = vmatmul.msk.bf16.gmra.mxu2 %vm365_vm1, %v617_v54  ;;  %v962_v54 = vshll.u32 %v1917_v47, 16  ;;  %v1222_v32 = vrot.slane %v1221_v27, 4  ;;  %v1226_v33 = vrot.slane %v1224_v28, 5  ;;  %v1240_v35 = vrot.slane %v1238_v30, 5  ;;  %v2085_v47 = vld [vmem:[%s2202_s23 + $0x54] sm:$0xf0] }
  0x45   : > { %1870 = vmatmul.msk.bf16.gmra.mxu3 %vm365_vm1, %v1860_v55  ;;  %v586_v55 = vrot.slane %v585_v43, 4  ;;  %v1236_v34 = vrot.slane %v1235_v29, 4  ;;  %v1245_v52 = vrot.slane %v1243_v40, 4  ;;  %v1248_v53 = vrot.slane %v1246_v41, 5  ;;  %v2086_v22 = vld [vmem:[%s2202_s23 + $0x64] sm:$0xf0] }
  0x46   : > { %1899 = vmatmul.msk.bf16.gmra.mxu0 %vm365_vm1, %v1889_v56  ;;  %v590_v56 = vrot.slane %v588_v37, 5  ;;  %v964_v0 = vrot.slane %v962_v54, 5  ;;  %v1987_v37 = vld [vmem:[%s2202_s23 + $0x20] sm:$0xf]  ;;  %v1227_v38 = vsel %vm2246_vm4, %v1222_v32, %v1226_v33  ;;  %v1964_v59 = vor.u32 %v2085_v47, %v1963_v46  ;;  %v1990_v23 = vld [vmem:[%s2202_s23 + $0x2c] sm:$0x1] }
  0x47   : > { %1920 = vmatmul.msk.bf16.gmra.mxu1 %vm365_vm1, %v977_v57  ;;  %v600_v57 = vrot.slane %v599_v44, 4  ;;  %v1241_v39 = vsel %vm2246_vm4, %v1236_v34, %v1240_v35  ;;  %v1260_v43 = vshll.u32 %v1987_v37, 16  ;;  %v1934_v44 = vld [vmem:[%s2202_s23 + $0x8] sm:$0xf]  ;;  %v1249_v62 = vor.u32 %v1248_v53, %v1245_v52  ;;  %v2090_v27 = vld [vmem:[%s2202_s23 + $0xec] sm:$0xf0] }
  0x48   : > { %v591_v1 = vsel %vm2246_vm4, %v586_v55, %v590_v56  ;;  %v965_v8 = vsel %vm2246_vm4, %v960_v63, %v964_v0  ;;  %v1986_v56 = vld [vmem:[%s2202_s23 + $0x1c] sm:$0x1]  ;;  %v1288_v14 = vshll.u32 %v1991_v7, 16  ;;  %v1992_v28 = vld [vmem:[%s2202_s23 + $0x34] sm:$0x1]  ;;  %v1939_v29 = vor.u32 %v2082_v16, %v1938_v15 }
  0x49   : > { %v605_v2 = vsel %vm2246_vm4, %v600_v57, %v604_v58  ;;  %v614_v9 = vunpack.c.l.b16 %v591_v1  ;;  %v975_v21 = vunpack.c.l.b16 %v965_v8  ;;  %v1262_v55 = vrot.slane %v1260_v43, 5  ;;  %v1988_v57 = vld [vmem:[%s2202_s23 + $0x24] sm:$0x1]  ;;  %v1993_v41 = vld [vmem:[%s2202_s23 + $0x38] sm:$0xf] }
  0x4a   : > { %v615_v10 = vunpack.c.l.b16 %v605_v2  ;;  %v1935_v58 = vor.u32 %v2081_v45, %v1934_v44  ;;  %v1252_v63 = vshll.u32 %v1986_v56, 16  ;;  %v1266_v1 = vshll.u32 %v1988_v57, 16  ;;  %v2087_v56 = vld [vmem:[%s2202_s23 + $0x74] sm:$0xf0]  ;;  %v1994_v57 = vld [vmem:[%s2202_s23 + $0x3c] sm:$0x1] }
  0x4b   : > { %v979_v31 = vpack.c.b16 %v975_v21, %v974_v20  ;;  %v1250_v2 = vrot.slane %v1249_v62, 4  ;;  %v1271_v8 = vshrl.u32 %v1989_v6, 16  ;;  %v1968_v30 = vor.u32 %v2086_v22, %v1967_v17  ;;  %v1996_v62 = vld [vmem:[%s2202_s23 + $0x44] sm:$0x1] }
  0x4c   : > { %v619_v24 = vpack.c.b16 %v615_v10, %v614_v9  ;;  %v1254_v3 = vrot.slane %v1252_v63, 5  ;;  %v1268_v5 = vrot.slane %v1266_v1, 5  ;;  %v1274_v9 = vshll.u32 %v1989_v6, 16 }
  0x4d   : > { %v1273_v20 = vrot.slane %v1271_v8, 4  ;;  %v1280_v34 = vshll.u32 %v1990_v23, 16  ;;  %v1294_v36 = vshll.u32 %v1992_v28, 16  ;;  %v1299_v43 = vshrl.u32 %v1993_v41, 16  ;;  %v1946_v23 = vld [vmem:[%s2202_s23 + $0x38] sm:$0xf] }
  0x4e   : > { %v1255_v10 = vsel %vm2246_vm4, %v1250_v2, %v1254_v3  ;;  %v1276_v21 = vrot.slane %v1274_v9, 5  ;;  %v1302_v44 = vshll.u32 %v1993_v41, 16  ;;  %v1322_v7 = vshll.u32 %v1996_v62, 16  ;;  %v2088_v28 = vld [vmem:[%s2202_s23 + $0x84] sm:$0xf0] }
  0x4f   : > { %v1330_v18 = vunpack.c.l.b16 %v1255_v10  ;;  %v1296_v40 = vrot.slane %v1294_v36, 5  ;;  %vm1533_vm5 = vcmask 1043456   ;;  %vm1534_vm6 = vsmask.f32 7938 }
  0x50   : > { %v1277_v32 = vor.u32 %v1276_v21, %v1273_v20  ;;  %vm1539_vm7 = vcmask 1040384   ;;  %vm1540_vm8 = vsmask.f32 256  ;;  %vm2515_vm9 = vmand %vm1533_vm5, %vm1534_vm6 }
  0x51   : > { %vm2523_vm10 = vmand %vm1539_vm7, %vm1540_vm8 }
  0x54   : > { %1842 = vmatmul.msk.bf16.gmra.mxu2 %vm365_vm1, %v618_v42  ;;  %v1257_v42 = vshrl.u32 %v1987_v37, 16  ;;  %v1278_v37 = vrot.slane %v1277_v32, 4 }
  0x55   : > { %1871 = vmatmul.msk.bf16.gmra.mxu3 %vm365_vm1, %v1864_v48  ;;  %v1328_v48 = vunpack.c.l.b16 %v1227_v38  ;;  %v1282_v38 = vrot.slane %v1280_v34, 5 }
  0x56   : > { %1900 = vmatmul.msk.bf16.gmra.mxu0 %vm365_vm1, %v1893_v49  ;;  %v1329_v49 = vunpack.c.l.b16 %v1241_v39  ;;  %v1259_v54 = vrot.slane %v1257_v42, 4  ;;  %v1995_v42 = vld [vmem:[%s2202_s23 + $0x40] sm:$0xf] }
  0x57   : > { %1921 = vmatmul.msk.bf16.gmra.mxu1 %vm365_vm1, %v978_v50  ;;  %v2044_v50 = vld [vmem:[%s2202_s23 + $0xd8] sm:$0xf]  ;;  %v1283_v45 = vsel %vm2246_vm4, %v1278_v37, %v1282_v38  ;;  %v1313_v47 = vshrl.u32 %v1995_v42, 16 }
  0x58   : > { %v1336_v60 = vpack.c.b16 %v1329_v49, %v1328_v48  ;;  %v2045_v61 = vor.u32 %v2089_v51, %v2044_v50  ;;  %v1263_v0 = vor.u32 %v1262_v55, %v1259_v54  ;;  %v1316_v48 = vshll.u32 %v1995_v42, 16  ;;  %v1942_v49 = vld [vmem:[%s2202_s23 + $0x28] sm:$0xf]  ;;  %v2083_v50 = vld [vmem:[%s2202_s23 + $0x2c] sm:$0xf0] }
  0x59   : > { %v1971_v51 = vld [vmem:[%s2202_s23 + $0x70] sm:$0xf]  ;;  %v1332_v52 = vunpack.c.l.b16 %v1283_v45  ;;  %v1301_v54 = vrot.slane %v1299_v43, 4  ;;  %v1304_v55 = vrot.slane %v1302_v44, 5  ;;  %v1943_v63 = vor.u32 %v2083_v50, %v1942_v49 }
  0x5a   : > { %v1264_v4 = vrot.slane %v1263_v0, 4  ;;  %v1972_v0 = vor.u32 %v2087_v56, %v1971_v51 }
  0x5b   : > { %v1305_v2 = vor.u32 %v1304_v55, %v1301_v54 }
  0x5c   : > { %v1269_v12 = vsel %vm2246_vm4, %v1264_v4, %v1268_v5  ;;  %v1308_v5 = vshll.u32 %v1994_v57, 16 }
  0x5d   : > { %v1331_v19 = vunpack.c.l.b16 %v1269_v12  ;;  %v1306_v10 = vrot.slane %v1305_v2, 4 }
  0x5e   : > { %v1310_v12 = vrot.slane %v1308_v5, 5 }
  0x64   : > { %1843 = vmatmul.msk.bf16.gmra.mxu2 %vm365_vm1, %v619_v24  ;;  %v1287_v24 = vrot.slane %v1285_v13, 4 }
  0x65   : > { %1872 = vmatmul.msk.bf16.gmra.mxu3 %vm365_vm1, %v1868_v25  ;;  %v1290_v25 = vrot.slane %v1288_v14, 5  ;;  %v1324_v14 = vrot.slane %v1322_v7, 5 }
  0x66   : > { %1901 = vmatmul.msk.bf16.gmra.mxu0 %vm365_vm1, %v1897_v26  ;;  %v2048_v26 = vld [vmem:[%s2202_s23 + $0xe8] sm:$0xf] }
  0x67   : > { %1922 = vmatmul.msk.bf16.gmra.mxu1 %vm365_vm1, %v979_v31  ;;  %v1337_v31 = vpack.c.b16 %v1331_v19, %v1330_v18  ;;  %v2049_v33 = vor.u32 %v2090_v27, %v2048_v26  ;;  %v1291_v35 = vor.u32 %v1290_v25, %v1287_v24  ;;  %v1311_v19 = vsel %vm2246_vm4, %v1306_v10, %v1310_v12  ;;  %v2084_v24 = vld [vmem:[%s2202_s23 + $0x3c] sm:$0xf0] }
  0x68   : > { %v1334_v25 = vunpack.c.l.b16 %v1311_v19  ;;  %v1975_v27 = vld [vmem:[%s2202_s23 + $0x80] sm:$0xf] }
  0x69   : > { %v1292_v39 = vrot.slane %v1291_v35, 4  ;;  %v1976_v35 = vor.u32 %v2088_v28, %v1975_v27 }
  0x6b   : > { %v1297_v46 = vsel %vm2246_vm4, %v1292_v39, %v1296_v40 }
  0x6c   : > { %v1333_v53 = vunpack.c.l.b16 %v1297_v46 }
  0x6e   : > { %v1338_v1 = vpack.c.b16 %v1333_v53, %v1332_v52 }
  0x74   : > { %1948 = vmatmul.msk.bf16.vlgmr.msra.gmra.mxu2 %vm365_vm1, %v1935_v58  ;;  %v1315_v58 = vrot.slane %v1313_v47, 4 }
  0x75   : > { %1977 = vmatmul.msk.bf16.vlgmr.msra.gmra.mxu3 %vm365_vm1, %v1964_v59  ;;  %v1318_v59 = vrot.slane %v1316_v48, 5 }
  0x76   : > { %1998 = vmatmul.msk.bf16.vlgmr.msra.gmra.mxu0 %vm365_vm1, %v1336_v60  ;;  %v2052_v60 = vld [vmem:[%s2202_s23 + $0xf8] sm:$0xf] }
  0x77   : > { %2058 = vmatmul.msk.bf16.vlgmr.msra.gmra.mxu1 %vm365_vm1, %v2045_v61  ;;  %v2091_v61 = vld [vmem:[%s2202_s23 + $0xfc] sm:$0xf0]  ;;  %v1319_v6 = vor.u32 %v1318_v59, %v1315_v58 }
  0x78   : > { %v2053_v4 = vor.u32 %v2091_v61, %v2052_v60 }
  0x79   : > { %v1320_v13 = vrot.slane %v1319_v6, 4 }
  0x7b   : > { %v1325_v20 = vsel %vm2246_vm4, %v1320_v13, %v1324_v14 }
  0x7c   : > { %v1335_v26 = vunpack.c.l.b16 %v1325_v20 }
  0x7e   : > { %v1339_v36 = vpack.c.b16 %v1335_v26, %v1334_v25 }
  0x84   : > { %1949 = vmatmul.msk.bf16.gmra.mxu2 %vm365_vm1, %v1939_v29 }
  0x85   : > { %1978 = vmatmul.msk.bf16.gmra.mxu3 %vm365_vm1, %v1968_v30  ;;  %v2056_v30 = vld [vmem:[%s2202_s23 + $0x108] sm:$0xf] }
  0x86   : > { %1999 = vmatmul.msk.bf16.gmra.mxu0 %vm365_vm1, %v1337_v31  ;;  %v2092_v31 = vld [vmem:[%s2202_s23 + $0x10c] sm:$0xf0]  ;;  %s2487_s23 = scalar_lea.vmem %s2633_s8, %s2064_s18 }
  0x87   : > { %2059 = vmatmul.msk.bf16.gmra.mxu1 %vm365_vm1, %v2049_v33  ;;  %v1947_v33 = vor.u32 %v2084_v24, %v1946_v23  ;;  %v2057_v11 = vor.u32 %v2092_v31, %v2056_v30 }
  0x93   : > { %v391_v3 = vpop.f32.mrf.mxu0 }
  0x94   : > { %v455_v8 = vpop.f32.mrf.mxu1  ;;  %1950 = vmatmul.msk.bf16.gmra.mxu2 %vm365_vm1, %v1943_v63 }
  0x95   : > { %v456_v9 = vadd.f32 %v455_v8, %v391_v3  ;;  %1979 = vmatmul.msk.bf16.gmra.mxu3 %vm365_vm1, %v1972_v0 }
  0x96   : > { %2000 = vmatmul.msk.bf16.gmra.mxu0 %vm365_vm1, %v1338_v1 }
  0x97   : > { %2060 = vmatmul.msk.bf16.gmra.mxu1 %vm365_vm1, %v2053_v4  ;;  %v401_v15 = vpop.f32.mrf.mxu2 }
  0x98   : > { %v465_v16 = vpop.f32.mrf.mxu3 }
  0x99   : > { %v2404_v17 = vadd.f32 %v465_v16, %v401_v15 }
  0x9b   : > { %v393_v18 = vpop.f32.mrf.mxu0 }
  0x9c   : > { %v457_v21 = vpop.f32.mrf.mxu1 }
  0x9d   : > { %v458_v22 = vadd.f32 %v457_v21, %v393_v18 }
  0x9f   : > { %v403_v29 = vpop.f32.mrf.mxu2 }
  0xa0   : > { %v467_v32 = vpop.f32.mrf.mxu3 }
  0xa1   : > { %v2416_v34 = vadd.f32 %v467_v32, %v403_v29 }
  0xa3   : > { %v396_v37 = vpop.f32.mrf.mxu0 }
  0xa4   : > { %v460_v38 = vpop.f32.mrf.mxu1  ;;  %1951 = vmatmul.msk.bf16.gmra.mxu2 %vm365_vm1, %v1947_v33 }
  0xa5   : > { %v461_v39 = vadd.f32 %v460_v38, %v396_v37  ;;  %1980 = vmatmul.msk.bf16.gmra.mxu3 %vm365_vm1, %v1976_v35  ;;  %v2118_v35 = vmov 0  }
  0xa6   : > { %2001 = vmatmul.msk.bf16.gmra.mxu0 %vm365_vm1, %v1339_v36  ;;  %1426 = vst [vmem:[%s2446_s15 + $0x8] sm:$0xf] %v2118_v35 }
  0xa7   : > { %2061 = vmatmul.msk.bf16.gmra.mxu1 %vm365_vm1, %v2057_v11  ;;  %v406_v40 = vpop.f32.mrf.mxu2  ;;  %1427 = vst [vmem:[%s2446_s15 + $0xc] sm:$0x1] %v2118_v35 }
  0xa8   : > { %v470_v41 = vpop.f32.mrf.mxu3  ;;  %1424 = vst [vmem:[%s2446_s15] sm:$0xf] %v2118_v35 }
  0xa9   : > { %v2422_v42 = vadd.f32 %v470_v41, %v406_v40  ;;  %1425 = vst [vmem:[%s2446_s15 + $0x4] sm:$0x1] %v2118_v35 }
  0xaa   : > { %1428 = vst [vmem:[%s2446_s15 + $0x10] sm:$0xf] %v2118_v35 }
  0xab   : > { %v398_v43 = vpop.f32.mrf.mxu0  ;;  %1429 = vst [vmem:[%s2446_s15 + $0x14] sm:$0x1] %v2118_v35 }
  0xac   : > { %v462_v44 = vpop.f32.mrf.mxu1  ;;  %1430 = vst [vmem:[%s2446_s15 + $0x18] sm:$0xf] %v2118_v35 }
  0xad   : > { %v463_v45 = vadd.f32 %v462_v44, %v398_v43  ;;  %1431 = vst [vmem:[%s2446_s15 + $0x1c] sm:$0x1] %v2118_v35 }
  0xae   : > { %1432 = vst [vmem:[%s2446_s15 + $0x20] sm:$0xf] %v2118_v35 }
  0xaf   : > { %v408_v46 = vpop.f32.mrf.mxu2  ;;  %1433 = vst [vmem:[%s2446_s15 + $0x24] sm:$0x1] %v2118_v35 }
  0xb0   : > { %v472_v47 = vpop.f32.mrf.mxu3  ;;  %1434 = vst [vmem:[%s2446_s15 + $0x28] sm:$0xf] %v2118_v35 }
  0xb1   : > { %v2424_v48 = vadd.f32 %v472_v47, %v408_v46  ;;  %1435 = vst [vmem:[%s2446_s15 + $0x2c] sm:$0x1] %v2118_v35  ;;  %v2470_v47 = vld [vmem:[%s2630_s5] ss:$0 sm:$0xff] }
  0xb2   : > { %1436 = vst [vmem:[%s2446_s15 + $0x30] sm:$0xf] %v2118_v35 }
  0xb3   : > { %v810_v49 = vpop.f32.mrf.mxu0  ;;  %1437 = vst [vmem:[%s2446_s15 + $0x34] sm:$0x1] %v2118_v35 }
  0xb4   : > { %v1004_v50 = vpop.f32.mrf.mxu1  ;;  %1438 = vst [vmem:[%s2446_s15 + $0x38] sm:$0xf] %v2118_v35 }
  0xb5   : > { %1439 = vst [vmem:[%s2446_s15 + $0x3c] sm:$0x1] %v2118_v35 }
  0xb6   : > { %1440 = vst [vmem:[%s2446_s15 + $0x40] sm:$0xf] %v2118_v35 }
  0xb7   : > { %v644_v51 = vpop.f32.mrf.mxu2  ;;  %1441 = vst [vmem:[%s2446_s15 + $0x44] sm:$0x1] %v2118_v35 }
  0xb8   : > { %v664_v52 = vadd.f32 %v644_v51, %v456_v9  ;;  %v727_v53 = vpop.f32.mrf.mxu3  ;;  %v2478_v51 = vld [vmem:[%s2631_s6] ss:$0 sm:$0xff]  ;;  %1442 = vst [vmem:[%s2446_s15 + $0x48] sm:$0xf] %v2118_v35 }
  0xb9   : > { %1443 = vst [vmem:[%s2446_s15 + $0x4c] sm:$0x1] %v2118_v35 }
  0xba   : > { %v747_v54 = vadd.f32 %v727_v53, %v664_v52 }
  0xbb   : > { %v812_v55 = vpop.f32.mrf.mxu0 }
  0xbc   : > { %v1006_v56 = vpop.f32.mrf.mxu1  ;;  %v830_v57 = vadd.f32 %v810_v49, %v747_v54 }
  0xbe   : > { %v2426_v58 = vadd.f32 %v1004_v50, %v830_v57 }
  0xbf   : > { %v646_v59 = vpop.f32.mrf.mxu2 }
  0xc0   : > { %v665_v60 = vadd.f32 %v646_v59, %v458_v22  ;;  %v729_v61 = vpop.f32.mrf.mxu3 }
  0xc2   : > { %v748_v62 = vadd.f32 %v729_v61, %v665_v60  ;;  %v2499_v61 = vld [vmem:[%s2627_s2] ss:$0 sm:$0xff] }
  0xc3   : > { %v815_v63 = vpop.f32.mrf.mxu0 }
  0xc4   : > { %v1009_v0 = vpop.f32.mrf.mxu1  ;;  %v831_v1 = vadd.f32 %v812_v55, %v748_v62 }
  0xc6   : > { %v2428_v2 = vadd.f32 %v1006_v56, %v831_v1  ;;  %v2504_v1 = vld [vmem:[%s2628_s3] ss:$0 sm:$0xff] }
  0xc7   : > { %v649_v3 = vpop.f32.mrf.mxu2 }
  0xc8   : > { %v666_v4 = vadd.f32 %v649_v3, %v461_v39  ;;  %v732_v5 = vpop.f32.mrf.mxu3 }
  0xca   : > { %v749_v6 = vadd.f32 %v732_v5, %v666_v4 }
  0xcb   : > { %v817_v7 = vpop.f32.mrf.mxu0 }
  0xcc   : > { %v1011_v8 = vpop.f32.mrf.mxu1  ;;  %v832_v9 = vadd.f32 %v815_v63, %v749_v6 }
  0xce   : > { %v2430_v10 = vadd.f32 %v1009_v0, %v832_v9 }
  0xcf   : > { %v651_v12 = vpop.f32.mrf.mxu2 }
  0xd0   : > { %v667_v13 = vadd.f32 %v651_v12, %v463_v45  ;;  %v734_v14 = vpop.f32.mrf.mxu3 }
  0xd2   : > { %v750_v15 = vadd.f32 %v734_v14, %v667_v13 }
  0xd3   : > { %v820_v16 = vpop.f32.mrf.mxu0 }
  0xd4   : > { %v1014_v18 = vpop.f32.mrf.mxu1  ;;  %v833_v19 = vadd.f32 %v817_v7, %v750_v15 }
  0xd6   : > { %v2433_v20 = vadd.f32 %v1011_v8, %v833_v19 }
  0xd7   : > { %v654_v21 = vpop.f32.mrf.mxu2 }
  0xd8   : > { %v668_v22 = vadd.f32 %v654_v21, %v2404_v17  ;;  %v737_v23 = vpop.f32.mrf.mxu3 }
  0xda   : > { %v751_v24 = vadd.f32 %v737_v23, %v668_v22 }
  0xdb   : > { %v822_v25 = vpop.f32.mrf.mxu0 }
  0xdc   : > { %v1016_v26 = vpop.f32.mrf.mxu1  ;;  %v834_v27 = vadd.f32 %v820_v16, %v751_v24 }
  0xde   : > { %v2440_v28 = vadd.f32 %v1014_v18, %v834_v27 }
  0xdf   : > { %v656_v29 = vpop.f32.mrf.mxu2 }
  0xe0   : > { %v669_v30 = vadd.f32 %v656_v29, %v2416_v34  ;;  %v739_v31 = vpop.f32.mrf.mxu3 }
  0xe2   : > { %v752_v17 = vadd.f32 %v739_v31, %v669_v30  ;;  %v2002_v30 = vld [vmem:[%s2446_s15 + $0x8] sm:$0xf] }
  0xe3   : > { %v825_v32 = vpop.f32.mrf.mxu0 }
  0xe4   : > { %v1019_v33 = vpop.f32.mrf.mxu1  ;;  %v835_v34 = vadd.f32 %v822_v25, %v752_v17  ;;  %v2004_v17 = vld [vmem:[%s2446_s15 + $0xc] sm:$0x1] }
  0xe6   : > { %v2451_v36 = vadd.f32 %v1016_v26, %v835_v34 }
  0xe7   : > { %v659_v37 = vpop.f32.mrf.mxu2 }
  0xe8   : > { %v670_v11 = vadd.f32 %v659_v37, %v2422_v42  ;;  %v742_v38 = vpop.f32.mrf.mxu3 }
  0xea   : > { %v753_v39 = vadd.f32 %v742_v38, %v670_v11 }
  0xeb   : > { %v827_v40 = vpop.f32.mrf.mxu0 }
  0xec   : > { %v1021_v41 = vpop.f32.mrf.mxu1  ;;  %v836_v43 = vadd.f32 %v825_v32, %v753_v39 }
  0xee   : > { %v2461_v44 = vadd.f32 %v1019_v33, %v836_v43 }
  0xef   : > { %v661_v42 = vpop.f32.mrf.mxu2 }
  0xf0   : > { %v671_v45 = vadd.f32 %v661_v42, %v2424_v48  ;;  %v744_v46 = vpop.f32.mrf.mxu3 }
  0xf2   : > { %v754_v49 = vadd.f32 %v744_v46, %v671_v45 }
  0xf3   : > { %v1364_v50 = vpop.f32.mrf.mxu0 }
  0xf4   : > { %v1640_v48 = vpop.f32.mrf.mxu1  ;;  %v837_v52 = vadd.f32 %v827_v40, %v754_v49 }
  0xf5   : > { %v1664_v53 = vmul.f32 %v2470_v47, %v1640_v48 }
  0xf6   : > { %v2489_v54 = vadd.f32 %v1021_v41, %v837_v52 }
  0xf7   : > { %v1676_v55 = vadd.f32 %v2478_v51, %v1664_v53  ;;  %v1087_v56 = vpop.f32.mrf.mxu2 }
  0xf8   : > { %v1107_v57 = vadd.f32 %v1087_v56, %v2426_v58  ;;  %v1170_v59 = vpop.f32.mrf.mxu3  ;;  %v2008_v56 = vld [vmem:[%s2446_s15 + $0x14] sm:$0x1] }
  0xf9   : > { %1684 = vst [vmem:[%s2487_s23] sm:$0xff] %v1676_v55  ;;  %v2006_v55 = vld [vmem:[%s2446_s15 + $0x10] sm:$0xf] }
  0xfa   : > { %v1190_v60 = vadd.f32 %v1170_v59, %v1107_v57 }
  0xfb   : > { %v1366_v62 = vpop.f32.mrf.mxu0 }
  0xfc   : > { %v1642_v63 = vpop.f32.mrf.mxu1  ;;  %v1384_v0 = vadd.f32 %v1364_v50, %v1190_v60 }
  0xfd   : > { %v1665_v3 = vmul.f32 %v2470_v47, %v1642_v63 }
  0xfe   : > { %v1396_v58 = vmul.f32 %v2499_v61, %v1384_v0 }
  0xff   : > { %v1677_v4 = vadd.f32 %v2478_v51, %v1665_v3  ;;  %v1089_v5 = vpop.f32.mrf.mxu2 }
 0x100   : > { %v1408_v6 = vadd.f32 %v2504_v1, %v1396_v58  ;;  %v1108_v7 = vadd.f32 %v1089_v5, %v2428_v2  ;;  %v1172_v8 = vpop.f32.mrf.mxu3 }
 0x101   : > { %1685 = vst [vmem:[%s2487_s23 + $0x8] sm:$0xff] %v1677_v4 }
 0x102   : > { %v1416_v9 = vmax.f32 %v1408_v6, 0.0  ;;  %v1191_v12 = vadd.f32 %v1172_v8, %v1108_v7 }
 0x103   : > { %v1369_v13 = vpop.f32.mrf.mxu0 }
 0x104   : > { %v1645_v14 = vpop.f32.mrf.mxu1  ;;  %v1444_v15 = vpack.c.bf16 %v1416_v9, %v1416_v9  ;;  %v1385_v16 = vadd.f32 %v1366_v62, %v1191_v12 }
 0x105   : > { %v1666_v18 = vmul.f32 %v2470_v47, %v1645_v14 }
 0x106   : > { %v1453_v19 = vshrl.u32 %v1444_v15, 16  ;;  %v1397_v2 = vmul.f32 %v2499_v61, %v1385_v16  ;;  %v1456_v24 = vshll.u32 %v1444_v15, 16 }
 0x107   : > { %v1678_v21 = vadd.f32 %v2478_v51, %v1666_v18  ;;  %v1092_v22 = vpop.f32.mrf.mxu2  ;;  %v2010_v18 = vld [vmem:[%s2446_s15 + $0x18] sm:$0xf] }
 0x108   : > { %v1455_v23 = vrot.slane %v1453_v19, 7  ;;  %v1409_v26 = vadd.f32 %v2504_v1, %v1397_v2  ;;  %v1109_v27 = vadd.f32 %v1092_v22, %v2430_v10  ;;  %v1175_v29 = vpop.f32.mrf.mxu3  ;;  %v2012_v19 = vld [vmem:[%s2446_s15 + $0x1c] sm:$0x1] }
 0x109   : > { %1686 = vst [vmem:[%s2487_s23 + $0x10] sm:$0xff] %v1678_v21 }
 0x10a   : > { %v1458_v32 = vor.u32 %v1456_v24, %v1455_v23  ;;  %v1459_v33 = vrot.slane %v1455_v23, 4  ;;  %v1417_v35 = vmax.f32 %v1409_v26, 0.0  ;;  %v1192_v34 = vadd.f32 %v1175_v29, %v1109_v27 }
 0x10b   : > { %v1371_v37 = vpop.f32.mrf.mxu0 }
 0x10c   : > { %v1647_v11 = vpop.f32.mrf.mxu1  ;;  %v1537_v38 = vsel %vm2515_vm9, %v1458_v32, %v2002_v30  ;;  %v1543_v10 = vsel %vm2523_vm10, %v1459_v33, %v2004_v17  ;;  %v1445_v39 = vpack.c.bf16 %v1417_v35, %v1417_v35  ;;  %v1386_v40 = vadd.f32 %v1369_v13, %v1192_v34 }
 0x10d   : > { %2003 = vst [vmem:[%s2446_s15 + $0x8] sm:$0xf] %v1537_v38  ;;  %v1667_v41 = vmul.f32 %v2470_v47, %v1647_v11 }
 0x10e   : > { %2005 = vst [vmem:[%s2446_s15 + $0xc] sm:$0x1] %v1543_v10  ;;  %v1461_v43 = vshrl.u32 %v1445_v39, 16  ;;  %v1398_v42 = vmul.f32 %v2499_v61, %v1386_v40  ;;  %v1464_v50 = vshll.u32 %v1445_v39, 16  ;;  %v2014_v40 = vld [vmem:[%s2446_s15 + $0x20] sm:$0xf] }
 0x10f   : > { %v1094_v45 = vpop.f32.mrf.mxu2  ;;  %v1679_v46 = vadd.f32 %v2478_v51, %v1667_v41  ;;  %v2016_v41 = vld [vmem:[%s2446_s15 + $0x24] sm:$0x1] }
 0x110   : > { %v1463_v49 = vrot.slane %v1461_v43, 7  ;;  %v1410_v48 = vadd.f32 %v2504_v1, %v1398_v42  ;;  %v1110_v52 = vadd.f32 %v1094_v45, %v2433_v20  ;;  %v1177_v53 = vpop.f32.mrf.mxu3 }
 0x111   : > { %1687 = vst [vmem:[%s2487_s23 + $0x18] sm:$0xff] %v1679_v46 }
 0x112   : > { %v1466_v57 = vor.u32 %v1464_v50, %v1463_v49  ;;  %v1467_v59 = vrot.slane %v1463_v49, 4  ;;  %v1418_v60 = vmax.f32 %v1410_v48, 0.0  ;;  %v1193_v62 = vadd.f32 %v1177_v53, %v1110_v52 }
 0x113   : > { %v1374_v4 = vpop.f32.mrf.mxu0 }
 0x114   : > { %v1650_v63 = vpop.f32.mrf.mxu1  ;;  %v1546_v0 = vsel %vm2515_vm9, %v1466_v57, %v2006_v55  ;;  %v1549_v3 = vsel %vm2523_vm10, %v1467_v59, %v2008_v56  ;;  %v1446_v58 = vpack.c.bf16 %v1418_v60, %v1418_v60  ;;  %v1387_v20 = vadd.f32 %v1371_v37, %v1193_v62 }
 0x115   : > { %2007 = vst [vmem:[%s2446_s15 + $0x10] sm:$0xf] %v1546_v0  ;;  %v1668_v5 = vmul.f32 %v2470_v47, %v1650_v63 }
 0x116   : > { %2009 = vst [vmem:[%s2446_s15 + $0x14] sm:$0x1] %v1549_v3  ;;  %v1469_v6 = vshrl.u32 %v1446_v58, 16  ;;  %v1399_v7 = vmul.f32 %v2499_v61, %v1387_v20  ;;  %v1472_v13 = vshll.u32 %v1446_v58, 16  ;;  %v2018_v58 = vld [vmem:[%s2446_s15 + $0x28] sm:$0xf] }
 0x117   : > { %v1097_v8 = vpop.f32.mrf.mxu2  ;;  %v1680_v9 = vadd.f32 %v2478_v51, %v1668_v5  ;;  %v2020_v20 = vld [vmem:[%s2446_s15 + $0x2c] sm:$0x1] }
 0x118   : > { %v1471_v12 = vrot.slane %v1469_v6, 7  ;;  %v1411_v14 = vadd.f32 %v2504_v1, %v1399_v7  ;;  %v1111_v15 = vadd.f32 %v1097_v8, %v2440_v28  ;;  %v1180_v16 = vpop.f32.mrf.mxu3 }
 0x119   : > { %1688 = vst [vmem:[%s2487_s23 + $0x20] sm:$0xff] %v1680_v9 }
 0x11a   : > { %v1474_v2 = vor.u32 %v1472_v13, %v1471_v12  ;;  %v1475_v21 = vrot.slane %v1471_v12, 4  ;;  %v1419_v22 = vmax.f32 %v1411_v14, 0.0  ;;  %v1194_v23 = vadd.f32 %v1180_v16, %v1111_v15 }
 0x11b   : > { %v1376_v33 = vpop.f32.mrf.mxu0 }
 0x11c   : > { %v1652_v24 = vpop.f32.mrf.mxu1  ;;  %v1552_v26 = vsel %vm2515_vm9, %v1474_v2, %v2010_v18  ;;  %v1555_v27 = vsel %vm2523_vm10, %v1475_v21, %v2012_v19  ;;  %v1447_v29 = vpack.c.bf16 %v1419_v22, %v1419_v22  ;;  %v1388_v28 = vadd.f32 %v1374_v4, %v1194_v23 }
 0x11d   : > { %2011 = vst [vmem:[%s2446_s15 + $0x18] sm:$0xf] %v1552_v26  ;;  %v1669_v30 = vmul.f32 %v2470_v47, %v1652_v24  ;;  %v2022_v26 = vld [vmem:[%s2446_s15 + $0x30] sm:$0xf] }
 0x11e   : > { %2013 = vst [vmem:[%s2446_s15 + $0x1c] sm:$0x1] %v1555_v27  ;;  %v1477_v17 = vshrl.u32 %v1447_v29, 16  ;;  %v1400_v32 = vmul.f32 %v2499_v61, %v1388_v28  ;;  %v1480_v11 = vshll.u32 %v1447_v29, 16  ;;  %v2024_v27 = vld [vmem:[%s2446_s15 + $0x34] sm:$0x1] }
 0x11f   : > { %v1099_v35 = vpop.f32.mrf.mxu2  ;;  %v1681_v34 = vadd.f32 %v2478_v51, %v1669_v30 }
 0x120   : > { %v1479_v37 = vrot.slane %v1477_v17, 7  ;;  %v1412_v38 = vadd.f32 %v2504_v1, %v1400_v32  ;;  %v1112_v10 = vadd.f32 %v1099_v35, %v2451_v36  ;;  %v1182_v39 = vpop.f32.mrf.mxu3 }
 0x121   : > { %1689 = vst [vmem:[%s2487_s23 + $0x28] sm:$0xff] %v1681_v34 }
 0x122   : > { %v1482_v43 = vor.u32 %v1480_v11, %v1479_v37  ;;  %v1483_v42 = vrot.slane %v1479_v37, 4  ;;  %v1420_v45 = vmax.f32 %v1412_v38, 0.0  ;;  %v1195_v46 = vadd.f32 %v1182_v39, %v1112_v10  ;;  %v2026_v39 = vld [vmem:[%s2446_s15 + $0x38] sm:$0xf] }
 0x123   : > { %v1379_v4 = vpop.f32.mrf.mxu0 }
 0x124   : > { %v1655_v49 = vpop.f32.mrf.mxu1  ;;  %v1558_v50 = vsel %vm2515_vm9, %v1482_v43, %v2014_v40  ;;  %v1561_v48 = vsel %vm2523_vm10, %v1483_v42, %v2016_v41  ;;  %v1448_v52 = vpack.c.bf16 %v1420_v45, %v1420_v45  ;;  %v1389_v36 = vadd.f32 %v1376_v33, %v1195_v46  ;;  %v2028_v40 = vld [vmem:[%s2446_s15 + $0x3c] sm:$0x1] }
 0x125   : > { %2015 = vst [vmem:[%s2446_s15 + $0x20] sm:$0xf] %v1558_v50  ;;  %v1670_v53 = vmul.f32 %v2470_v47, %v1655_v49 }
 0x126   : > { %2017 = vst [vmem:[%s2446_s15 + $0x24] sm:$0x1] %v1561_v48  ;;  %v1485_v55 = vshrl.u32 %v1448_v52, 16  ;;  %v1401_v56 = vmul.f32 %v2499_v61, %v1389_v36  ;;  %v1488_v62 = vshll.u32 %v1448_v52, 16  ;;  %v2032_v52 = vld [vmem:[%s2446_s15 + $0x44] sm:$0x1] }
 0x127   : > { %v1102_v57 = vpop.f32.mrf.mxu2  ;;  %v1682_v59 = vadd.f32 %v2478_v51, %v1670_v53 }
 0x128   : > { %v1487_v60 = vrot.slane %v1485_v55, 7  ;;  %v1413_v63 = vadd.f32 %v2504_v1, %v1401_v56  ;;  %v1113_v0 = vadd.f32 %v1102_v57, %v2461_v44  ;;  %v1185_v3 = vpop.f32.mrf.mxu3 }
 0x129   : > { %1690 = vst [vmem:[%s2487_s23 + $0x30] sm:$0xff] %v1682_v59 }
 0x12a   : > { %v1490_v5 = vor.u32 %v1488_v62, %v1487_v60  ;;  %v1491_v6 = vrot.slane %v1487_v60, 4  ;;  %v1421_v7 = vmax.f32 %v1413_v63, 0.0  ;;  %v1196_v8 = vadd.f32 %v1185_v3, %v1113_v0 }
 0x12b   : > { %v1381_v32 = vpop.f32.mrf.mxu0 }
 0x12c   : > { %v1657_v9 = vpop.f32.mrf.mxu1  ;;  %v1564_v12 = vsel %vm2515_vm9, %v1490_v5, %v2018_v58  ;;  %v1567_v13 = vsel %vm2523_vm10, %v1491_v6, %v2020_v20  ;;  %v1449_v44 = vpack.c.bf16 %v1421_v7, %v1421_v7  ;;  %v1390_v14 = vadd.f32 %v1379_v4, %v1196_v8 }
 0x12d   : > { %2019 = vst [vmem:[%s2446_s15 + $0x28] sm:$0xf] %v1564_v12  ;;  %v1671_v15 = vmul.f32 %v2470_v47, %v1657_v9 }
 0x12e   : > { %2021 = vst [vmem:[%s2446_s15 + $0x2c] sm:$0x1] %v1567_v13  ;;  %v1493_v16 = vshrl.u32 %v1449_v44, 16  ;;  %v1402_v18 = vmul.f32 %v2499_v61, %v1390_v14  ;;  %v1496_v22 = vshll.u32 %v1449_v44, 16 }
 0x12f   : > { %v1104_v19 = vpop.f32.mrf.mxu2  ;;  %v1683_v2 = vadd.f32 %v2478_v51, %v1671_v15 }
 0x130   : > { %v1495_v21 = vrot.slane %v1493_v16, 7  ;;  %v1414_v23 = vadd.f32 %v2504_v1, %v1402_v18  ;;  %v1114_v24 = vadd.f32 %v1104_v19, %v2489_v54  ;;  %v1187_v29 = vpop.f32.mrf.mxu3 }
 0x131   : > { %1691 = vst [vmem:[%s2487_s23 + $0x38] sm:$0xff] %v1683_v2 }
 0x132   : > { %v1498_v47 = vor.u32 %v1496_v22, %v1495_v21  ;;  %v1499_v28 = vrot.slane %v1495_v21, 4  ;;  %v1422_v30 = vmax.f32 %v1414_v23, 0.0  ;;  %v1197_v17 = vadd.f32 %v1187_v29, %v1114_v24 }
 0x134   : > { %v1570_v51 = vsel %vm2515_vm9, %v1498_v47, %v2022_v26  ;;  %v1573_v33 = vsel %vm2523_vm10, %v1499_v28, %v2024_v27  ;;  %v1450_v35 = vpack.c.bf16 %v1422_v30, %v1422_v30  ;;  %v1391_v34 = vadd.f32 %v1381_v32, %v1197_v17 }
 0x135   : > { %2023 = vst [vmem:[%s2446_s15 + $0x30] sm:$0xf] %v1570_v51 }
 0x136   : > { %2025 = vst [vmem:[%s2446_s15 + $0x34] sm:$0x1] %v1573_v33  ;;  %v1501_v54 = vshrl.u32 %v1450_v35, 16  ;;  %v1403_v37 = vmul.f32 %v2499_v61, %v1391_v34  ;;  %v1504_v38 = vshll.u32 %v1450_v35, 16 }
 0x138   : > { %v1503_v11 = vrot.slane %v1501_v54, 7  ;;  %v1415_v10 = vadd.f32 %v2504_v1, %v1403_v37  ;;  %v2030_v1 = vld [vmem:[%s2446_s15 + $0x40] sm:$0xf] }
 0x13a   : > { %v1506_v41 = vor.u32 %v1504_v38, %v1503_v11  ;;  %v1507_v43 = vrot.slane %v1503_v11, 4  ;;  %v1423_v42 = vmax.f32 %v1415_v10, 0.0 }
 0x13c   : > { %v1576_v45 = vsel %vm2515_vm9, %v1506_v41, %v2026_v39  ;;  %v1579_v46 = vsel %vm2523_vm10, %v1507_v43, %v2028_v40  ;;  %v1451_v61 = vpack.c.bf16 %v1423_v42, %v1423_v42 }
 0x13d   : > { %2027 = vst [vmem:[%s2446_s15 + $0x38] sm:$0xf] %v1576_v45 }
 0x13e   : > { %2029 = vst [vmem:[%s2446_s15 + $0x3c] sm:$0x1] %v1579_v46  ;;  %v1509_v49 = vshrl.u32 %v1451_v61, 16  ;;  %v1512_v48 = vshll.u32 %v1451_v61, 16 }
 0x140   : > { %v1511_v50 = vrot.slane %v1509_v49, 7 }
 0x142   : > { %v1514_v36 = vor.u32 %v1512_v48, %v1511_v50  ;;  %v1515_v53 = vrot.slane %v1511_v50, 4 }
 0x144   : > { %v1582_v55 = vsel %vm2515_vm9, %v1514_v36, %v2030_v1  ;;  %v1585_v56 = vsel %vm2523_vm10, %v1515_v53, %v2032_v52 }
 0x145   : > { %2031 = vst [vmem:[%s2446_s15 + $0x40] sm:$0xf] %v1582_v55 }
 0x146   : > { %2033 = vst [vmem:[%s2446_s15 + $0x44] sm:$0x1] %v1585_v56 }
 0x147 PF: > { %s19_s27 = sadd.s32 1, %s2116_s27  }
 0x148   : > { %p16_p5 = scmp.ge.s32.totalorder %s19_s27, 4  }
 0x14a   :  { %18 = sbr.rel (!%p16_p5) target bundleno = 1 (0x1), region = 104 }

// kernel: residual_block_forward.3
= control target key start
LH: loop header
LB: loop body
LE: loop exit
PB: predicated region body
PF: predicated region fallthrough
CT: control target
= control target key end

     0   :  { %s2728_s18 = smov 0   ;;  %s3385_s0 = inlined_call_operand.vmem [shape: bf16[2,10,10,128], index: 0, kind: input, shape index: {}]   ;;  %s3386_s1 = inlined_call_operand.vmem [shape: bf16[9,128,128], index: 1, kind: input, shape index: {}]   ;;  %s3387_s2 = inlined_call_operand.vmem [shape: f32[1,128], index: 2, kind: input, shape index: {}]   ;;  %s3388_s3 = inlined_call_operand.vmem [shape: f32[1,128], index: 3, kind: input, shape index: {}]   ;;  %s3389_s4 = inlined_call_operand.vmem [shape: f32[2,64,128], index: 4, kind: input, shape index: {}]   ;;  %s3390_s5 = inlined_call_operand.vmem [shape: f32[2,64,128], index: 5, kind: output, shape index: {}]  }
   0x1 LB: > { %s2013_s19 = sadd.s32 4294967295, %s2696_s18   ;;  %p2017_p0 = scmp.ge.s32.totalorder %s2696_s18, 1  ;;  %s2696_s18 = sphi %s2728_s18, %s15_s18  }
   0x2   : > { %p197_p1 = scmp.lt.s32.totalorder %s2696_s18, 3 }
   0x4   : > { %p198_p2 = pnand %p2017_p0, %p197_p1 }
   0x5   : > { %p230_p3 = scmp.lt.s32.totalorder (!%p198_p2), %s2013_s19, 1 }
   0x6   : > { %201 = sbr.rel (%p198_p2) target bundleno = 338 (0x152), region = 40 }
   0xb   : > { %v2598_v0 = vld [vmem:[%s3386_s1 + $0x78] sm:$0xff]  ;;  %v2597_v2 = vld [vmem:[%s3386_s1 + $0x70] sm:$0xff]  ;;  %s3396_s19 = smov (!%p230_p3, %s2013_s19), 1  ;;  %v2596_v6 = vld [vmem:[%s3386_s1 + $0x68] sm:$0xff]  ;;  %vm277_vm0 = vsmask.f32 3328 }
   0xc   : > { %v2606_v1 = vld [vmem:[%s3386_s1 + $0xb8] sm:$0xff]  ;;  %2663 = vmatpush.bf16.msra.mxu1 %v2598_v0  ;;  %473 = vmatpush.bf16.msra.mxu0 %v2598_v0  ;;  %v2605_v3 = vld [vmem:[%s3386_s1 + $0xb0] sm:$0xff]  ;;  %s2679_s30 = smul.u32 80, %s3396_s19  ;;  %v2604_v7 = vld [vmem:[%s3386_s1 + $0xa8] sm:$0xff]  ;;  %vm278_vm1 = vsmask.f32 7440 }
   0xd   : > { %743 = vmatpush.bf16.msra.mxu2 %v2606_v1  ;;  %v2618_v4 = vld [vmem:[%s3386_s1 + $0xf8] sm:$0xff]  ;;  %v2617_v5 = vld [vmem:[%s3386_s1 + $0xf0] sm:$0xff]  ;;  %v2595_v11 = vld [vmem:[%s3386_s1 + $0x60] sm:$0xff]  ;;  %vm627_vm2 = vcmask 1042432   ;;  %vm628_vm3 = vcmask 1046532  }
   0xe   : > { %878 = vmatpush.bf16.msra.mxu3 %v2618_v4  ;;  %s2766_s14 = scalar_lea.vmem %s3385_s0, %s2679_s30  ;;  %v2603_v16 = vld [vmem:[%s3386_s1 + $0xa0] sm:$0xff]  ;;  %v2616_v17 = vld [vmem:[%s3386_s1 + $0xe8] sm:$0xff]  ;;  %v2594_v29 = vld [vmem:[%s3386_s1 + $0x58] sm:$0xff] }
   0xf   : > { %v249_v8 = vld [vmem:[%s2766_s14 + $0x20] sm:$0xf]  ;;  %v250_v9 = vld [vmem:[%s2766_s14 + $0x28] sm:$0xf]  ;;  %v2771_v10 = vld [vmem:[%s2766_s14 + $0x24] sm:$0x1] }
  0x10   : > { %2664 = vmatpush.bf16.msra.mxu1 %v2597_v2  ;;  %474 = vmatpush.bf16.msra.mxu0 %v2597_v2  ;;  %v2777_v12 = vld [vmem:[%s2766_s14 + $0x2c] sm:$0x1]  ;;  %v337_v13 = vshrl.u32 %v249_v8, 16  ;;  %v340_v14 = vshll.u32 %v249_v8, 16  ;;  %v351_v15 = vshrl.u32 %v250_v9, 16  ;;  %v354_v18 = vshll.u32 %v250_v9, 16  ;;  %vm2804_vm4 = vmor %vm277_vm0, %vm278_vm1 }
  0x11   : > { %744 = vmatpush.bf16.msra.mxu2 %v2605_v3  ;;  %v245_v19 = vld [vmem:[%s2766_s14] sm:$0xf]  ;;  %v346_v22 = vshll.u32 %v2771_v10, 16  ;;  %v246_v24 = vld [vmem:[%s2766_s14 + $0x8] sm:$0xf]  ;;  %v360_v26 = vshll.u32 %v2777_v12, 16  ;;  %vm2813_vm5 = vmor %vm627_vm2, %vm628_vm3 }
  0x12   : > { %879 = vmatpush.bf16.msra.mxu3 %v2617_v5  ;;  %v339_v20 = vrot.slane %v337_v13, 4  ;;  %v342_v21 = vrot.slane %v340_v14, 5  ;;  %v353_v23 = vrot.slane %v351_v15, 4  ;;  %v356_v25 = vrot.slane %v354_v18, 5  ;;  %v269_v27 = vld [vmem:[%s2766_s14 + $0x4] sm:$0x1] }
  0x13   : > { %v270_v28 = vld [vmem:[%s2766_s14 + $0xc] sm:$0x1]  ;;  %v281_v31 = vshrl.u32 %v245_v19, 16  ;;  %v284_v32 = vshll.u32 %v245_v19, 16  ;;  %v2615_v34 = vld [vmem:[%s3386_s1 + $0xe0] sm:$0xff]  ;;  %v290_v35 = vshll.u32 %v269_v27, 16 }
  0x14   : > { %2665 = vmatpush.bf16.msra.mxu1 %v2596_v6  ;;  %475 = vmatpush.bf16.msra.mxu0 %v2596_v6  ;;  %v343_v30 = vor.u32 %v342_v21, %v339_v20  ;;  %v357_v33 = vor.u32 %v356_v25, %v353_v23  ;;  %v295_v36 = vshrl.u32 %v246_v24, 16  ;;  %v298_v37 = vshll.u32 %v246_v24, 16  ;;  %v603_v38 = vld [vmem:[%s2766_s14] sm:$0xe]  ;;  %v604_v43 = vld [vmem:[%s2766_s14 + $0x8] sm:$0xe] }
  0x15   : > { %745 = vmatpush.bf16.msra.mxu2 %v2604_v7  ;;  %v348_v39 = vrot.slane %v346_v22, 5  ;;  %v283_v40 = vrot.slane %v281_v31, 4  ;;  %v286_v41 = vrot.slane %v284_v32, 5  ;;  %v304_v42 = vshll.u32 %v270_v28, 16  ;;  %v2602_v44 = vld [vmem:[%s3386_s1 + $0x98] sm:$0xff]  ;;  %v2593_v60 = vld [vmem:[%s3386_s1 + $0x50] sm:$0xff] }
  0x16   : > { %880 = vmatpush.bf16.msra.mxu3 %v2616_v17  ;;  %v344_v45 = vrot.slane %v343_v30, 4  ;;  %v362_v46 = vrot.slane %v360_v26, 5  ;;  %v297_v47 = vrot.slane %v295_v36, 4  ;;  %v300_v48 = vrot.slane %v298_v37, 5  ;;  %v2614_v56 = vld [vmem:[%s3386_s1 + $0xd8] sm:$0xff]  ;;  %v2601_v0 = vld [vmem:[%s3386_s1 + $0x90] sm:$0xff] }
  0x17   : > { %v358_v50 = vrot.slane %v357_v33, 4  ;;  %v287_v51 = vor.u32 %v286_v41, %v283_v40  ;;  %v2119_v52 = vrot.slane %v603_v38, 9  ;;  %v632_v53 = vrot.slane %v269_v27, 5  ;;  %v251_v59 = vld [vmem:[%s2766_s14 + $0x30] sm:$0xf]  ;;  %v2592_v14 = vld [vmem:[%s3386_s1 + $0x48] sm:$0xff] }
  0x18   : > { %2666 = vmatpush.bf16.msra.mxu1 %v2595_v11  ;;  %476 = vmatpush.bf16.msra.mxu0 %v2595_v11  ;;  %v292_v54 = vrot.slane %v290_v35, 5  ;;  %v301_v55 = vor.u32 %v300_v48, %v297_v47  ;;  %v2120_v58 = vrot.slane %v604_v43, 9  ;;  %v306_v62 = vrot.slane %v304_v42, 5  ;;  %v252_v3 = vld [vmem:[%s2766_s14 + $0x38] sm:$0xf]  ;;  %v2613_v11 = vld [vmem:[%s3386_s1 + $0xd0] sm:$0xff] }
  0x19   : > { %746 = vmatpush.bf16.msra.mxu2 %v2603_v16  ;;  %v288_v61 = vrot.slane %v287_v51, 4  ;;  %v636_v63 = vrot.slane %v270_v28, 5  ;;  %v349_v1 = vsel %vm2804_vm4, %v344_v45, %v348_v39  ;;  %v363_v4 = vsel %vm2804_vm4, %v358_v50, %v362_v46  ;;  %v247_v7 = vld [vmem:[%s2766_s14 + $0x10] sm:$0xf]  ;;  %v2600_v19 = vld [vmem:[%s3386_s1 + $0x88] sm:$0xff]  ;;  %v2591_v24 = vld [vmem:[%s3386_s1 + $0x40] sm:$0xff] }
  0x1a   : > { %881 = vmatpush.bf16.msra.mxu3 %v2615_v34  ;;  %v302_v2 = vrot.slane %v301_v55, 4  ;;  %v633_v5 = vsel %vm2813_vm5, %v2119_v52, %v632_v53  ;;  %v365_v6 = vshrl.u32 %v251_v59, 16  ;;  %v368_v13 = vshll.u32 %v251_v59, 16  ;;  %v248_v22 = vld [vmem:[%s2766_s14 + $0x18] sm:$0xf]  ;;  %v2612_v31 = vld [vmem:[%s3386_s1 + $0xc8] sm:$0xff] }
  0x1b   : > { %v293_v8 = vsel %vm2804_vm4, %v288_v61, %v292_v54  ;;  %v637_v9 = vsel %vm2813_vm5, %v2120_v58, %v636_v63  ;;  %v2842_v15 = vunpack.c.l.b16 %v349_v1  ;;  %v379_v17 = vshrl.u32 %v252_v3, 16  ;;  %v2860_v32 = vld [vmem:[%s2766_s14 + $0x34] sm:$0x1]  ;;  %v2863_v36 = vld [vmem:[%s2766_s14 + $0x3c] sm:$0x1]  ;;  %v2599_v42 = vld [vmem:[%s3386_s1 + $0x80] sm:$0xff] }
  0x1c   : > { %2667 = vmatpush.bf16.msra.mxu1 %v2594_v29  ;;  %477 = vmatpush.bf16.msra.mxu0 %v2594_v29  ;;  %v307_v16 = vsel %vm2804_vm4, %v302_v2, %v306_v62  ;;  %v414_v18 = vunpack.c.l.b16 %v363_v4  ;;  %v679_v20 = vunpack.c.l.b16 %v633_v5  ;;  %v382_v21 = vshll.u32 %v252_v3, 16  ;;  %v2590_v29 = vld [vmem:[%s3386_s1 + $0x38] sm:$0xff]  ;;  %v2870_v43 = vld [vmem:[%s2766_s14 + $0x14] sm:$0x1]  ;;  %v2611_v58 = vld [vmem:[%s3386_s1 + $0xc0] sm:$0xff] }
  0x1d   : > { %747 = vmatpush.bf16.msra.mxu2 %v2602_v44  ;;  %v309_v23 = vshrl.u32 %v247_v7, 16  ;;  %v409_v25 = vunpack.c.l.b16 %v293_v8  ;;  %v680_v26 = vunpack.c.l.b16 %v637_v9  ;;  %v367_v27 = vrot.slane %v365_v6, 4  ;;  %v2873_v44 = vld [vmem:[%s2766_s14 + $0x1c] sm:$0x1]  ;;  %v2589_v52 = vld [vmem:[%s3386_s1 + $0x30] sm:$0xff] }
  0x1e   : > { %882 = vmatpush.bf16.msra.mxu3 %v2614_v56  ;;  %v312_v28 = vshll.u32 %v247_v7, 16  ;;  %v410_v30 = vunpack.c.l.b16 %v307_v16  ;;  %v370_v33 = vrot.slane %v368_v13, 5  ;;  %v381_v34 = vrot.slane %v379_v17, 4  ;;  %v2626_v45 = vld [vmem:[%s3386_s1 + $0x138] sm:$0xff]  ;;  %v2625_v59 = vld [vmem:[%s3386_s1 + $0x130] sm:$0xff] }
  0x1f   : > { %v384_v35 = vrot.slane %v382_v21, 5  ;;  %v311_v37 = vrot.slane %v309_v23, 4  ;;  %v323_v39 = vshrl.u32 %v248_v22, 16  ;;  %v326_v40 = vshll.u32 %v248_v22, 16  ;;  %v2646_v48 = vld [vmem:[%s3386_s1 + $0x1b8] sm:$0xff]  ;;  %v2645_v6 = vld [vmem:[%s3386_s1 + $0x1b0] sm:$0xff] }
  0x20   : > { %2668 = vmatpush.bf16.msra.mxu1 %v2593_v60  ;;  %478 = vmatpush.bf16.msra.mxu0 %v2593_v60  ;;  %v314_v38 = vrot.slane %v312_v28, 5  ;;  %v419_v41 = vpack.c.b16 %v414_v18, %v2842_v15  ;;  %v687_v46 = vpack.c.b16 %v680_v26, %v679_v20  ;;  %v374_v47 = vshll.u32 %v2860_v32, 16  ;;  %v2607_v1 = vld [vmem:[%s2766_s14 + $0xc] sm:$0xf0]  ;;  %v2654_v2 = vld [vmem:[%s3386_s1 + $0x1f8] sm:$0xff]  ;;  %v2644_v26 = vld [vmem:[%s3386_s1 + $0x1a8] sm:$0xff] }
  0x21   : > { %748 = vmatpush.bf16.msra.mxu2 %v2601_v0  ;;  %v325_v50 = vrot.slane %v323_v39, 4  ;;  %v328_v51 = vrot.slane %v326_v40, 5  ;;  %v417_v53 = vpack.c.b16 %v410_v30, %v409_v25  ;;  %v371_v54 = vor.u32 %v370_v33, %v367_v27  ;;  %v2201_v0 = vld [vmem:[%s2766_s14 + $0x8] sm:$0xf]  ;;  %v605_v4 = vld [vmem:[%s2766_s14 + $0x10] sm:$0xe] }
  0x22   : > { %883 = vmatpush.bf16.msra.mxu3 %v2613_v11  ;;  %v385_v55 = vor.u32 %v384_v35, %v381_v34  ;;  %v388_v56 = vshll.u32 %v2863_v36, 16  ;;  %v315_v60 = vor.u32 %v314_v38, %v311_v37  ;;  %v318_v61 = vshll.u32 %v2870_v43, 16  ;;  %v606_v5 = vld [vmem:[%s2766_s14 + $0x18] sm:$0xe]  ;;  %v2247_v13 = vld [vmem:[%s2766_s14 + $0x8] sm:$0xf] }
  0x23   : > { %v329_v62 = vor.u32 %v328_v51, %v325_v50  ;;  %v332_v63 = vshll.u32 %v2873_v44, 16  ;;  %v376_v3 = vrot.slane %v374_v47, 5  ;;  %v372_v7 = vrot.slane %v371_v54, 4  ;;  %v2249_v18 = vld [vmem:[%s2766_s14 + $0x10] sm:$0xf]  ;;  %v2624_v25 = vld [vmem:[%s3386_s1 + $0x128] sm:$0xff] }
  0x24   : > { %2669 = vmatpush.bf16.msra.mxu1 %v2592_v14  ;;  %479 = vmatpush.bf16.msra.mxu0 %v2592_v14  ;;  %v386_v8 = vrot.slane %v385_v55, 4  ;;  %v390_v9 = vrot.slane %v388_v56, 5  ;;  %v2202_v11 = vor.u32 %v2607_v1, %v2201_v0  ;;  %v316_v14 = vrot.slane %v315_v60, 4  ;;  %v2587_v37 = vld [vmem:[%s3386_s1 + $0x20] sm:$0xff]  ;;  %v2652_v40 = vld [vmem:[%s3386_s1 + $0x1e8] sm:$0xff]  ;;  %v2586_v55 = vld [vmem:[%s3386_s1 + $0x18] sm:$0xff] }
  0x25   : > { %749 = vmatpush.bf16.msra.mxu2 %v2600_v19  ;;  %v320_v15 = vrot.slane %v318_v61, 5  ;;  %v330_v16 = vrot.slane %v329_v62, 4  ;;  %v334_v17 = vrot.slane %v332_v63, 5  ;;  %v2588_v19 = vld [vmem:[%s3386_s1 + $0x28] sm:$0xff]  ;;  %v2121_v20 = vrot.slane %v605_v4, 9 }
  0x26   : > { %884 = vmatpush.bf16.msra.mxu3 %v2612_v31  ;;  %v640_v21 = vrot.slane %v2870_v43, 5  ;;  %v2122_v22 = vrot.slane %v606_v5, 9  ;;  %v644_v23 = vrot.slane %v2873_v44, 5  ;;  %v377_v27 = vsel %vm2804_vm4, %v372_v7, %v376_v3  ;;  %v2623_v43 = vld [vmem:[%s3386_s1 + $0x120] sm:$0xff]  ;;  %v2945_v47 = vld [vmem:[%s2766_s14 + $0xc] sm:$0x1] }
  0x27   : > { %v391_v28 = vsel %vm2804_vm4, %v386_v8, %v390_v9  ;;  %v935_v30 = vshll.u32 %v2247_v13, 16  ;;  %v321_v31 = vsel %vm2804_vm4, %v316_v14, %v320_v15  ;;  %v335_v33 = vsel %vm2804_vm4, %v330_v16, %v334_v17  ;;  %v2643_v44 = vld [vmem:[%s3386_s1 + $0x1a0] sm:$0xff]  ;;  %v2951_v56 = vld [vmem:[%s2766_s14 + $0x14] sm:$0x1]  ;;  %v2205_v62 = vld [vmem:[%s2766_s14 + $0x18] sm:$0xf] }
  0x28   : > { %2670 = vmatpush.bf16.msra.mxu1 %v2591_v24  ;;  %480 = vmatpush.bf16.msra.mxu0 %v2591_v24  ;;  %v2653_v24 = vld [vmem:[%s3386_s1 + $0x1f0] sm:$0xff]  ;;  %v946_v34 = vshrl.u32 %v2249_v18, 16  ;;  %v949_v35 = vshll.u32 %v2249_v18, 16  ;;  %v641_v38 = vsel %vm2813_vm5, %v2121_v20, %v640_v21  ;;  %v645_v39 = vsel %vm2813_vm5, %v2122_v22, %v644_v23  ;;  %v2608_v63 = vld [vmem:[%s2766_s14 + $0x1c] sm:$0xf0]  ;;  %v2642_v17 = vld [vmem:[%s3386_s1 + $0x198] sm:$0xff] }
  0x29   : > { %750 = vmatpush.bf16.msra.mxu2 %v2599_v42  ;;  %v416_v42 = vunpack.c.l.b16 %v391_v28  ;;  %v937_v50 = vrot.slane %v935_v30, 5  ;;  %v681_v51 = vunpack.c.l.b16 %v641_v38  ;;  %v607_v1 = vld [vmem:[%s2766_s14 + $0x20] sm:$0xe]  ;;  %v955_v4 = vshll.u32 %v2951_v56, 16  ;;  %v608_v5 = vld [vmem:[%s2766_s14 + $0x28] sm:$0xe] }
  0x2a   : > { %885 = vmatpush.bf16.msra.mxu3 %v2611_v58  ;;  %v951_v54 = vrot.slane %v949_v35, 5  ;;  %v2622_v58 = vld [vmem:[%s3386_s1 + $0x118] sm:$0xff]  ;;  %v2621_v7 = vld [vmem:[%s3386_s1 + $0x110] sm:$0xff]  ;;  %v2206_v8 = vor.u32 %v2608_v63, %v2205_v62  ;;  %v648_v14 = vrot.slane %v2771_v10, 5  ;;  %v2124_v15 = vrot.slane %v608_v5, 9  ;;  %v2651_v21 = vld [vmem:[%s3386_s1 + $0x1e0] sm:$0xff] }
  0x2b   : > { %491 = vmatmul.bf16.vlgmr.msra.gmra.mxu1 %v419_v41  ;;  %481 = vmatmul.bf16.vlgmr.msra.gmra.mxu0 %v417_v53  ;;  %v415_v41 = vunpack.c.l.b16 %v377_v27  ;;  %v948_v53 = vrot.slane %v946_v34, 4  ;;  %v652_v16 = vrot.slane %v2777_v12, 5  ;;  %v2251_v20 = vld [vmem:[%s2766_s14 + $0x18] sm:$0xf]  ;;  %v2584_v10 = vld [vmem:[%s3386_s1 + $0x8] sm:$0xff]  ;;  %v2641_v23 = vld [vmem:[%s3386_s1 + $0x190] sm:$0xff] }
  0x2c   : > { %574 = vmatpush.bf16.msrb.mxu1 %v2590_v29  ;;  %1124 = vmatpush.bf16.msrb.mxu0 %v2626_v45  ;;  %v932_v29 = vshrl.u32 %v2247_v13, 16  ;;  %v411_v45 = vunpack.c.l.b16 %v321_v31  ;;  %v2253_v22 = vld [vmem:[%s2766_s14 + $0x20] sm:$0xf]  ;;  %v2620_v12 = vld [vmem:[%s3386_s1 + $0x108] sm:$0xff]  ;;  %v960_v28 = vshrl.u32 %v2251_v20, 16  ;;  %v963_v30 = vshll.u32 %v2251_v20, 16 }
  0x2d   : > { %1433 = vmatpush.bf16.msrb.mxu2 %v2646_v48  ;;  %886 = vmatmul.bf16.vlgmr.msra.gmra.mxu3 %v2202_v11  ;;  %v420_v60 = vpack.c.b16 %v416_v42, %v415_v41  ;;  %v952_v3 = vor.u32 %v951_v54, %v948_v53  ;;  %v2123_v11 = vrot.slane %v607_v1, 9  ;;  %v653_v27 = vsel %vm2813_vm5, %v2124_v15, %v652_v16  ;;  %v2583_v34 = vld [vmem:[%s3386_s1] sm:$0xff]  ;;  %v2633_v53 = vld [vmem:[%s3386_s1 + $0x170] sm:$0xff]  ;;  %v610_v5 = vld [vmem:[%s2766_s14 + $0x38] sm:$0xe] }
  0x2e   : > { %751 = vmatmul.bf16.vlgmr.msra.gmra.mxu2 %v687_v46  ;;  %1679 = vmatpush.bf16.msrb.mxu3 %v2654_v2  ;;  %v412_v46 = vunpack.c.l.b16 %v335_v33  ;;  %v934_v48 = vrot.slane %v932_v29, 4  ;;  %v974_v31 = vshrl.u32 %v2253_v22, 16  ;;  %v977_v33 = vshll.u32 %v2253_v22, 16  ;;  %v2073_v35 = vld [vmem:[%s2766_s14] sm:$0xf]  ;;  %v3031_v1 = vld [vmem:[%s3386_s1 + $0x230] sm:$0xff] }
  0x2f   : > { %v953_v18 = vrot.slane %v952_v3, 4  ;;  %v2619_v38 = vld [vmem:[%s3386_s1 + $0x100] sm:$0xff]  ;;  %v2609_v62 = vld [vmem:[%s2766_s14 + $0x2c] sm:$0xf0]  ;;  %v2255_v3 = vld [vmem:[%s2766_s14 + $0x28] sm:$0xf] }
  0x30   : > { %575 = vmatpush.bf16.msrb.mxu1 %v2589_v52  ;;  %1125 = vmatpush.bf16.msrb.mxu0 %v2625_v59  ;;  %v682_v52 = vunpack.c.l.b16 %v645_v39  ;;  %v941_v59 = vshll.u32 %v2945_v47, 16  ;;  %v418_v61 = vpack.c.b16 %v412_v46, %v411_v45  ;;  %v938_v0 = vor.u32 %v937_v50, %v934_v48  ;;  %v2579_v39 = vld [vmem:[%s2766_s14 + $0x4] sm:$0xf0]  ;;  %v3015_v45 = vld [vmem:[%s3386_s1 + $0x238] sm:$0xff]  ;;  %v3018_v46 = vld [vmem:[%s2766_s14 + $0x24] sm:$0x1] }
  0x31   : > { %1434 = vmatpush.bf16.msrb.mxu2 %v2645_v6  ;;  %v2585_v6 = vld [vmem:[%s3386_s1 + $0x10] sm:$0xff]  ;;  %v962_v48 = vrot.slane %v960_v28, 4  ;;  %v965_v50 = vrot.slane %v963_v30, 5  ;;  %v2074_v54 = vor.u32 %v2579_v39, %v2073_v35  ;;  %v988_v15 = vshrl.u32 %v2255_v3, 16  ;;  %v2639_v22 = vld [vmem:[%s3386_s1 + $0x180] sm:$0xff] }
  0x32   : > { %1680 = vmatpush.bf16.msrb.mxu3 %v2653_v24  ;;  %v688_v2 = vpack.c.b16 %v682_v52, %v681_v51  ;;  %v943_v9 = vrot.slane %v941_v59, 5  ;;  %v939_v13 = vrot.slane %v938_v0, 4  ;;  %v2650_v24 = vld [vmem:[%s3386_s1 + $0x1d8] sm:$0xff]  ;;  %v976_v51 = vrot.slane %v974_v31, 4  ;;  %v3071_v28 = vld [vmem:[%s3386_s1 + $0x220] sm:$0xff] }
  0x33   : > { %v979_v52 = vrot.slane %v977_v33, 5  ;;  %v983_v59 = vshll.u32 %v3018_v46, 16  ;;  %v966_v63 = vor.u32 %v965_v50, %v962_v48  ;;  %v991_v16 = vshll.u32 %v2255_v3, 16  ;;  %v2630_v31 = vld [vmem:[%s3386_s1 + $0x158] sm:$0xff]  ;;  %v3081_v33 = vld [vmem:[%s2766_s14 + $0x2c] sm:$0x1] }
  0x34   : > { %576 = vmatpush.bf16.msrb.mxu1 %v2588_v19  ;;  %1126 = vmatpush.bf16.msrb.mxu0 %v2624_v25  ;;  %v957_v19 = vrot.slane %v955_v4, 5  ;;  %v944_v25 = vsel %vm2804_vm4, %v939_v13, %v943_v9  ;;  %v609_v4 = vld [vmem:[%s2766_s14 + $0x30] sm:$0xe]  ;;  %v656_v20 = vrot.slane %v2860_v32, 5  ;;  %v2648_v32 = vld [vmem:[%s3386_s1 + $0x1c8] sm:$0xff] }
  0x35   : > { %1435 = vmatpush.bf16.msrb.mxu2 %v2644_v26  ;;  %v649_v26 = vsel %vm2813_vm5, %v2123_v11, %v648_v14  ;;  %v980_v0 = vor.u32 %v979_v52, %v976_v51  ;;  %v985_v9 = vrot.slane %v983_v59, 5  ;;  %v2257_v11 = vld [vmem:[%s2766_s14 + $0x30] sm:$0xf]  ;;  %v967_v13 = vrot.slane %v966_v63, 4  ;;  %v3084_v39 = vld [vmem:[%s2766_s14 + $0x34] sm:$0x1] }
  0x36   : > { %1681 = vmatpush.bf16.msrb.mxu3 %v2652_v40  ;;  %v958_v29 = vsel %vm2804_vm4, %v953_v18, %v957_v19  ;;  %v1060_v40 = vunpack.c.l.b16 %v944_v25  ;;  %v683_v42 = vunpack.c.l.b16 %v649_v26  ;;  %v3050_v18 = vld [vmem:[%s3386_s1 + $0x228] sm:$0xff]  ;;  %v2125_v19 = vrot.slane %v609_v4, 9  ;;  %v2449_v51 = vld [vmem:[%s2766_s14 + $0x18] sm:$0xf]  ;;  %v2610_v63 = vld [vmem:[%s2766_s14 + $0x3c] sm:$0xf0] }
  0x37   : > { %v1061_v41 = vunpack.c.l.b16 %v958_v29  ;;  %v981_v14 = vrot.slane %v980_v0, 4  ;;  %v990_v26 = vrot.slane %v988_v15, 4  ;;  %v997_v52 = vshll.u32 %v3081_v33, 16  ;;  %v2259_v0 = vld [vmem:[%s2766_s14 + $0x38] sm:$0xf] }
  0x38   : > { %577 = vmatpush.bf16.msrb.mxu1 %v2587_v37  ;;  %1127 = vmatpush.bf16.msrb.mxu0 %v2623_v43  ;;  %v2634_v37 = vld [vmem:[%s3386_s1 + $0x178] sm:$0xff]  ;;  %v684_v43 = vunpack.c.l.b16 %v653_v27  ;;  %v993_v27 = vrot.slane %v991_v16, 5  ;;  %v657_v29 = vsel %vm2813_vm5, %v2125_v19, %v656_v20  ;;  %v1011_v59 = vshll.u32 %v3084_v39, 16  ;;  %v2261_v16 = vld [vmem:[%s2766_s14 + $0x40] sm:$0xf] }
  0x39   : > { %1436 = vmatpush.bf16.msrb.mxu2 %v2643_v44  ;;  %v3010_v44 = vld [vmem:[%s2766_s14 + $0x1c] sm:$0x1]  ;;  %v986_v25 = vsel %vm2804_vm4, %v981_v14, %v985_v9  ;;  %v2647_v19 = vld [vmem:[%s3386_s1 + $0x1c0] sm:$0xff]  ;;  %v1019_v20 = vshll.u32 %v2259_v0, 16 }
  0x3a   : > { %1682 = vmatpush.bf16.msrb.mxu3 %v2651_v21  ;;  %v2126_v21 = vrot.slane %v610_v5, 9  ;;  %v994_v50 = vor.u32 %v993_v27, %v990_v26  ;;  %v3102_v5 = vld [vmem:[%s2766_s14 + $0x14] sm:$0x1]  ;;  %v1013_v15 = vrot.slane %v1011_v59, 5 }
  0x3b   : > { %496 = vmatmul.bf16.gmra.mxu1 %v420_v60  ;;  %486 = vmatmul.bf16.gmra.mxu0 %v418_v61  ;;  %v689_v60 = vpack.c.b16 %v684_v43, %v683_v42  ;;  %v2209_v61 = vld [vmem:[%s2766_s14 + $0x28] sm:$0xf]  ;;  %v2580_v42 = vld [vmem:[%s2766_s14 + $0x14] sm:$0xf0]  ;;  %v685_v43 = vunpack.c.l.b16 %v657_v29  ;;  %v3124_v27 = vld [vmem:[%s3386_s1 + $0x210] sm:$0xff] }
  0x3c   : > { %578 = vmatpush.bf16.msrb.mxu1 %v2586_v55  ;;  %1128 = vmatpush.bf16.msrb.mxu0 %v2622_v58  ;;  %v1068_v55 = vpack.c.b16 %v1061_v41, %v1060_v40  ;;  %v969_v58 = vshll.u32 %v3010_v44, 16  ;;  %v2447_v40 = vld [vmem:[%s2766_s14 + $0x10] sm:$0xf]  ;;  %v995_v4 = vrot.slane %v994_v50, 4  ;;  %v2311_v29 = vld [vmem:[%s2766_s14 + $0x8] sm:$0xe] }
  0x3d   : > { %1437 = vmatpush.bf16.msrb.mxu2 %v2642_v17  ;;  %891 = vmatmul.bf16.gmra.mxu3 %v2206_v8  ;;  %v2649_v17 = vld [vmem:[%s3386_s1 + $0x1d0] sm:$0xff] }
  0x3e   : > { %756 = vmatmul.bf16.gmra.mxu2 %v688_v2  ;;  %1683 = vmatpush.bf16.msrb.mxu3 %v2650_v24  ;;  %v2632_v2 = vld [vmem:[%s3386_s1 + $0x168] sm:$0xff]  ;;  %v971_v8 = vrot.slane %v969_v58, 5  ;;  %v1005_v24 = vshll.u32 %v2257_v11, 16  ;;  %v2077_v41 = vld [vmem:[%s2766_s14 + $0x10] sm:$0xf] }
  0x40   : > { %579 = vmatpush.bf16.msrb.mxu1 %v2585_v6  ;;  %1129 = vmatpush.bf16.msrb.mxu0 %v2621_v7  ;;  %v2640_v6 = vld [vmem:[%s3386_s1 + $0x188] sm:$0xff]  ;;  %v2210_v7 = vor.u32 %v2609_v62, %v2209_v61  ;;  %v1007_v35 = vrot.slane %v1005_v24, 5  ;;  %v2078_v61 = vor.u32 %v2580_v42, %v2077_v41  ;;  %v3137_v42 = vld [vmem:[%s2766_s14 + $0x3c] sm:$0x1] }
  0x41   : > { %1438 = vmatpush.bf16.msrb.mxu2 %v2641_v23  ;;  %v1002_v23 = vshrl.u32 %v2257_v11, 16 }
  0x42   : > { %1684 = vmatpush.bf16.msrb.mxu3 %v2649_v17  ;;  %v1016_v17 = vshrl.u32 %v2259_v0, 16 }
  0x44   : > { %580 = vmatpush.bf16.msrb.mxu1 %v2584_v10  ;;  %1130 = vmatpush.bf16.msrb.mxu0 %v2620_v12  ;;  %v660_v10 = vrot.slane %v2863_v36, 5  ;;  %v2631_v12 = vld [vmem:[%s3386_s1 + $0x160] sm:$0xff]  ;;  %v972_v36 = vsel %vm2804_vm4, %v967_v13, %v971_v8 }
  0x45   : > { %1439 = vmatpush.bf16.msrb.mxu2 %v2640_v6  ;;  %v999_v6 = vrot.slane %v997_v52, 5 }
  0x46   : > { %v661_v30 = vsel %vm2813_vm5, %v2126_v21, %v660_v10  ;;  %1685 = vmatpush.bf16.msrb.mxu3 %v2648_v32  ;;  %v1496_v10 = vshll.u32 %v3102_v5, 16  ;;  %v1191_v32 = vrot.slane %v2951_v56, 5  ;;  %v1018_v56 = vrot.slane %v1016_v17, 4 }
  0x47   : > { %v686_v48 = vunpack.c.l.b16 %v661_v30 }
  0x48   : > { %581 = vmatpush.bf16.msrb.mxu1 %v2583_v34  ;;  %1131 = vmatpush.bf16.msrb.mxu0 %v2619_v38  ;;  %v1004_v34 = vrot.slane %v1002_v23, 4  ;;  %v1063_v38 = vunpack.c.l.b16 %v986_v25  ;;  %v1187_v23 = vrot.slane %v2945_v47, 5  ;;  %v1033_v25 = vshll.u32 %v2261_v16, 16 }
  0x49   : > { %1440 = vmatpush.bf16.msrb.mxu2 %v2639_v22  ;;  %v690_v3 = vpack.c.b16 %v686_v48, %v685_v43  ;;  %v1000_v47 = vsel %vm2804_vm4, %v995_v4, %v999_v6  ;;  %v2401_v4 = vld [vmem:[%s2766_s14 + $0x10] sm:$0xf] }
  0x4a   : > { %v1008_v58 = vor.u32 %v1007_v35, %v1004_v34  ;;  %1686 = vmatpush.bf16.msrb.mxu3 %v2647_v19  ;;  %v2312_v34 = vld [vmem:[%s2766_s14 + $0x10] sm:$0xe]  ;;  %v2319_v35 = vrot.slane %v2311_v29, 9  ;;  %v1035_v52 = vrot.slane %v1033_v25, 5 }
  0x4b   : > { %582 = vmatmul.bf16.vlgmr.msrb.gmra.mxu1 %v2074_v54  ;;  %1132 = vmatmul.bf16.vlgmr.msrb.gmra.mxu0 %v1068_v55  ;;  %v1490_v54 = vshll.u32 %v2447_v40, 16  ;;  %v1501_v55 = vshrl.u32 %v2449_v51, 16  ;;  %v2320_v41 = vrot.slane %v2312_v34, 9  ;;  %v2655_v34 = vld [vmem:[%s3386_s1 + $0x200] sm:$0xff] }
  0x4c   : > { %1298 = vmatpush.bf16.msra.mxu1 %v2634_v37  ;;  %1853 = vmatpush.bf16.msra.mxu0 %v3015_v45  ;;  %v1062_v37 = vunpack.c.l.b16 %v972_v36  ;;  %v1009_v14 = vrot.slane %v1008_v58, 4  ;;  %v1030_v36 = vshrl.u32 %v2261_v16, 16  ;;  %v1188_v50 = vsel %vm2813_vm5, %v2319_v35, %v1187_v23  ;;  %v3169_v23 = vld [vmem:[%s2766_s14 + $0x2c] sm:$0x1] }
  0x4d   : > { %896 = vmatmul.bf16.gmra.mxu3 %v2210_v7  ;;  %2671 = vmatpush.bf16.msra.mxu2 %v3015_v45  ;;  %v2213_v45 = vld [vmem:[%s2766_s14 + $0x38] sm:$0xf]  ;;  %v3105_v7 = vld [vmem:[%s2766_s14 + $0x1c] sm:$0x1]  ;;  %v1492_v9 = vrot.slane %v1490_v54, 5  ;;  %v1503_v11 = vrot.slane %v1501_v55, 4  ;;  %v1234_v54 = vunpack.c.l.b16 %v1188_v50  ;;  %v1064_v58 = vunpack.c.l.b16 %v1000_v47 }
  0x4e   : > { %761 = vmatmul.bf16.gmra.mxu2 %v689_v60  ;;  %v2629_v60 = vld [vmem:[%s3386_s1 + $0x150] sm:$0xff]  ;;  %v1069_v62 = vpack.c.b16 %v1063_v38, %v1062_v37  ;;  %v2214_v13 = vor.u32 %v2610_v63, %v2213_v45  ;;  %v1510_v24 = vshll.u32 %v3105_v7, 16  ;;  %v1014_v30 = vsel %vm2804_vm4, %v1009_v14, %v1013_v15  ;;  %v2081_v55 = vld [vmem:[%s2766_s14 + $0x20] sm:$0xf]  ;;  %v2581_v45 = vld [vmem:[%s2766_s14 + $0x24] sm:$0xf0] }
  0x4f   : > { %v1021_v37 = vrot.slane %v1019_v20, 5  ;;  %v1065_v59 = vunpack.c.l.b16 %v1014_v30  ;;  %v1025_v63 = vshll.u32 %v3137_v42, 16  ;;  %v2082_v17 = vor.u32 %v2581_v45, %v2081_v55  ;;  %v2085_v55 = vld [vmem:[%s2766_s14 + $0x30] sm:$0xf] }
  0x50   : > { %1299 = vmatpush.bf16.msra.mxu1 %v2633_v53  ;;  %1854 = vmatpush.bf16.msra.mxu0 %v3031_v1  ;;  %v1487_v53 = vshrl.u32 %v2447_v40, 16  ;;  %v1498_v40 = vrot.slane %v1496_v10, 5  ;;  %v1512_v48 = vrot.slane %v1510_v24, 5 }
  0x51   : > { %2672 = vmatpush.bf16.msra.mxu2 %v3031_v1  ;;  %v2628_v1 = vld [vmem:[%s3386_s1 + $0x148] sm:$0xff] }
  0x52   : > { %v1489_v8 = vrot.slane %v1487_v53, 4  ;;  %v1192_v53 = vsel %vm2813_vm5, %v2320_v41, %v1191_v32 }
  0x54   : > { %1300 = vmatpush.bf16.msra.mxu1 %v2632_v2  ;;  %1855 = vmatpush.bf16.msra.mxu0 %v3050_v18  ;;  %v1504_v2 = vshll.u32 %v2449_v51, 16  ;;  %v1493_v21 = vor.u32 %v1492_v9, %v1489_v8  ;;  %v1032_v51 = vrot.slane %v1030_v36, 4 }
  0x55   : > { %2673 = vmatpush.bf16.msra.mxu2 %v3050_v18  ;;  %v2656_v18 = vld [vmem:[%s3386_s1 + $0x208] sm:$0xff] }
  0x56   : > { %v1506_v22 = vrot.slane %v1504_v2, 5  ;;  %v1494_v38 = vrot.slane %v1493_v21, 4  ;;  %v2451_v2 = vld [vmem:[%s2766_s14 + $0x20] sm:$0xf] }
  0x57   : > { %v1515_v9 = vshrl.u32 %v2451_v2, 16 }
  0x58   : > { %1301 = vmatpush.bf16.msra.mxu1 %v2631_v12  ;;  %1856 = vmatpush.bf16.msra.mxu0 %v3071_v28  ;;  %v2658_v12 = vld [vmem:[%s3386_s1 + $0x218] sm:$0xff]  ;;  %v1507_v26 = vor.u32 %v1506_v22, %v1503_v11  ;;  %v1499_v0 = vsel %vm2804_vm4, %v1494_v38, %v1498_v40  ;;  %v1518_v11 = vshll.u32 %v2451_v2, 16  ;;  %v3166_v22 = vld [vmem:[%s2766_s14 + $0x24] sm:$0x1]  ;;  %v2314_v38 = vld [vmem:[%s2766_s14 + $0x20] sm:$0xe] }
  0x59   : > { %2674 = vmatpush.bf16.msra.mxu2 %v3071_v28  ;;  %v1036_v28 = vor.u32 %v1035_v52, %v1032_v51  ;;  %v1517_v19 = vrot.slane %v1515_v9, 4  ;;  %v1615_v21 = vunpack.c.l.b16 %v1499_v0  ;;  %v1195_v52 = vrot.slane %v3010_v44, 5 }
  0x5a   : > { %v1508_v43 = vrot.slane %v1507_v26, 4  ;;  %v1520_v20 = vrot.slane %v1518_v11, 5  ;;  %v1027_v26 = vrot.slane %v1025_v63, 5  ;;  %v2511_v63 = vld [vmem:[%s2766_s14 + $0x10] sm:$0xe] }
  0x5b   : > { %587 = vmatmul.bf16.gmra.mxu1 %v2078_v61  ;;  %1137 = vmatmul.bf16.gmra.mxu0 %v1069_v62  ;;  %v1235_v61 = vunpack.c.l.b16 %v1192_v53  ;;  %v1022_v62 = vor.u32 %v1021_v37, %v1018_v56  ;;  %v1037_v29 = vrot.slane %v1036_v28, 4  ;;  %v1524_v56 = vshll.u32 %v3166_v22, 16  ;;  %v2313_v37 = vld [vmem:[%s2766_s14 + $0x18] sm:$0xe] }
  0x5c   : > { %1302 = vmatpush.bf16.msra.mxu1 %v2630_v31  ;;  %1857 = vmatpush.bf16.msra.mxu0 %v2658_v12  ;;  %v2627_v31 = vld [vmem:[%s3386_s1 + $0x140] sm:$0xff]  ;;  %v1513_v6 = vsel %vm2804_vm4, %v1508_v43, %v1512_v48  ;;  %v1521_v30 = vor.u32 %v1520_v20, %v1517_v19  ;;  %v2321_v50 = vrot.slane %v2313_v37, 9  ;;  %v2322_v53 = vrot.slane %v2314_v38, 9 }
  0x5d   : > { %901 = vmatmul.bf16.gmra.mxu3 %v2214_v13  ;;  %v3161_v8 = vpack.c.b16 %v1235_v61, %v1234_v54  ;;  %v2635_v13 = vld [vmem:[%s2766_s14 + $0x14] sm:$0xf0]  ;;  %2675 = vmatpush.bf16.msra.mxu2 %v2658_v12  ;;  %v1616_v10 = vunpack.c.l.b16 %v1513_v6  ;;  %v1023_v25 = vrot.slane %v1022_v62, 4  ;;  %v1538_v12 = vshll.u32 %v3169_v23, 16 }
  0x5e   : > { %766 = vmatmul.bf16.gmra.mxu2 %v690_v3  ;;  %v2453_v3 = vld [vmem:[%s2766_s14 + $0x28] sm:$0xf]  ;;  %v2402_v36 = vor.u32 %v2635_v13, %v2401_v4  ;;  %v1526_v43 = vrot.slane %v1524_v56, 5  ;;  %v1199_v54 = vrot.slane %v3018_v46, 5  ;;  %v1742_v62 = vrot.slane %v3102_v5, 5 }
  0x5f   : > { %v1529_v15 = vshrl.u32 %v2453_v3, 16  ;;  %v1532_v16 = vshll.u32 %v2453_v3, 16  ;;  %v1028_v40 = vsel %vm2804_vm4, %v1023_v25, %v1027_v26  ;;  %v1540_v48 = vrot.slane %v1538_v12, 5  ;;  %v2512_v3 = vld [vmem:[%s2766_s14 + $0x18] sm:$0xe] }
  0x60   : > { %1303 = vmatpush.bf16.msra.mxu1 %v2629_v60  ;;  %1858 = vmatpush.bf16.msra.mxu0 %v3124_v27  ;;  %v3150_v60 = vld [vmem:[%s2766_s14 + $0x44] sm:$0x1]  ;;  %v1066_v45 = vunpack.c.l.b16 %v1028_v40  ;;  %v1200_v61 = vsel %vm2813_vm5, %v2322_v53, %v1199_v54  ;;  %v2455_v4 = vld [vmem:[%s2766_s14 + $0x30] sm:$0xf]  ;;  %v2457_v6 = vld [vmem:[%s2766_s14 + $0x38] sm:$0xf] }
  0x61   : > { %v1039_v14 = vshll.u32 %v3150_v60, 16  ;;  %v1531_v24 = vrot.slane %v1529_v15, 4  ;;  %v1534_v32 = vrot.slane %v1532_v16, 5  ;;  %2676 = vmatpush.bf16.msra.mxu2 %v3124_v27  ;;  %v1522_v27 = vrot.slane %v1521_v30, 4  ;;  %v2405_v16 = vld [vmem:[%s2766_s14 + $0x20] sm:$0xf] }
  0x62   : > { %v1237_v0 = vunpack.c.l.b16 %v1200_v61  ;;  %v1543_v11 = vshrl.u32 %v2455_v4, 16  ;;  %v1546_v13 = vshll.u32 %v2455_v4, 16  ;;  %v1557_v5 = vshrl.u32 %v2457_v6, 16  ;;  %v2315_v53 = vld [vmem:[%s2766_s14 + $0x28] sm:$0xe] }
  0x63   : > { %v1041_v47 = vrot.slane %v1039_v14, 5  ;;  %v1535_v35 = vor.u32 %v1534_v32, %v1531_v24  ;;  %v1527_v46 = vsel %vm2804_vm4, %v1522_v27, %v1526_v43  ;;  %v1746_v15 = vrot.slane %v3105_v7, 5  ;;  %v2316_v54 = vld [vmem:[%s2766_s14 + $0x30] sm:$0xe]  ;;  %v2513_v4 = vld [vmem:[%s2766_s14 + $0x20] sm:$0xe] }
  0x64   : > { %1304 = vmatpush.bf16.msra.mxu1 %v2628_v1  ;;  %1859 = vmatpush.bf16.msra.mxu0 %v2656_v18  ;;  %v1070_v1 = vpack.c.b16 %v1065_v59, %v1064_v58  ;;  %v1196_v59 = vsel %vm2813_vm5, %v2321_v50, %v1195_v52  ;;  %v1617_v19 = vunpack.c.l.b16 %v1527_v46  ;;  %v1545_v24 = vrot.slane %v1543_v11, 4  ;;  %v2409_v50 = vld [vmem:[%s2766_s14 + $0x30] sm:$0xf]  ;;  %v2514_v11 = vld [vmem:[%s2766_s14 + $0x28] sm:$0xe] }
  0x65   : > { %v1042_v41 = vsel %vm2804_vm4, %v1037_v29, %v1041_v47  ;;  %2677 = vmatpush.bf16.msra.mxu2 %v2656_v18  ;;  %v1536_v51 = vrot.slane %v1535_v35, 4  ;;  %v2582_v18 = vld [vmem:[%s2766_s14 + $0x34] sm:$0xf0]  ;;  %v1236_v44 = vunpack.c.l.b16 %v1196_v59  ;;  %v1548_v32 = vrot.slane %v1546_v13, 5  ;;  %v3206_v29 = vld [vmem:[%s2766_s14 + $0x34] sm:$0x1] }
  0x66   : > { %v1067_v58 = vunpack.c.l.b16 %v1042_v41  ;;  %v2086_v28 = vor.u32 %v2582_v18, %v2085_v55  ;;  %v3209_v47 = vld [vmem:[%s2766_s14 + $0x3c] sm:$0x1]  ;;  %v2459_v55 = vld [vmem:[%s2766_s14 + $0x40] sm:$0xf]  ;;  %v2324_v59 = vrot.slane %v2316_v54, 9  ;;  %v1207_v61 = vrot.slane %v3084_v39, 5 }
  0x67   : > { %v1541_v2 = vsel %vm2804_vm4, %v1536_v51, %v1540_v48  ;;  %v3200_v9 = vpack.c.b16 %v1237_v0, %v1236_v44  ;;  %v1549_v12 = vor.u32 %v1548_v32, %v1545_v24  ;;  %v1566_v35 = vshll.u32 %v3209_v47, 16  ;;  %v2461_v18 = vld [vmem:[%s2766_s14 + $0x48] sm:$0xf] }
  0x68   : > { %1305 = vmatpush.bf16.msra.mxu1 %v2627_v31  ;;  %v1623_v31 = vpack.c.b16 %v1616_v10, %v1615_v21  ;;  %1860 = vmatpush.bf16.msra.mxu0 %v2655_v34  ;;  %v1071_v14 = vpack.c.b16 %v1067_v58, %v1066_v45  ;;  %v1618_v20 = vunpack.c.l.b16 %v1541_v2  ;;  %v2519_v21 = vrot.slane %v2511_v63, 9 }
  0x69   : > { %2678 = vmatpush.bf16.msra.mxu2 %v2655_v34  ;;  %v2520_v10 = vrot.slane %v2512_v3, 9  ;;  %v1550_v40 = vrot.slane %v1549_v12, 4  ;;  %v1568_v43 = vrot.slane %v1566_v35, 5  ;;  %v2323_v45 = vrot.slane %v2315_v53, 9 }
  0x6a   : > { %v1624_v30 = vpack.c.b16 %v1618_v20, %v1617_v19  ;;  %v1743_v7 = vsel %vm2813_vm5, %v2519_v21, %v1742_v62  ;;  %v1203_v58 = vrot.slane %v3081_v33, 5  ;;  %v2637_v62 = vld [vmem:[%s2766_s14 + $0x34] sm:$0xf0]  ;;  %v1571_v63 = vshrl.u32 %v2459_v55, 16 }
  0x6b   : > { %592 = vmatmul.bf16.gmra.mxu1 %v2082_v17  ;;  %1142 = vmatmul.bf16.gmra.mxu0 %v1070_v1  ;;  %v2636_v17 = vld [vmem:[%s2766_s14 + $0x24] sm:$0xf0]  ;;  %v1560_v1 = vshll.u32 %v2457_v6, 16  ;;  %v1747_v56 = vsel %vm2813_vm5, %v2520_v10, %v1746_v15  ;;  %v1789_v37 = vunpack.c.l.b16 %v1743_v7  ;;  %v1574_v44 = vshll.u32 %v2459_v55, 16  ;;  %v3236_v15 = vld [vmem:[%s2766_s14 + $0x44] sm:$0x1] }
  0x6c   : > { %v2406_v26 = vor.u32 %v2636_v17, %v2405_v16  ;;  %v1790_v38 = vunpack.c.l.b16 %v1747_v56  ;;  %v1585_v0 = vshrl.u32 %v2461_v18, 16  ;;  %v1588_v46 = vshll.u32 %v2461_v18, 16  ;;  %v3239_v16 = vld [vmem:[%s2766_s14 + $0x4c] sm:$0x1] }
  0x6d   : > { %1687 = vmatmul.bf16.vlgmr.msrb.gmra.mxu3 %v1623_v31  ;;  %v1562_v25 = vrot.slane %v1560_v1, 5  ;;  %v1552_v31 = vshll.u32 %v3206_v29, 16  ;;  %v1204_v6 = vsel %vm2813_vm5, %v2323_v45, %v1203_v58  ;;  %v1208_v33 = vsel %vm2813_vm5, %v2324_v59, %v1207_v61  ;;  %v2516_v61 = vld [vmem:[%s2766_s14 + $0x38] sm:$0xe] }
  0x6e   : > { %1441 = vmatmul.bf16.vlgmr.msrb.gmra.mxu2 %v2402_v36  ;;  %v1559_v36 = vrot.slane %v1557_v5, 4  ;;  %v1797_v48 = vpack.c.b16 %v1790_v38, %v1789_v37  ;;  %v1238_v13 = vunpack.c.l.b16 %v1204_v6  ;;  %v1239_v39 = vunpack.c.l.b16 %v1208_v33  ;;  %v2317_v38 = vld [vmem:[%s2766_s14 + $0x38] sm:$0xe] }
  0x6f   : > { %v1554_v41 = vrot.slane %v1552_v31, 5  ;;  %v1573_v5 = vrot.slane %v1571_v63, 4  ;;  %v1587_v17 = vrot.slane %v1585_v0, 4  ;;  %v1590_v1 = vrot.slane %v1588_v46, 5  ;;  %v2518_v63 = vld [vmem:[%s2766_s14 + $0x48] sm:$0xe] }
  0x70   : > { %v1563_v34 = vor.u32 %v1562_v25, %v1559_v36  ;;  %v2521_v19 = vrot.slane %v2513_v4, 9  ;;  %v3241_v20 = vpack.c.b16 %v1239_v39, %v1238_v13  ;;  %v1750_v10 = vrot.slane %v3166_v22, 5 }
  0x71   : > { %v1555_v51 = vsel %vm2804_vm4, %v1550_v40, %v1554_v41  ;;  %v2522_v24 = vrot.slane %v2514_v11, 9  ;;  %v1754_v32 = vrot.slane %v3169_v23, 5  ;;  %v1580_v25 = vshll.u32 %v3236_v15, 16  ;;  %v2318_v40 = vld [vmem:[%s2766_s14 + $0x40] sm:$0xe] }
  0x72   : > { %v1564_v27 = vrot.slane %v1563_v34, 4  ;;  %v1619_v2 = vunpack.c.l.b16 %v1555_v51  ;;  %v1751_v7 = vsel %vm2813_vm5, %v2521_v19, %v1750_v10  ;;  %v2325_v41 = vrot.slane %v2317_v38, 9  ;;  %v2638_v51 = vld [vmem:[%s2766_s14 + $0x44] sm:$0xf0] }
  0x73   : > { %v1755_v22 = vsel %vm2813_vm5, %v2522_v24, %v1754_v32  ;;  %v1582_v23 = vrot.slane %v1580_v25, 5  ;;  %v1791_v31 = vunpack.c.l.b16 %v1751_v7  ;;  %v1758_v0 = vrot.slane %v3206_v29, 5 }
  0x74   : > { %v1569_v52 = vsel %vm2804_vm4, %v1564_v27, %v1568_v43  ;;  %v1792_v34 = vunpack.c.l.b16 %v1755_v22  ;;  %v1211_v27 = vrot.slane %v3137_v42, 5  ;;  %v2326_v43 = vrot.slane %v2318_v40, 9  ;;  %v2515_v42 = vld [vmem:[%s2766_s14 + $0x30] sm:$0xe] }
  0x75   : > { %v1620_v3 = vunpack.c.l.b16 %v1569_v52  ;;  %v2524_v46 = vrot.slane %v2516_v61, 9  ;;  %v1770_v4 = vrot.slane %v3239_v16, 5  ;;  %v2526_v33 = vrot.slane %v2518_v63, 9 }
  0x76   : > { %v1798_v52 = vpack.c.b16 %v1792_v34, %v1791_v31  ;;  %v1212_v53 = vsel %vm2813_vm5, %v2325_v41, %v1211_v27 }
  0x77   : > { %v1625_v21 = vpack.c.b16 %v1620_v3, %v1619_v2  ;;  %v1240_v45 = vunpack.c.l.b16 %v1212_v53  ;;  %v1762_v2 = vrot.slane %v3209_v47, 5  ;;  %v1766_v3 = vrot.slane %v3236_v15, 5 }
  0x78   : > { %v1771_v29 = vsel %vm2813_vm5, %v2526_v33, %v1770_v4 }
  0x7b   : > { %597 = vmatmul.bf16.gmra.mxu1 %v2086_v28  ;;  %1147 = vmatmul.bf16.gmra.mxu0 %v1071_v14  ;;  %v1576_v28 = vrot.slane %v1574_v44, 5  ;;  %v2410_v14 = vor.u32 %v2637_v62, %v2409_v50  ;;  %v2413_v50 = vld [vmem:[%s2766_s14 + $0x40] sm:$0xf]  ;;  %v2523_v44 = vrot.slane %v2515_v42, 9 }
  0x7c   : > { %v2414_v59 = vor.u32 %v2638_v51, %v2413_v50  ;;  %v2517_v62 = vld [vmem:[%s2766_s14 + $0x40] sm:$0xe]  ;;  %s2577_s14 = sshll.u32 %s3396_s19, 6 }
  0x7d   : > { %1692 = vmatmul.bf16.gmra.mxu3 %v1624_v30  ;;  %v1577_v36 = vor.u32 %v1576_v28, %v1573_v5  ;;  %v1594_v30 = vshll.u32 %v3239_v16, 16  ;;  %v2525_v6 = vrot.slane %v2517_v62, 9  ;;  %v1759_v11 = vsel %vm2813_vm5, %v2523_v44, %v1758_v0  ;;  %s3323_s15 = scalar_lea.vmem %s3389_s4, %s2577_s14  ;;  %s3337_s21 = scalar_lea.vmem %s3390_s5, %s2577_s14 }
  0x7e   : > { %1446 = vmatmul.bf16.gmra.mxu2 %v2406_v26  ;;  %v1591_v26 = vor.u32 %v1590_v1, %v1587_v17  ;;  %v1793_v47 = vunpack.c.l.b16 %v1759_v11  ;;  %v1796_v28 = vunpack.c.l.b16 %v1771_v29 }
  0x7f   : > { %v1596_v12 = vrot.slane %v1594_v30, 5  ;;  %v1767_v13 = vsel %vm2813_vm5, %v2525_v6, %v1766_v3 }
  0x80   : > { %v1592_v56 = vrot.slane %v1591_v26, 4  ;;  %v1795_v5 = vunpack.c.l.b16 %v1767_v13 }
  0x82   : > { %v1597_v37 = vsel %vm2804_vm4, %v1592_v56, %v1596_v12  ;;  %v1800_v17 = vpack.c.b16 %v1796_v28, %v1795_v5 }
  0x83   : > { %v1622_v55 = vunpack.c.l.b16 %v1597_v37 }
  0x8b   : > { %1306 = vmatmul.bf16.vlgmr.msra.gmra.mxu1 %v3161_v8  ;;  %1861 = vmatmul.bf16.vlgmr.msra.gmra.mxu0 %v1797_v48  ;;  %v1578_v8 = vrot.slane %v1577_v36, 4  ;;  %v1215_v48 = vrot.slane %v3150_v60, 5 }
  0x8d   : > { %1697 = vmatmul.bf16.gmra.mxu3 %v1625_v21  ;;  %v1583_v35 = vsel %vm2804_vm4, %v1578_v8, %v1582_v23  ;;  %v1216_v49 = vsel %vm2813_vm5, %v2326_v43, %v1215_v48 }
  0x8e   : > { %1451 = vmatmul.bf16.gmra.mxu2 %v2410_v14  ;;  %v1621_v54 = vunpack.c.l.b16 %v1583_v35  ;;  %v1241_v58 = vunpack.c.l.b16 %v1216_v49 }
  0x90   : > { %v1245_v18 = vpack.c.b16 %v1241_v58, %v1240_v45  ;;  %v1626_v60 = vpack.c.b16 %v1622_v55, %v1621_v54 }
  0x9b   : > { %1311 = vmatmul.bf16.gmra.mxu1 %v3200_v9  ;;  %1866 = vmatmul.bf16.gmra.mxu0 %v1798_v52  ;;  %v1763_v9 = vsel %vm2813_vm5, %v2524_v46, %v1762_v2 }
  0x9c   : > { %v1794_v39 = vunpack.c.l.b16 %v1763_v9 }
  0x9d   : > { %1702 = vmatmul.bf16.gmra.mxu3 %v1626_v60 }
  0x9e   : > { %1456 = vmatmul.bf16.gmra.mxu2 %v2414_v59  ;;  %v1799_v14 = vpack.c.b16 %v1794_v39, %v1793_v47 }
  0xa8   : > { %v492_v15 = vpop.f32.mrf.mxu1  ;;  %v482_v16 = vpop.f32.mrf.mxu0 }
  0xab   : > { %1316 = vmatmul.bf16.gmra.mxu1 %v3241_v20  ;;  %1871 = vmatmul.bf16.gmra.mxu0 %v1799_v14 }
  0xae   : > { %1876 = vmatmul.bf16.vlgmr.msra.gmra.mxu2 %v1800_v17 }
  0xb0   : > { %v494_v19 = vpop.f32.mrf.mxu1  ;;  %v484_v21 = vpop.f32.mrf.mxu0 }
  0xb1   : > { %v752_v1 = vpop.f32.mrf.mxu2  ;;  %v887_v10 = vpop.f32.mrf.mxu3 }
  0xb8   : > { %v497_v32 = vpop.f32.mrf.mxu1  ;;  %v487_v57 = vpop.f32.mrf.mxu0 }
  0xb9   : > { %v754_v24 = vpop.f32.mrf.mxu2  ;;  %v889_v36 = vpop.f32.mrf.mxu3 }
  0xbb   : > { %1321 = vmatmul.bf16.gmra.mxu1 %v1245_v18 }
  0xc0   : > { %v499_v26 = vpop.f32.mrf.mxu1  ;;  %v489_v30 = vpop.f32.mrf.mxu0 }
  0xc1   : > { %v757_v25 = vpop.f32.mrf.mxu2  ;;  %v3284_v7 = vpop.f32.mrf.mxu3 }
  0xc8   : > { %v583_v8 = vpop.f32.mrf.mxu1  ;;  %v1133_v23 = vpop.f32.mrf.mxu0 }
  0xc9   : > { %v759_v22 = vpop.f32.mrf.mxu2  ;;  %v584_v20 = vadd.f32 %v583_v8, %v482_v16  ;;  %v3286_v12 = vpop.f32.mrf.mxu3  ;;  %v1914_v8 = vld [vmem:[%s3323_s15] sm:$0xff] }
  0xcb   : > { %v772_v56 = vadd.f32 %v752_v1, %v584_v20 }
  0xcd   : > { %v907_v39 = vadd.f32 %v887_v10, %v772_v56 }
  0xcf   : > { %v1153_v28 = vadd.f32 %v1133_v23, %v907_v39 }
  0xd0   : > { %v585_v34 = vpop.f32.mrf.mxu1  ;;  %v1135_v35 = vpop.f32.mrf.mxu0 }
  0xd1   : > { %v762_v31 = vpop.f32.mrf.mxu2  ;;  %v586_v37 = vadd.f32 %v585_v34, %v484_v21  ;;  %v3288_v40 = vpop.f32.mrf.mxu3 }
  0xd3   : > { %v773_v38 = vadd.f32 %v754_v24, %v586_v37 }
  0xd8   : > { %v588_v27 = vpop.f32.mrf.mxu1  ;;  %v1138_v43 = vpop.f32.mrf.mxu0 }
  0xd9   : > { %v764_v41 = vpop.f32.mrf.mxu2  ;;  %v589_v48 = vadd.f32 %v588_v27, %v487_v57  ;;  %v3290_v52 = vpop.f32.mrf.mxu3 }
  0xdb   : > { %v774_v50 = vadd.f32 %v757_v25, %v589_v48 }
  0xdd   : > { %v909_v20 = vadd.f32 %v3284_v7, %v774_v50 }
  0xe0   : > { %v590_v53 = vpop.f32.mrf.mxu1  ;;  %v3292_v49 = vpop.f32.mrf.mxu0 }
  0xe1   : > { %v767_v51 = vpop.f32.mrf.mxu2  ;;  %v591_v54 = vadd.f32 %v590_v53, %v489_v30  ;;  %v3296_v61 = vpop.f32.mrf.mxu3  ;;  %v1915_v53 = vld [vmem:[%s3323_s15 + $0x8] sm:$0xff] }
  0xe3   : > { %v775_v55 = vadd.f32 %v759_v22, %v591_v54 }
  0xe5   : > { %v910_v54 = vadd.f32 %v3286_v12, %v775_v55  ;;  %v1916_v12 = vld [vmem:[%s3323_s15 + $0x10] sm:$0xff] }
  0xe8   : > { %v593_v58 = vpop.f32.mrf.mxu1  ;;  %v3294_v59 = vpop.f32.mrf.mxu0 }
  0xe9   : > { %v769_v45 = vpop.f32.mrf.mxu2  ;;  %v594_v42 = vadd.f32 %v593_v58, %v492_v15  ;;  %v3304_v46 = vpop.f32.mrf.mxu3 }
  0xeb   : > { %v3298_v18 = vadd.f32 %v762_v31, %v594_v42 }
  0xed   : > { %v911_v55 = vadd.f32 %v3288_v40, %v3298_v18 }
  0xf0   : > { %v595_v63 = vpop.f32.mrf.mxu1  ;;  %v3300_v60 = vpop.f32.mrf.mxu0 }
  0xf1   : > { %v1442_v62 = vpop.f32.mrf.mxu2  ;;  %v596_v44 = vadd.f32 %v595_v63, %v494_v19  ;;  %v1688_v11 = vpop.f32.mrf.mxu3  ;;  %v908_v19 = vadd.f32 %v889_v36, %v773_v38  ;;  %v3328_v36 = vld [vmem:[%s3388_s3] ss:$0 sm:$0xff]  ;;  %v1155_v38 = vadd.f32 %v1138_v43, %v909_v20 }
  0xf3   : > { %v3302_v0 = vadd.f32 %v764_v41, %v596_v44  ;;  %v1154_v57 = vadd.f32 %v1135_v35, %v908_v19  ;;  %v1156_v44 = vadd.f32 %v3292_v49, %v910_v54 }
  0xf5   : > { %v912_v18 = vadd.f32 %v3290_v52, %v3302_v0 }
  0xf8   : > { %v598_v3 = vpop.f32.mrf.mxu1  ;;  %v3306_v4 = vpop.f32.mrf.mxu0 }
  0xf9   : > { %v1444_v2 = vpop.f32.mrf.mxu2  ;;  %v599_v6 = vadd.f32 %v598_v3, %v497_v32  ;;  %v1690_v14 = vpop.f32.mrf.mxu3  ;;  %v3318_v32 = vld [vmem:[%s3387_s2] ss:$0 sm:$0xff] }
  0xfb   : > { %v3308_v33 = vadd.f32 %v767_v51, %v599_v6 }
  0xfd   : > { %v913_v52 = vadd.f32 %v3296_v61, %v3308_v33 }
 0x100   : > { %v600_v13 = vpop.f32.mrf.mxu1  ;;  %v3310_v29 = vpop.f32.mrf.mxu0 }
 0x101   : > { %v1447_v9 = vpop.f32.mrf.mxu2  ;;  %v601_v47 = vadd.f32 %v600_v13, %v499_v26  ;;  %v1693_v23 = vpop.f32.mrf.mxu3 }
 0x103   : > { %v3312_v5 = vadd.f32 %v769_v45, %v601_v47 }
 0x105   : > { %v914_v61 = vadd.f32 %v3304_v46, %v3312_v5 }
 0x108   : > { %v1307_v15 = vpop.f32.mrf.mxu1  ;;  %v1862_v16 = vpop.f32.mrf.mxu0 }
 0x109   : > { %v1327_v17 = vadd.f32 %v1307_v15, %v1153_v28  ;;  %v1449_v1 = vpop.f32.mrf.mxu2  ;;  %v1695_v42 = vpop.f32.mrf.mxu3  ;;  %v1157_v15 = vadd.f32 %v3294_v59, %v911_v55 }
 0x10b   : > { %v1462_v21 = vadd.f32 %v1442_v62, %v1327_v17 }
 0x10d   : > { %v1708_v24 = vadd.f32 %v1688_v11, %v1462_v21 }
 0x10f   : > { %v1882_v10 = vadd.f32 %v1862_v16, %v1708_v24 }
 0x110   : > { %v1309_v25 = vpop.f32.mrf.mxu1  ;;  %v1864_v26 = vpop.f32.mrf.mxu0 }
 0x111   : > { %v1894_v30 = vmul.f32 %v3318_v32, %v1882_v10  ;;  %v1328_v22 = vadd.f32 %v1309_v25, %v1154_v57  ;;  %v1452_v34 = vpop.f32.mrf.mxu2  ;;  %v1698_v49 = vpop.f32.mrf.mxu3  ;;  %v1917_v10 = vld [vmem:[%s3323_s15 + $0x18] sm:$0xff] }
 0x113   : > { %v1906_v56 = vadd.f32 %v3328_v36, %v1894_v30  ;;  %v1463_v31 = vadd.f32 %v1444_v2, %v1328_v22  ;;  %v1158_v30 = vadd.f32 %v3300_v60, %v912_v18 }
 0x115   : > { %v1922_v35 = vadd.f32 %v1914_v8, %v1906_v56  ;;  %v1709_v37 = vadd.f32 %v1690_v14, %v1463_v31 }
 0x117   : > { %v1930_v41 = vmax.f32 %v1922_v35, 0.0  ;;  %v1883_v27 = vadd.f32 %v1864_v26, %v1709_v37  ;;  %v1918_v37 = vld [vmem:[%s3323_s15 + $0x20] sm:$0xff] }
 0x118   : > { %v1312_v48 = vpop.f32.mrf.mxu1  ;;  %v1867_v51 = vpop.f32.mrf.mxu0 }
 0x119   : > { %1938 = vst [vmem:[%s3337_s21] sm:$0xff] %v1930_v41  ;;  %v1895_v7 = vmul.f32 %v3318_v32, %v1883_v27  ;;  %v1329_v50 = vadd.f32 %v1312_v48, %v1155_v38  ;;  %v1454_v43 = vpop.f32.mrf.mxu2  ;;  %v1159_v27 = vadd.f32 %v3306_v4, %v913_v52 }
 0x11b   : > { %v1907_v45 = vadd.f32 %v3328_v36, %v1895_v7  ;;  %v1464_v58 = vadd.f32 %v1447_v9, %v1329_v50 }
 0x11d   : > { %v1923_v62 = vadd.f32 %v1915_v53, %v1907_v45  ;;  %v1710_v63 = vadd.f32 %v1693_v23, %v1464_v58  ;;  %v1700_v23 = vpop.f32.mrf.mxu3  ;;  %v1919_v45 = vld [vmem:[%s3323_s15 + $0x28] sm:$0xff] }
 0x11f   : > { %v1931_v2 = vmax.f32 %v1923_v62, 0.0  ;;  %v1884_v3 = vadd.f32 %v1867_v51, %v1710_v63  ;;  %v1160_v63 = vadd.f32 %v3310_v29, %v914_v61 }
 0x120   : > { %v1314_v6 = vpop.f32.mrf.mxu1  ;;  %v1869_v11 = vpop.f32.mrf.mxu0 }
 0x121   : > { %1939 = vst [vmem:[%s3337_s21 + $0x8] sm:$0xff] %v1931_v2  ;;  %v1896_v13 = vmul.f32 %v3318_v32, %v1884_v3  ;;  %v1330_v47 = vadd.f32 %v1314_v6, %v1156_v44  ;;  %v1457_v19 = vpop.f32.mrf.mxu2 }
 0x123   : > { %v1908_v9 = vadd.f32 %v3328_v36, %v1896_v13  ;;  %v1465_v39 = vadd.f32 %v1449_v1, %v1330_v47 }
 0x125   : > { %v1924_v28 = vadd.f32 %v1916_v12, %v1908_v9  ;;  %v1711_v14 = vadd.f32 %v1695_v42, %v1465_v39  ;;  %v1703_v54 = vpop.f32.mrf.mxu3 }
 0x127   : > { %v1932_v16 = vmax.f32 %v1924_v28, 0.0  ;;  %v1885_v17 = vadd.f32 %v1869_v11, %v1711_v14  ;;  %v1920_v11 = vld [vmem:[%s3323_s15 + $0x30] sm:$0xff]  ;;  %v1921_v28 = vld [vmem:[%s3323_s15 + $0x38] sm:$0xff] }
 0x128   : > { %v1317_v21 = vpop.f32.mrf.mxu1  ;;  %v1872_v40 = vpop.f32.mrf.mxu0 }
 0x129   : > { %1940 = vst [vmem:[%s3337_s21 + $0x10] sm:$0xff] %v1932_v16  ;;  %v1897_v24 = vmul.f32 %v3318_v32, %v1885_v17  ;;  %v1331_v57 = vadd.f32 %v1317_v21, %v1157_v15  ;;  %v1459_v35 = vpop.f32.mrf.mxu2 }
 0x12b   : > { %v1909_v1 = vadd.f32 %v3328_v36, %v1897_v24  ;;  %v1466_v25 = vadd.f32 %v1452_v34, %v1331_v57 }
 0x12d   : > { %v1925_v26 = vadd.f32 %v1917_v10, %v1909_v1  ;;  %v1712_v59 = vadd.f32 %v1698_v49, %v1466_v25  ;;  %v1705_v13 = vpop.f32.mrf.mxu3 }
 0x12f   : > { %v1933_v22 = vmax.f32 %v1925_v26, 0.0  ;;  %v1886_v8 = vadd.f32 %v1872_v40, %v1712_v59 }
 0x130   : > { %v1319_v20 = vpop.f32.mrf.mxu1  ;;  %v1874_v38 = vpop.f32.mrf.mxu0 }
 0x131   : > { %1941 = vst [vmem:[%s3337_s21 + $0x18] sm:$0xff] %v1933_v22  ;;  %v1898_v56 = vmul.f32 %v3318_v32, %v1886_v8  ;;  %v1332_v31 = vadd.f32 %v1319_v20, %v1158_v30  ;;  %v1877_v42 = vpop.f32.mrf.mxu2 }
 0x133   : > { %v1910_v0 = vadd.f32 %v3328_v36, %v1898_v56  ;;  %v1467_v34 = vadd.f32 %v1454_v43, %v1332_v31 }
 0x135   : > { %v1926_v60 = vadd.f32 %v1918_v37, %v1910_v0  ;;  %v1713_v41 = vadd.f32 %v1700_v23, %v1467_v34 }
 0x137   : > { %v1934_v48 = vmax.f32 %v1926_v60, 0.0  ;;  %v1887_v51 = vadd.f32 %v1874_v38, %v1713_v41 }
 0x138   : > { %v1322_v7 = vpop.f32.mrf.mxu1 }
 0x139   : > { %1942 = vst [vmem:[%s3337_s21 + $0x20] sm:$0xff] %v1934_v48  ;;  %v1899_v50 = vmul.f32 %v3318_v32, %v1887_v51  ;;  %v1333_v53 = vadd.f32 %v1322_v7, %v1159_v27  ;;  %v1879_v55 = vpop.f32.mrf.mxu2 }
 0x13b   : > { %v1911_v33 = vadd.f32 %v3328_v36, %v1899_v50  ;;  %v1468_v58 = vadd.f32 %v1457_v19, %v1333_v53 }
 0x13d   : > { %v1927_v62 = vadd.f32 %v1919_v45, %v1911_v33  ;;  %v1714_v4 = vadd.f32 %v1703_v54, %v1468_v58 }
 0x13f   : > { %v1935_v43 = vmax.f32 %v1927_v62, 0.0  ;;  %v1888_v44 = vadd.f32 %v1877_v42, %v1714_v4 }
 0x140   : > { %v1324_v2 = vpop.f32.mrf.mxu1 }
 0x141   : > { %1943 = vst [vmem:[%s3337_s21 + $0x28] sm:$0xff] %v1935_v43  ;;  %v1900_v3 = vmul.f32 %v3318_v32, %v1888_v44  ;;  %v1334_v6 = vadd.f32 %v1324_v2, %v1160_v63 }
 0x143   : > { %v1912_v46 = vadd.f32 %v3328_v36, %v1900_v3  ;;  %v1469_v5 = vadd.f32 %v1459_v35, %v1334_v6 }
 0x145   : > { %v1928_v47 = vadd.f32 %v1920_v11, %v1912_v46  ;;  %v1715_v12 = vadd.f32 %v1705_v13, %v1469_v5 }
 0x147   : > { %v1936_v9 = vmax.f32 %v1928_v47, 0.0  ;;  %v1889_v29 = vadd.f32 %v1879_v55, %v1715_v12 }
 0x149   : > { %1944 = vst [vmem:[%s3337_s21 + $0x30] sm:$0xff] %v1936_v9  ;;  %v1901_v39 = vmul.f32 %v3318_v32, %v1889_v29 }
 0x14b   : > { %v1913_v14 = vadd.f32 %v3328_v36, %v1901_v39 }
 0x14d   : > { %v1929_v49 = vadd.f32 %v1921_v28, %v1913_v14 }
 0x14f   : > { %v1937_v15 = vmax.f32 %v1929_v49, 0.0 }
 0x151   : > { %1945 = vst [vmem:[%s3337_s21 + $0x38] sm:$0xff] %v1937_v15 }
 0x152 PF: > { %s15_s18 = sadd.s32 1, %s2696_s18  }
 0x153   : > { %p12_p4 = scmp.ge.s32.totalorder %s15_s18, 4  }
 0x155   :  { %14 = sbr.rel (!%p12_p4) target bundleno = 1 (0x1), region = 83 }

</bundles_post_ra>
